<compile_context>
chip_gen: v5e
topology: v5e:2x2
jax: 0.10.0
libtpu: 0.0.40
codegen_flags: <defaults>
</compile_context>

<pallas_src>
import functools

import jax
import jax.numpy as jnp
from jax.experimental import pallas as pl
from jax.experimental.pallas import tpu as pltpu


# ------------------------------ fused kernel -------------------------------

def _recnet1_kernel(x_ref, adjt_ref, bias_ref,
                    enc_w_ref, enc_b_ref,
                    gat_w_ref, ar_ref, al_ref, gat_b_ref,
                    fc_w_ref, fc_b_ref, bn_g_ref, bn_b_ref,
                    dec_w_ref, dec_b_ref,
                    sel_ref, blkones_ref, headmask_ref,
                    z_ref, loss_ref,
                    *, num_layers, num_heads, slope, bn_eps):
    """Entire RecNet1 forward in one kernel invocation (everything VMEM-resident)."""
    x = x_ref[...]
    adj_t = adjt_ref[...]          # [N, H*N]  binary adjacency tiled over heads
    bias = bias_ref[...]           # [N, H*N]  additive mask: 0 on edges, -1e30 off-edges
    sel = sel_ref[...]             # [N, H*N]  sel[r, hd*N+s] = (s == r)
    blkones = blkones_ref[...]     # [H*N, H*N] per-head block-of-ones (denominator bcast)
    headmask = headmask_ref[...]   # [H*N, H*F] block-diagonal head mask

    def gnn_block(h, l):
        # ---------------- GATConv: all heads, lane-dense ----------------
        feat = jnp.dot(h, gat_w_ref[l], preferred_element_type=jnp.float32)       # [N, H*F]
        # logits e[dst, hd*N+src] = LeakyReLU(er[dst,hd] + el[src,hd])
        er_exp = jnp.dot(feat, ar_ref[l], preferred_element_type=jnp.float32)     # [N, H*N]
        el_tmp = jnp.dot(feat, al_ref[l], preferred_element_type=jnp.float32)     # [N, H*N] (rows = src)
        el_row = jnp.sum(el_tmp * sel, axis=0, keepdims=True)                     # [1, H*N] (src -> lanes)
        e = er_exp + el_row
        e = jnp.where(e > 0, e, slope * e)                                         # LeakyReLU(0.2)
        e = e + bias                                                               # additive adjacency mask
        # single shared per-dst max across all heads (softmax is per-row shift-invariant;
        # logit spread across heads is << 80 at these scales so no underflow risk)
        m = jnp.max(e, axis=-1, keepdims=True)
        p = jnp.exp(e - m) * adj_t            # masked numerators; zero-in-degree rows -> 0
        denom = jnp.dot(p, blkones, preferred_element_type=jnp.float32)            # [N, H*N]
        alpha = p / jnp.maximum(denom, 1e-30)                                      # exact divide
        # per-head aggregation as ONE K=H*N lane-dense matmul against block-diag feat
        feat_bd = jnp.concatenate([feat] * num_heads, axis=0) * headmask           # [H*N, H*F]
        out = jnp.dot(alpha, feat_bd, preferred_element_type=jnp.float32) + gat_b_ref[l]

        # -------- Linear (mean-over-heads folded into tiled fc_w) + ReLU + BatchNorm --------
        y = jnp.dot(out, fc_w_ref[l], preferred_element_type=jnp.float32) + fc_b_ref[l]
        y = jnp.maximum(y, 0.0)
        mean = jnp.mean(y, axis=0, keepdims=True)
        var = jnp.mean((y - mean) ** 2, axis=0, keepdims=True)                     # biased var
        y = (y - mean) * jax.lax.rsqrt(var + bn_eps) * bn_g_ref[l] + bn_b_ref[l]
        # TODO(synk): dropout modeled as identity (inference mode)
        return y

    # ---- Encoder1.encoding ----
    h = jnp.dot(x, enc_w_ref[...], preferred_element_type=jnp.float32) + enc_b_ref[...]
    for l in range(num_layers):
        h = gnn_block(h, l)
    z_ref[...] = h.astype(z_ref.dtype)

    # ---- Decoder1.decoding ----
    for l in range(num_layers, 2 * num_layers):
        h = gnn_block(h, l)
    recon = jnp.dot(h, dec_w_ref[...], preferred_element_type=jnp.float32) + dec_b_ref[...]

    # ---- MSE(recon, x) fused into the same kernel ----
    d = recon - x
    s = jnp.sum(jnp.sum(d * d, axis=1, keepdims=True), axis=0, keepdims=True)      # [1, 1]
    loss_ref[...] = s * (1.0 / float(d.shape[0] * d.shape[1]))


# --------------------- one-time host-side weight prep ----------------------

def prepare_params(params, *, num_heads, num_layers, num_nodes):
    """Hoisted weight preprocessing (called ONCE, outside the jitted forward)."""
    H, N = num_heads, num_nodes
    hidden = params['enc_fc_dim_w'].shape[1]
    in_dim = params['enc_fc_dim_w'].shape[0]
    F = hidden
    HF, HN = H * F, H * N
    eyeH = jnp.eye(H, dtype=jnp.float32)

    def prep(p):
        # block-diagonal, src-broadcast attention projections:
        #   ar_exp[hd*F+f, hd*N+src] = attn_r[hd, f];  al_exp likewise with attn_l.
        ar4 = p['attn_r'][:, :, None, None] * eyeH[:, None, :, None]              # [H,F,H,1]
        al4 = p['attn_l'][:, :, None, None] * eyeH[:, None, :, None]
        ar_exp = jnp.broadcast_to(ar4, (H, F, H, N)).reshape(HF, HN)
        al_exp = jnp.broadcast_to(al4, (H, F, H, N)).reshape(HF, HN)
        # fold mean-over-heads into the fc weight: tile along K and scale by 1/H
        fc_w_tiled = jnp.tile(p['fc_w'], (H, 1)) * (1.0 / H)                       # [H*F, F]
        return (p['gat_w'], ar_exp, al_exp, p['gat_b'].reshape(1, HF),
                fc_w_tiled, p['fc_b'].reshape(1, F),
                p['bn_g'].reshape(1, F), p['bn_b'].reshape(1, F))

    blocks = list(params['enc_layers']) + list(params['dec_layers'])
    stacked = [jnp.stack(t, axis=0) for t in zip(*[prep(p) for p in blocks])]
    gat_w, ar_exp, al_exp, gat_b, fc_w, fc_b, bn_g, bn_b = stacked

    # graph-size-dependent, layer-invariant constants
    idx = jnp.arange(N)
    sel = jnp.tile((idx[:, None] == idx[None, :]).astype(jnp.float32), (1, H))     # [N, H*N]
    blockones = jnp.repeat(jnp.repeat(eyeH, N, axis=0), N, axis=1)                 # [H*N, H*N]
    headmask = jnp.repeat(jnp.repeat(eyeH, N, axis=0), F, axis=1)                  # [H*N, H*F]

    return dict(
        enc_w=params['enc_fc_dim_w'], enc_b=params['enc_fc_dim_b'].reshape(1, hidden),
        dec_w=params['dec_fc_dim_w'], dec_b=params['dec_fc_dim_b'].reshape(1, in_dim),
        gat_w=gat_w, ar_exp=ar_exp, al_exp=al_exp, gat_b=gat_b,
        fc_w=fc_w, fc_b=fc_b, bn_g=bn_g, bn_b=bn_b,
        sel=sel, blockones=blockones, headmask=headmask,
    )


# ------------------------------ jitted forward ------------------------------

def _fullspec(shape):
    n = len(shape)
    return pl.BlockSpec(shape, lambda i, _n=n: (0,) * _n)


def recnet1_forward(prepared, x, adj, *, num_heads, num_layers):
    """Fused RecNet1 forward. Returns (z, mse_loss)."""
    N, in_dim = x.shape
    hidden = prepared['enc_w'].shape[1]
    H = num_heads

    # per-call (graph-dependent) prep: binary adjacency tiled over heads + additive bias
    adj_tiled = jnp.tile((adj > 0).astype(jnp.float32), (1, H))                    # [N, H*N]
    bias_tiled = (adj_tiled - 1.0) * 1e30                                          # 0 on edges, -1e30 off

    kernel = functools.partial(_recnet1_kernel, num_layers=num_layers,
                               num_heads=H, slope=0.2, bn_eps=1e-5)

    operands = (x, adj_tiled, bias_tiled,
                prepared['enc_w'], prepared['enc_b'],
                prepared['gat_w'], prepared['ar_exp'], prepared['al_exp'], prepared['gat_b'],
                prepared['fc_w'], prepared['fc_b'], prepared['bn_g'], prepared['bn_b'],
                prepared['dec_w'], prepared['dec_b'],
                prepared['sel'], prepared['blockones'], prepared['headmask'])

    z, loss = pl.pallas_call(
        kernel,
        out_shape=(jax.ShapeDtypeStruct((N, hidden), jnp.float32),
                   jax.ShapeDtypeStruct((1, 1), jnp.float32)),
        grid=(1,),
        in_specs=[_fullspec(op.shape) for op in operands],
        out_specs=(_fullspec((N, hidden)), _fullspec((1, 1))),
        compiler_params=pltpu.CompilerParams(dimension_semantics=("arbitrary",)),
    )(*operands)
    return z, loss[0, 0]


# ----------------------------- model plumbing ------------------------------

def _normal(key, shape, scale=0.1):
    return scale * jax.random.normal(key, shape, dtype=jnp.float32)


def init_gnn_block(key, hidden, heads):
    ks = jax.random.split(key, 6)
    return dict(
        gat_w=_normal(ks[0], (hidden, heads * hidden)),
        attn_l=_normal(ks[1], (heads, hidden)),
        attn_r=_normal(ks[2], (heads, hidden)),
        gat_b=jnp.zeros((heads, hidden), jnp.float32),
        fc_w=_normal(ks[3], (hidden, hidden)),
        fc_b=_normal(ks[4], (hidden,), scale=0.01),
        bn_g=jnp.ones((hidden,), jnp.float32),
        bn_b=jnp.zeros((hidden,), jnp.float32),
    )


def init_params(key, param):
    input_dim = param['input_dim']
    hidden = param['resid_hidden_dim']
    heads = param['num_heads']
    layers = param['resid_num_layers']
    keys = jax.random.split(key, 2 * layers + 4)
    enc_layers = [init_gnn_block(keys[i], hidden, heads) for i in range(layers)]
    dec_layers = [init_gnn_block(keys[layers + i], hidden, heads) for i in range(layers)]
    return dict(
        enc_fc_dim_w=_normal(keys[-4], (input_dim, hidden)),
        enc_fc_dim_b=_normal(keys[-3], (hidden,), scale=0.01),
        enc_layers=enc_layers,
        dec_layers=dec_layers,
        dec_fc_dim_w=_normal(keys[-2], (hidden, input_dim)),
        dec_fc_dim_b=_normal(keys[-1], (input_dim,), scale=0.01),
    )


# --------------------------------- main -------------------------------------

if __name__ == "__main__":
    param = dict(input_dim=16, resid_hidden_dim=32, num_heads=4,
                 resid_num_layers=2, dropout_ratio=0.1)
    N = 32  # number of graph nodes

    key = jax.random.PRNGKey(0)
    k_params, k_x = jax.random.split(key)
    params = init_params(k_params, param)
    x = jax.random.normal(k_x, (N, param['input_dim']), dtype=jnp.float32)

    # Deterministic graph: ring with self-loops (adj[dst, src]); every node has in-degree >= 1.
    idx = jnp.arange(N)
    adj = jnp.zeros((N, N), jnp.float32)
    adj = adj.at[idx, idx].set(1.0)
    adj = adj.at[idx, (idx + 1) % N].set(1.0)
    adj = adj.at[idx, (idx - 1) % N].set(1.0)

    # one-time weight prep, hoisted OUT of the per-call jitted path
    prepared = prepare_params(params, num_heads=param['num_heads'],
                              num_layers=param['resid_num_layers'], num_nodes=N)
    prepared = jax.device_put(prepared)

    fwd = jax.jit(functools.partial(recnet1_forward,
                                    num_heads=param['num_heads'],
                                    num_layers=param['resid_num_layers']))
    z, loss = fwd(prepared, x, adj)
    jax.block_until_ready((z, loss))

    assert z.shape == (N, param['resid_hidden_dim'])
    assert loss.shape == ()
    assert bool(jnp.isfinite(loss))
    print("KERNEL_OK")
</pallas_src>

<mosaic_0001>
module attributes {stable_mosaic.version = 11 : i64} {
  func.func @_recnet1_kernel(%arg0: i32, %arg1: memref<32x16xf32, #tpu.memory_space<vmem>>, %arg2: memref<32x128xf32, #tpu.memory_space<vmem>>, %arg3: memref<32x128xf32, #tpu.memory_space<vmem>>, %arg4: memref<16x32xf32, #tpu.memory_space<vmem>>, %arg5: memref<1x32xf32, #tpu.memory_space<vmem>>, %arg6: memref<4x32x128xf32, #tpu.memory_space<vmem>>, %arg7: memref<4x128x128xf32, #tpu.memory_space<vmem>>, %arg8: memref<4x128x128xf32, #tpu.memory_space<vmem>>, %arg9: memref<4x1x128xf32, #tpu.memory_space<vmem>>, %arg10: memref<4x128x32xf32, #tpu.memory_space<vmem>>, %arg11: memref<4x1x32xf32, #tpu.memory_space<vmem>>, %arg12: memref<4x1x32xf32, #tpu.memory_space<vmem>>, %arg13: memref<4x1x32xf32, #tpu.memory_space<vmem>>, %arg14: memref<32x16xf32, #tpu.memory_space<vmem>>, %arg15: memref<1x16xf32, #tpu.memory_space<vmem>>, %arg16: memref<32x128xf32, #tpu.memory_space<vmem>>, %arg17: memref<128x128xf32, #tpu.memory_space<vmem>>, %arg18: memref<128x128xf32, #tpu.memory_space<vmem>>, %arg19: memref<32x32xf32, #tpu.memory_space<vmem>>, %arg20: memref<1x1xf32, #tpu.memory_space<vmem>>) attributes {dimension_semantics = [#tpu.dimension_semantics<arbitrary>], iteration_bounds = array<i64: 1>, scalar_prefetch = 0 : i64, scratch_operands = 0 : i64, tpu.core_type = #tpu.core_type<tc>, window_params = [{pipeline_mode = #tpu.pipeline_mode<synchronous>, transform_indices = @transform_0, window_bounds = array<i64: 32, 16>}, {pipeline_mode = #tpu.pipeline_mode<synchronous>, transform_indices = @transform_1, window_bounds = array<i64: 32, 128>}, {pipeline_mode = #tpu.pipeline_mode<synchronous>, transform_indices = @transform_2, window_bounds = array<i64: 32, 128>}, {pipeline_mode = #tpu.pipeline_mode<synchronous>, transform_indices = @transform_3, window_bounds = array<i64: 16, 32>}, {pipeline_mode = #tpu.pipeline_mode<synchronous>, transform_indices = @transform_4, window_bounds = array<i64: 1, 32>}, {pipeline_mode = #tpu.pipeline_mode<synchronous>, transform_indices = @transform_5, window_bounds = array<i64: 4, 32, 128>}, {pipeline_mode = #tpu.pipeline_mode<synchronous>, transform_indices = @transform_6, window_bounds = array<i64: 4, 128, 128>}, {pipeline_mode = #tpu.pipeline_mode<synchronous>, transform_indices = @transform_7, window_bounds = array<i64: 4, 128, 128>}, {pipeline_mode = #tpu.pipeline_mode<synchronous>, transform_indices = @transform_8, window_bounds = array<i64: 4, 1, 128>}, {pipeline_mode = #tpu.pipeline_mode<synchronous>, transform_indices = @transform_9, window_bounds = array<i64: 4, 128, 32>}, {pipeline_mode = #tpu.pipeline_mode<synchronous>, transform_indices = @transform_10, window_bounds = array<i64: 4, 1, 32>}, {pipeline_mode = #tpu.pipeline_mode<synchronous>, transform_indices = @transform_11, window_bounds = array<i64: 4, 1, 32>}, {pipeline_mode = #tpu.pipeline_mode<synchronous>, transform_indices = @transform_12, window_bounds = array<i64: 4, 1, 32>}, {pipeline_mode = #tpu.pipeline_mode<synchronous>, transform_indices = @transform_13, window_bounds = array<i64: 32, 16>}, {pipeline_mode = #tpu.pipeline_mode<synchronous>, transform_indices = @transform_14, window_bounds = array<i64: 1, 16>}, {pipeline_mode = #tpu.pipeline_mode<synchronous>, transform_indices = @transform_15, window_bounds = array<i64: 32, 128>}, {pipeline_mode = #tpu.pipeline_mode<synchronous>, transform_indices = @transform_16, window_bounds = array<i64: 128, 128>}, {pipeline_mode = #tpu.pipeline_mode<synchronous>, transform_indices = @transform_17, window_bounds = array<i64: 128, 128>}, {pipeline_mode = #tpu.pipeline_mode<synchronous>, transform_indices = @transform_18, window_bounds = array<i64: 32, 32>}, {pipeline_mode = #tpu.pipeline_mode<synchronous>, transform_indices = @transform_19, window_bounds = array<i64: 1, 1>}]} {
    %c0 = arith.constant 0 : index
    %c0_0 = arith.constant 0 : index
    %0 = vector.load %arg1[%c0, %c0_0] : memref<32x16xf32, #tpu.memory_space<vmem>>, vector<32x16xf32>
    %c0_1 = arith.constant 0 : index
    %c0_2 = arith.constant 0 : index
    %1 = vector.load %arg2[%c0_1, %c0_2] : memref<32x128xf32, #tpu.memory_space<vmem>>, vector<32x128xf32>
    %c0_3 = arith.constant 0 : index
    %c0_4 = arith.constant 0 : index
    %2 = vector.load %arg3[%c0_3, %c0_4] : memref<32x128xf32, #tpu.memory_space<vmem>>, vector<32x128xf32>
    %c0_5 = arith.constant 0 : index
    %c0_6 = arith.constant 0 : index
    %3 = vector.load %arg16[%c0_5, %c0_6] : memref<32x128xf32, #tpu.memory_space<vmem>>, vector<32x128xf32>
    %c0_7 = arith.constant 0 : index
    %c0_8 = arith.constant 0 : index
    %4 = vector.load %arg17[%c0_7, %c0_8] : memref<128x128xf32, #tpu.memory_space<vmem>>, vector<128x128xf32>
    %c0_9 = arith.constant 0 : index
    %c0_10 = arith.constant 0 : index
    %5 = vector.load %arg18[%c0_9, %c0_10] : memref<128x128xf32, #tpu.memory_space<vmem>>, vector<128x128xf32>
    %c0_11 = arith.constant 0 : index
    %c0_12 = arith.constant 0 : index
    %6 = vector.load %arg4[%c0_11, %c0_12] : memref<16x32xf32, #tpu.memory_space<vmem>>, vector<16x32xf32>
    %cst = arith.constant dense<0.000000e+00> : vector<32x32xf32>
    %7 = tpu.matmul %0, %6, %cst {dimension_numbers = #tpu.dot_dimension_numbers<[1], [0], [0], [1], [0, 0, 1, 1], [], []>} : vector<32x16xf32>, vector<16x32xf32>, vector<32x32xf32> -> vector<32x32xf32>
    %c0_13 = arith.constant 0 : index
    %c0_14 = arith.constant 0 : index
    %8 = vector.load %arg5[%c0_13, %c0_14] : memref<1x32xf32, #tpu.memory_space<vmem>>, vector<1x32xf32>
    %9 = vector.broadcast %8 : vector<1x32xf32> to vector<32x32xf32>
    %10 = arith.addf %7, %9 : vector<32x32xf32>
    %c0_15 = arith.constant 0 : index
    %c0_16 = arith.constant 0 : index
    %c0_17 = arith.constant 0 : index
    %11 = vector.load %arg6[%c0_15, %c0_16, %c0_17] : memref<4x32x128xf32, #tpu.memory_space<vmem>>, vector<1x32x128xf32>
    %12 = vector.shape_cast %11 : vector<1x32x128xf32> to vector<32x128xf32>
    %cst_18 = arith.constant dense<0.000000e+00> : vector<32x128xf32>
    %13 = tpu.matmul %10, %12, %cst_18 {dimension_numbers = #tpu.dot_dimension_numbers<[1], [0], [0], [1], [0, 0, 1, 1], [], []>} : vector<32x32xf32>, vector<32x128xf32>, vector<32x128xf32> -> vector<32x128xf32>
    %c0_19 = arith.constant 0 : index
    %c0_20 = arith.constant 0 : index
    %c0_21 = arith.constant 0 : index
    %14 = vector.load %arg7[%c0_19, %c0_20, %c0_21] : memref<4x128x128xf32, #tpu.memory_space<vmem>>, vector<1x128x128xf32>
    %15 = vector.shape_cast %14 : vector<1x128x128xf32> to vector<128x128xf32>
    %cst_22 = arith.constant dense<0.000000e+00> : vector<32x128xf32>
    %16 = tpu.matmul %13, %15, %cst_22 {dimension_numbers = #tpu.dot_dimension_numbers<[1], [0], [0], [1], [0, 0, 1, 1], [], []>} : vector<32x128xf32>, vector<128x128xf32>, vector<32x128xf32> -> vector<32x128xf32>
    %c0_23 = arith.constant 0 : index
    %c0_24 = arith.constant 0 : index
    %c0_25 = arith.constant 0 : index
    %17 = vector.load %arg8[%c0_23, %c0_24, %c0_25] : memref<4x128x128xf32, #tpu.memory_space<vmem>>, vector<1x128x128xf32>
    %18 = vector.shape_cast %17 : vector<1x128x128xf32> to vector<128x128xf32>
    %cst_26 = arith.constant dense<0.000000e+00> : vector<32x128xf32>
    %19 = tpu.matmul %13, %18, %cst_26 {dimension_numbers = #tpu.dot_dimension_numbers<[1], [0], [0], [1], [0, 0, 1, 1], [], []>} : vector<32x128xf32>, vector<128x128xf32>, vector<32x128xf32> -> vector<32x128xf32>
    %20 = arith.mulf %19, %3 : vector<32x128xf32>
    %cst_27 = arith.constant dense<0.000000e+00> : vector<128xf32>
    %21 = vector.multi_reduction <add>, %20, %cst_27 [0] : vector<32x128xf32> to vector<128xf32>
    %22 = vector.shape_cast %21 : vector<128xf32> to vector<1x128xf32>
    %23 = vector.broadcast %22 : vector<1x128xf32> to vector<32x128xf32>
    %24 = arith.addf %16, %23 : vector<32x128xf32>
    %cst_28 = arith.constant 0.000000e+00 : f32
    %25 = vector.broadcast %cst_28 : f32 to vector<32x128xf32>
    %26 = arith.cmpf ogt, %24, %25 : vector<32x128xf32>
    %cst_29 = arith.constant 2.000000e-01 : f32
    %27 = vector.broadcast %cst_29 : f32 to vector<32x128xf32>
    %28 = arith.mulf %27, %24 : vector<32x128xf32>
    %29 = arith.select %26, %24, %28 : vector<32x128xi1>, vector<32x128xf32>
    %30 = arith.addf %29, %2 : vector<32x128xf32>
    %cst_30 = arith.constant dense<0xFF800000> : vector<32xf32>
    %31 = vector.multi_reduction <maximumf>, %30, %cst_30 [1] : vector<32x128xf32> to vector<32xf32>
    %32 = vector.shape_cast %31 : vector<32xf32> to vector<32x1xf32>
    %33 = vector.broadcast %32 : vector<32x1xf32> to vector<32x128xf32>
    %34 = arith.subf %30, %33 : vector<32x128xf32>
    %35 = math.exp %34 : vector<32x128xf32>
    %36 = arith.mulf %35, %1 : vector<32x128xf32>
    %cst_31 = arith.constant dense<0.000000e+00> : vector<32x128xf32>
    %37 = tpu.matmul %36, %4, %cst_31 {dimension_numbers = #tpu.dot_dimension_numbers<[1], [0], [0], [1], [0, 0, 1, 1], [], []>} : vector<32x128xf32>, vector<128x128xf32>, vector<32x128xf32> -> vector<32x128xf32>
    %cst_32 = arith.constant 1.000000e-30 : f32
    %38 = vector.broadcast %cst_32 : f32 to vector<32x128xf32>
    %39 = arith.maximumf %37, %38 : vector<32x128xf32>
    %40 = arith.divf %36, %39 : vector<32x128xf32>
    %41 = tpu.concatenate %13, %13, %13, %13 in 0 : vector<32x128xf32>, vector<32x128xf32>, vector<32x128xf32>, vector<32x128xf32> -> vector<128x128xf32>
    %42 = arith.mulf %41, %5 : vector<128x128xf32>
    %cst_33 = arith.constant dense<0.000000e+00> : vector<32x128xf32>
    %43 = tpu.matmul %40, %42, %cst_33 {dimension_numbers = #tpu.dot_dimension_numbers<[1], [0], [0], [1], [0, 0, 1, 1], [], []>} : vector<32x128xf32>, vector<128x128xf32>, vector<32x128xf32> -> vector<32x128xf32>
    %c0_34 = arith.constant 0 : index
    %c0_35 = arith.constant 0 : index
    %c0_36 = arith.constant 0 : index
    %44 = vector.load %arg9[%c0_34, %c0_35, %c0_36] : memref<4x1x128xf32, #tpu.memory_space<vmem>>, vector<1x1x128xf32>
    %45 = vector.shape_cast %44 : vector<1x1x128xf32> to vector<1x128xf32>
    %46 = vector.broadcast %45 : vector<1x128xf32> to vector<32x128xf32>
    %47 = arith.addf %43, %46 : vector<32x128xf32>
    %c0_37 = arith.constant 0 : index
    %c0_38 = arith.constant 0 : index
    %c0_39 = arith.constant 0 : index
    %48 = vector.load %arg10[%c0_37, %c0_38, %c0_39] : memref<4x128x32xf32, #tpu.memory_space<vmem>>, vector<1x128x32xf32>
    %49 = vector.shape_cast %48 : vector<1x128x32xf32> to vector<128x32xf32>
    %cst_40 = arith.constant dense<0.000000e+00> : vector<32x32xf32>
    %50 = tpu.matmul %47, %49, %cst_40 {dimension_numbers = #tpu.dot_dimension_numbers<[1], [0], [0], [1], [0, 0, 1, 1], [], []>} : vector<32x128xf32>, vector<128x32xf32>, vector<32x32xf32> -> vector<32x32xf32>
    %c0_41 = arith.constant 0 : index
    %c0_42 = arith.constant 0 : index
    %c0_43 = arith.constant 0 : index
    %51 = vector.load %arg11[%c0_41, %c0_42, %c0_43] : memref<4x1x32xf32, #tpu.memory_space<vmem>>, vector<1x1x32xf32>
    %52 = vector.shape_cast %51 : vector<1x1x32xf32> to vector<1x32xf32>
    %53 = vector.broadcast %52 : vector<1x32xf32> to vector<32x32xf32>
    %54 = arith.addf %50, %53 : vector<32x32xf32>
    %cst_44 = arith.constant 0.000000e+00 : f32
    %55 = vector.broadcast %cst_44 : f32 to vector<32x32xf32>
    %56 = arith.maximumf %54, %55 : vector<32x32xf32>
    %cst_45 = arith.constant dense<0.000000e+00> : vector<32xf32>
    %57 = vector.multi_reduction <add>, %56, %cst_45 [0] : vector<32x32xf32> to vector<32xf32>
    %58 = vector.shape_cast %57 : vector<32xf32> to vector<1x32xf32>
    %cst_46 = arith.constant 3.200000e+01 : f32
    %59 = vector.broadcast %cst_46 : f32 to vector<1x32xf32>
    %60 = arith.divf %58, %59 : vector<1x32xf32>
    %61 = vector.broadcast %60 : vector<1x32xf32> to vector<32x32xf32>
    %62 = arith.subf %56, %61 : vector<32x32xf32>
    %63 = arith.mulf %62, %62 : vector<32x32xf32>
    %cst_47 = arith.constant dense<0.000000e+00> : vector<32xf32>
    %64 = vector.multi_reduction <add>, %63, %cst_47 [0] : vector<32x32xf32> to vector<32xf32>
    %65 = vector.shape_cast %64 : vector<32xf32> to vector<1x32xf32>
    %cst_48 = arith.constant 3.200000e+01 : f32
    %66 = vector.broadcast %cst_48 : f32 to vector<1x32xf32>
    %67 = arith.divf %65, %66 : vector<1x32xf32>
    %68 = vector.broadcast %60 : vector<1x32xf32> to vector<32x32xf32>
    %69 = arith.subf %56, %68 : vector<32x32xf32>
    %cst_49 = arith.constant 9.99999974E-6 : f32
    %70 = vector.broadcast %cst_49 : f32 to vector<1x32xf32>
    %71 = arith.addf %67, %70 : vector<1x32xf32>
    %72 = math.rsqrt %71 : vector<1x32xf32>
    %73 = vector.broadcast %72 : vector<1x32xf32> to vector<32x32xf32>
    %74 = arith.mulf %69, %73 : vector<32x32xf32>
    %c0_50 = arith.constant 0 : index
    %c0_51 = arith.constant 0 : index
    %c0_52 = arith.constant 0 : index
    %75 = vector.load %arg12[%c0_50, %c0_51, %c0_52] : memref<4x1x32xf32, #tpu.memory_space<vmem>>, vector<1x1x32xf32>
    %76 = vector.shape_cast %75 : vector<1x1x32xf32> to vector<1x32xf32>
    %77 = vector.broadcast %76 : vector<1x32xf32> to vector<32x32xf32>
    %78 = arith.mulf %74, %77 : vector<32x32xf32>
    %c0_53 = arith.constant 0 : index
    %c0_54 = arith.constant 0 : index
    %c0_55 = arith.constant 0 : index
    %79 = vector.load %arg13[%c0_53, %c0_54, %c0_55] : memref<4x1x32xf32, #tpu.memory_space<vmem>>, vector<1x1x32xf32>
    %80 = vector.shape_cast %79 : vector<1x1x32xf32> to vector<1x32xf32>
    %81 = vector.broadcast %80 : vector<1x32xf32> to vector<32x32xf32>
    %82 = arith.addf %78, %81 : vector<32x32xf32>
    %c1 = arith.constant 1 : index
    %c0_56 = arith.constant 0 : index
    %c0_57 = arith.constant 0 : index
    %83 = vector.load %arg6[%c1, %c0_56, %c0_57] : memref<4x32x128xf32, #tpu.memory_space<vmem>>, vector<1x32x128xf32>
    %84 = vector.shape_cast %83 : vector<1x32x128xf32> to vector<32x128xf32>
    %cst_58 = arith.constant dense<0.000000e+00> : vector<32x128xf32>
    %85 = tpu.matmul %82, %84, %cst_58 {dimension_numbers = #tpu.dot_dimension_numbers<[1], [0], [0], [1], [0, 0, 1, 1], [], []>} : vector<32x32xf32>, vector<32x128xf32>, vector<32x128xf32> -> vector<32x128xf32>
    %c1_59 = arith.constant 1 : index
    %c0_60 = arith.constant 0 : index
    %c0_61 = arith.constant 0 : index
    %86 = vector.load %arg7[%c1_59, %c0_60, %c0_61] : memref<4x128x128xf32, #tpu.memory_space<vmem>>, vector<1x128x128xf32>
    %87 = vector.shape_cast %86 : vector<1x128x128xf32> to vector<128x128xf32>
    %cst_62 = arith.constant dense<0.000000e+00> : vector<32x128xf32>
    %88 = tpu.matmul %85, %87, %cst_62 {dimension_numbers = #tpu.dot_dimension_numbers<[1], [0], [0], [1], [0, 0, 1, 1], [], []>} : vector<32x128xf32>, vector<128x128xf32>, vector<32x128xf32> -> vector<32x128xf32>
    %c1_63 = arith.constant 1 : index
    %c0_64 = arith.constant 0 : index
    %c0_65 = arith.constant 0 : index
    %89 = vector.load %arg8[%c1_63, %c0_64, %c0_65] : memref<4x128x128xf32, #tpu.memory_space<vmem>>, vector<1x128x128xf32>
    %90 = vector.shape_cast %89 : vector<1x128x128xf32> to vector<128x128xf32>
    %cst_66 = arith.constant dense<0.000000e+00> : vector<32x128xf32>
    %91 = tpu.matmul %85, %90, %cst_66 {dimension_numbers = #tpu.dot_dimension_numbers<[1], [0], [0], [1], [0, 0, 1, 1], [], []>} : vector<32x128xf32>, vector<128x128xf32>, vector<32x128xf32> -> vector<32x128xf32>
    %92 = arith.mulf %91, %3 : vector<32x128xf32>
    %cst_67 = arith.constant dense<0.000000e+00> : vector<128xf32>
    %93 = vector.multi_reduction <add>, %92, %cst_67 [0] : vector<32x128xf32> to vector<128xf32>
    %94 = vector.shape_cast %93 : vector<128xf32> to vector<1x128xf32>
    %95 = vector.broadcast %94 : vector<1x128xf32> to vector<32x128xf32>
    %96 = arith.addf %88, %95 : vector<32x128xf32>
    %cst_68 = arith.constant 0.000000e+00 : f32
    %97 = vector.broadcast %cst_68 : f32 to vector<32x128xf32>
    %98 = arith.cmpf ogt, %96, %97 : vector<32x128xf32>
    %cst_69 = arith.constant 2.000000e-01 : f32
    %99 = vector.broadcast %cst_69 : f32 to vector<32x128xf32>
    %100 = arith.mulf %99, %96 : vector<32x128xf32>
    %101 = arith.select %98, %96, %100 : vector<32x128xi1>, vector<32x128xf32>
    %102 = arith.addf %101, %2 : vector<32x128xf32>
    %cst_70 = arith.constant dense<0xFF800000> : vector<32xf32>
    %103 = vector.multi_reduction <maximumf>, %102, %cst_70 [1] : vector<32x128xf32> to vector<32xf32>
    %104 = vector.shape_cast %103 : vector<32xf32> to vector<32x1xf32>
    %105 = vector.broadcast %104 : vector<32x1xf32> to vector<32x128xf32>
    %106 = arith.subf %102, %105 : vector<32x128xf32>
    %107 = math.exp %106 : vector<32x128xf32>
    %108 = arith.mulf %107, %1 : vector<32x128xf32>
    %cst_71 = arith.constant dense<0.000000e+00> : vector<32x128xf32>
    %109 = tpu.matmul %108, %4, %cst_71 {dimension_numbers = #tpu.dot_dimension_numbers<[1], [0], [0], [1], [0, 0, 1, 1], [], []>} : vector<32x128xf32>, vector<128x128xf32>, vector<32x128xf32> -> vector<32x128xf32>
    %cst_72 = arith.constant 1.000000e-30 : f32
    %110 = vector.broadcast %cst_72 : f32 to vector<32x128xf32>
    %111 = arith.maximumf %109, %110 : vector<32x128xf32>
    %112 = arith.divf %108, %111 : vector<32x128xf32>
    %113 = tpu.concatenate %85, %85, %85, %85 in 0 : vector<32x128xf32>, vector<32x128xf32>, vector<32x128xf32>, vector<32x128xf32> -> vector<128x128xf32>
    %114 = arith.mulf %113, %5 : vector<128x128xf32>
    %cst_73 = arith.constant dense<0.000000e+00> : vector<32x128xf32>
    %115 = tpu.matmul %112, %114, %cst_73 {dimension_numbers = #tpu.dot_dimension_numbers<[1], [0], [0], [1], [0, 0, 1, 1], [], []>} : vector<32x128xf32>, vector<128x128xf32>, vector<32x128xf32> -> vector<32x128xf32>
    %c1_74 = arith.constant 1 : index
    %c0_75 = arith.constant 0 : index
    %c0_76 = arith.constant 0 : index
    %116 = vector.load %arg9[%c1_74, %c0_75, %c0_76] : memref<4x1x128xf32, #tpu.memory_space<vmem>>, vector<1x1x128xf32>
    %117 = vector.shape_cast %116 : vector<1x1x128xf32> to vector<1x128xf32>
    %118 = vector.broadcast %117 : vector<1x128xf32> to vector<32x128xf32>
    %119 = arith.addf %115, %118 : vector<32x128xf32>
    %c1_77 = arith.constant 1 : index
    %c0_78 = arith.constant 0 : index
    %c0_79 = arith.constant 0 : index
    %120 = vector.load %arg10[%c1_77, %c0_78, %c0_79] : memref<4x128x32xf32, #tpu.memory_space<vmem>>, vector<1x128x32xf32>
    %121 = vector.shape_cast %120 : vector<1x128x32xf32> to vector<128x32xf32>
    %cst_80 = arith.constant dense<0.000000e+00> : vector<32x32xf32>
    %122 = tpu.matmul %119, %121, %cst_80 {dimension_numbers = #tpu.dot_dimension_numbers<[1], [0], [0], [1], [0, 0, 1, 1], [], []>} : vector<32x128xf32>, vector<128x32xf32>, vector<32x32xf32> -> vector<32x32xf32>
    %c1_81 = arith.constant 1 : index
    %c0_82 = arith.constant 0 : index
    %c0_83 = arith.constant 0 : index
    %123 = vector.load %arg11[%c1_81, %c0_82, %c0_83] : memref<4x1x32xf32, #tpu.memory_space<vmem>>, vector<1x1x32xf32>
    %124 = vector.shape_cast %123 : vector<1x1x32xf32> to vector<1x32xf32>
    %125 = vector.broadcast %124 : vector<1x32xf32> to vector<32x32xf32>
    %126 = arith.addf %122, %125 : vector<32x32xf32>
    %cst_84 = arith.constant 0.000000e+00 : f32
    %127 = vector.broadcast %cst_84 : f32 to vector<32x32xf32>
    %128 = arith.maximumf %126, %127 : vector<32x32xf32>
    %cst_85 = arith.constant dense<0.000000e+00> : vector<32xf32>
    %129 = vector.multi_reduction <add>, %128, %cst_85 [0] : vector<32x32xf32> to vector<32xf32>
    %130 = vector.shape_cast %129 : vector<32xf32> to vector<1x32xf32>
    %cst_86 = arith.constant 3.200000e+01 : f32
    %131 = vector.broadcast %cst_86 : f32 to vector<1x32xf32>
    %132 = arith.divf %130, %131 : vector<1x32xf32>
    %133 = vector.broadcast %132 : vector<1x32xf32> to vector<32x32xf32>
    %134 = arith.subf %128, %133 : vector<32x32xf32>
    %135 = arith.mulf %134, %134 : vector<32x32xf32>
    %cst_87 = arith.constant dense<0.000000e+00> : vector<32xf32>
    %136 = vector.multi_reduction <add>, %135, %cst_87 [0] : vector<32x32xf32> to vector<32xf32>
    %137 = vector.shape_cast %136 : vector<32xf32> to vector<1x32xf32>
    %cst_88 = arith.constant 3.200000e+01 : f32
    %138 = vector.broadcast %cst_88 : f32 to vector<1x32xf32>
    %139 = arith.divf %137, %138 : vector<1x32xf32>
    %140 = vector.broadcast %132 : vector<1x32xf32> to vector<32x32xf32>
    %141 = arith.subf %128, %140 : vector<32x32xf32>
    %cst_89 = arith.constant 9.99999974E-6 : f32
    %142 = vector.broadcast %cst_89 : f32 to vector<1x32xf32>
    %143 = arith.addf %139, %142 : vector<1x32xf32>
    %144 = math.rsqrt %143 : vector<1x32xf32>
    %145 = vector.broadcast %144 : vector<1x32xf32> to vector<32x32xf32>
    %146 = arith.mulf %141, %145 : vector<32x32xf32>
    %c1_90 = arith.constant 1 : index
    %c0_91 = arith.constant 0 : index
    %c0_92 = arith.constant 0 : index
    %147 = vector.load %arg12[%c1_90, %c0_91, %c0_92] : memref<4x1x32xf32, #tpu.memory_space<vmem>>, vector<1x1x32xf32>
    %148 = vector.shape_cast %147 : vector<1x1x32xf32> to vector<1x32xf32>
    %149 = vector.broadcast %148 : vector<1x32xf32> to vector<32x32xf32>
    %150 = arith.mulf %146, %149 : vector<32x32xf32>
    %c1_93 = arith.constant 1 : index
    %c0_94 = arith.constant 0 : index
    %c0_95 = arith.constant 0 : index
    %151 = vector.load %arg13[%c1_93, %c0_94, %c0_95] : memref<4x1x32xf32, #tpu.memory_space<vmem>>, vector<1x1x32xf32>
    %152 = vector.shape_cast %151 : vector<1x1x32xf32> to vector<1x32xf32>
    %153 = vector.broadcast %152 : vector<1x32xf32> to vector<32x32xf32>
    %154 = arith.addf %150, %153 : vector<32x32xf32>
    %c0_96 = arith.constant 0 : index
    %c0_97 = arith.constant 0 : index
    %155 = vector.load %arg19[%c0_96, %c0_97] : memref<32x32xf32, #tpu.memory_space<vmem>>, vector<32x32xf32>
    tpu.vector_store %arg19[%c0_96, %c0_97], %154 {strides = array<i32>} : memref<32x32xf32, #tpu.memory_space<vmem>>, vector<32x32xf32>,
    %c2 = arith.constant 2 : index
    %c0_98 = arith.constant 0 : index
    %c0_99 = arith.constant 0 : index
    %156 = vector.load %arg6[%c2, %c0_98, %c0_99] : memref<4x32x128xf32, #tpu.memory_space<vmem>>, vector<1x32x128xf32>
    %157 = vector.shape_cast %156 : vector<1x32x128xf32> to vector<32x128xf32>
    %cst_100 = arith.constant dense<0.000000e+00> : vector<32x128xf32>
    %158 = tpu.matmul %154, %157, %cst_100 {dimension_numbers = #tpu.dot_dimension_numbers<[1], [0], [0], [1], [0, 0, 1, 1], [], []>} : vector<32x32xf32>, vector<32x128xf32>, vector<32x128xf32> -> vector<32x128xf32>
    %c2_101 = arith.constant 2 : index
    %c0_102 = arith.constant 0 : index
    %c0_103 = arith.constant 0 : index
    %159 = vector.load %arg7[%c2_101, %c0_102, %c0_103] : memref<4x128x128xf32, #tpu.memory_space<vmem>>, vector<1x128x128xf32>
    %160 = vector.shape_cast %159 : vector<1x128x128xf32> to vector<128x128xf32>
    %cst_104 = arith.constant dense<0.000000e+00> : vector<32x128xf32>
    %161 = tpu.matmul %158, %160, %cst_104 {dimension_numbers = #tpu.dot_dimension_numbers<[1], [0], [0], [1], [0, 0, 1, 1], [], []>} : vector<32x128xf32>, vector<128x128xf32>, vector<32x128xf32> -> vector<32x128xf32>
    %c2_105 = arith.constant 2 : index
    %c0_106 = arith.constant 0 : index
    %c0_107 = arith.constant 0 : index
    %162 = vector.load %arg8[%c2_105, %c0_106, %c0_107] : memref<4x128x128xf32, #tpu.memory_space<vmem>>, vector<1x128x128xf32>
    %163 = vector.shape_cast %162 : vector<1x128x128xf32> to vector<128x128xf32>
    %cst_108 = arith.constant dense<0.000000e+00> : vector<32x128xf32>
    %164 = tpu.matmul %158, %163, %cst_108 {dimension_numbers = #tpu.dot_dimension_numbers<[1], [0], [0], [1], [0, 0, 1, 1], [], []>} : vector<32x128xf32>, vector<128x128xf32>, vector<32x128xf32> -> vector<32x128xf32>
    %165 = arith.mulf %164, %3 : vector<32x128xf32>
    %cst_109 = arith.constant dense<0.000000e+00> : vector<128xf32>
    %166 = vector.multi_reduction <add>, %165, %cst_109 [0] : vector<32x128xf32> to vector<128xf32>
    %167 = vector.shape_cast %166 : vector<128xf32> to vector<1x128xf32>
    %168 = vector.broadcast %167 : vector<1x128xf32> to vector<32x128xf32>
    %169 = arith.addf %161, %168 : vector<32x128xf32>
    %cst_110 = arith.constant 0.000000e+00 : f32
    %170 = vector.broadcast %cst_110 : f32 to vector<32x128xf32>
    %171 = arith.cmpf ogt, %169, %170 : vector<32x128xf32>
    %cst_111 = arith.constant 2.000000e-01 : f32
    %172 = vector.broadcast %cst_111 : f32 to vector<32x128xf32>
    %173 = arith.mulf %172, %169 : vector<32x128xf32>
    %174 = arith.select %171, %169, %173 : vector<32x128xi1>, vector<32x128xf32>
    %175 = arith.addf %174, %2 : vector<32x128xf32>
    %cst_112 = arith.constant dense<0xFF800000> : vector<32xf32>
    %176 = vector.multi_reduction <maximumf>, %175, %cst_112 [1] : vector<32x128xf32> to vector<32xf32>
    %177 = vector.shape_cast %176 : vector<32xf32> to vector<32x1xf32>
    %178 = vector.broadcast %177 : vector<32x1xf32> to vector<32x128xf32>
    %179 = arith.subf %175, %178 : vector<32x128xf32>
    %180 = math.exp %179 : vector<32x128xf32>
    %181 = arith.mulf %180, %1 : vector<32x128xf32>
    %cst_113 = arith.constant dense<0.000000e+00> : vector<32x128xf32>
    %182 = tpu.matmul %181, %4, %cst_113 {dimension_numbers = #tpu.dot_dimension_numbers<[1], [0], [0], [1], [0, 0, 1, 1], [], []>} : vector<32x128xf32>, vector<128x128xf32>, vector<32x128xf32> -> vector<32x128xf32>
    %cst_114 = arith.constant 1.000000e-30 : f32
    %183 = vector.broadcast %cst_114 : f32 to vector<32x128xf32>
    %184 = arith.maximumf %182, %183 : vector<32x128xf32>
    %185 = arith.divf %181, %184 : vector<32x128xf32>
    %186 = tpu.concatenate %158, %158, %158, %158 in 0 : vector<32x128xf32>, vector<32x128xf32>, vector<32x128xf32>, vector<32x128xf32> -> vector<128x128xf32>
    %187 = arith.mulf %186, %5 : vector<128x128xf32>
    %cst_115 = arith.constant dense<0.000000e+00> : vector<32x128xf32>
    %188 = tpu.matmul %185, %187, %cst_115 {dimension_numbers = #tpu.dot_dimension_numbers<[1], [0], [0], [1], [0, 0, 1, 1], [], []>} : vector<32x128xf32>, vector<128x128xf32>, vector<32x128xf32> -> vector<32x128xf32>
    %c2_116 = arith.constant 2 : index
    %c0_117 = arith.constant 0 : index
    %c0_118 = arith.constant 0 : index
    %189 = vector.load %arg9[%c2_116, %c0_117, %c0_118] : memref<4x1x128xf32, #tpu.memory_space<vmem>>, vector<1x1x128xf32>
    %190 = vector.shape_cast %189 : vector<1x1x128xf32> to vector<1x128xf32>
    %191 = vector.broadcast %190 : vector<1x128xf32> to vector<32x128xf32>
    %192 = arith.addf %188, %191 : vector<32x128xf32>
    %c2_119 = arith.constant 2 : index
    %c0_120 = arith.constant 0 : index
    %c0_121 = arith.constant 0 : index
    %193 = vector.load %arg10[%c2_119, %c0_120, %c0_121] : memref<4x128x32xf32, #tpu.memory_space<vmem>>, vector<1x128x32xf32>
    %194 = vector.shape_cast %193 : vector<1x128x32xf32> to vector<128x32xf32>
    %cst_122 = arith.constant dense<0.000000e+00> : vector<32x32xf32>
    %195 = tpu.matmul %192, %194, %cst_122 {dimension_numbers = #tpu.dot_dimension_numbers<[1], [0], [0], [1], [0, 0, 1, 1], [], []>} : vector<32x128xf32>, vector<128x32xf32>, vector<32x32xf32> -> vector<32x32xf32>
    %c2_123 = arith.constant 2 : index
    %c0_124 = arith.constant 0 : index
    %c0_125 = arith.constant 0 : index
    %196 = vector.load %arg11[%c2_123, %c0_124, %c0_125] : memref<4x1x32xf32, #tpu.memory_space<vmem>>, vector<1x1x32xf32>
    %197 = vector.shape_cast %196 : vector<1x1x32xf32> to vector<1x32xf32>
    %198 = vector.broadcast %197 : vector<1x32xf32> to vector<32x32xf32>
    %199 = arith.addf %195, %198 : vector<32x32xf32>
    %cst_126 = arith.constant 0.000000e+00 : f32
    %200 = vector.broadcast %cst_126 : f32 to vector<32x32xf32>
    %201 = arith.maximumf %199, %200 : vector<32x32xf32>
    %cst_127 = arith.constant dense<0.000000e+00> : vector<32xf32>
    %202 = vector.multi_reduction <add>, %201, %cst_127 [0] : vector<32x32xf32> to vector<32xf32>
    %203 = vector.shape_cast %202 : vector<32xf32> to vector<1x32xf32>
    %cst_128 = arith.constant 3.200000e+01 : f32
    %204 = vector.broadcast %cst_128 : f32 to vector<1x32xf32>
    %205 = arith.divf %203, %204 : vector<1x32xf32>
    %206 = vector.broadcast %205 : vector<1x32xf32> to vector<32x32xf32>
    %207 = arith.subf %201, %206 : vector<32x32xf32>
    %208 = arith.mulf %207, %207 : vector<32x32xf32>
    %cst_129 = arith.constant dense<0.000000e+00> : vector<32xf32>
    %209 = vector.multi_reduction <add>, %208, %cst_129 [0] : vector<32x32xf32> to vector<32xf32>
    %210 = vector.shape_cast %209 : vector<32xf32> to vector<1x32xf32>
    %cst_130 = arith.constant 3.200000e+01 : f32
    %211 = vector.broadcast %cst_130 : f32 to vector<1x32xf32>
    %212 = arith.divf %210, %211 : vector<1x32xf32>
    %213 = vector.broadcast %205 : vector<1x32xf32> to vector<32x32xf32>
    %214 = arith.subf %201, %213 : vector<32x32xf32>
    %cst_131 = arith.constant 9.99999974E-6 : f32
    %215 = vector.broadcast %cst_131 : f32 to vector<1x32xf32>
    %216 = arith.addf %212, %215 : vector<1x32xf32>
    %217 = math.rsqrt %216 : vector<1x32xf32>
    %218 = vector.broadcast %217 : vector<1x32xf32> to vector<32x32xf32>
    %219 = arith.mulf %214, %218 : vector<32x32xf32>
    %c2_132 = arith.constant 2 : index
    %c0_133 = arith.constant 0 : index
    %c0_134 = arith.constant 0 : index
    %220 = vector.load %arg12[%c2_132, %c0_133, %c0_134] : memref<4x1x32xf32, #tpu.memory_space<vmem>>, vector<1x1x32xf32>
    %221 = vector.shape_cast %220 : vector<1x1x32xf32> to vector<1x32xf32>
    %222 = vector.broadcast %221 : vector<1x32xf32> to vector<32x32xf32>
    %223 = arith.mulf %219, %222 : vector<32x32xf32>
    %c2_135 = arith.constant 2 : index
    %c0_136 = arith.constant 0 : index
    %c0_137 = arith.constant 0 : index
    %224 = vector.load %arg13[%c2_135, %c0_136, %c0_137] : memref<4x1x32xf32, #tpu.memory_space<vmem>>, vector<1x1x32xf32>
    %225 = vector.shape_cast %224 : vector<1x1x32xf32> to vector<1x32xf32>
    %226 = vector.broadcast %225 : vector<1x32xf32> to vector<32x32xf32>
    %227 = arith.addf %223, %226 : vector<32x32xf32>
    %c3 = arith.constant 3 : index
    %c0_138 = arith.constant 0 : index
    %c0_139 = arith.constant 0 : index
    %228 = vector.load %arg6[%c3, %c0_138, %c0_139] : memref<4x32x128xf32, #tpu.memory_space<vmem>>, vector<1x32x128xf32>
    %229 = vector.shape_cast %228 : vector<1x32x128xf32> to vector<32x128xf32>
    %cst_140 = arith.constant dense<0.000000e+00> : vector<32x128xf32>
    %230 = tpu.matmul %227, %229, %cst_140 {dimension_numbers = #tpu.dot_dimension_numbers<[1], [0], [0], [1], [0, 0, 1, 1], [], []>} : vector<32x32xf32>, vector<32x128xf32>, vector<32x128xf32> -> vector<32x128xf32>
    %c3_141 = arith.constant 3 : index
    %c0_142 = arith.constant 0 : index
    %c0_143 = arith.constant 0 : index
    %231 = vector.load %arg7[%c3_141, %c0_142, %c0_143] : memref<4x128x128xf32, #tpu.memory_space<vmem>>, vector<1x128x128xf32>
    %232 = vector.shape_cast %231 : vector<1x128x128xf32> to vector<128x128xf32>
    %cst_144 = arith.constant dense<0.000000e+00> : vector<32x128xf32>
    %233 = tpu.matmul %230, %232, %cst_144 {dimension_numbers = #tpu.dot_dimension_numbers<[1], [0], [0], [1], [0, 0, 1, 1], [], []>} : vector<32x128xf32>, vector<128x128xf32>, vector<32x128xf32> -> vector<32x128xf32>
    %c3_145 = arith.constant 3 : index
    %c0_146 = arith.constant 0 : index
    %c0_147 = arith.constant 0 : index
    %234 = vector.load %arg8[%c3_145, %c0_146, %c0_147] : memref<4x128x128xf32, #tpu.memory_space<vmem>>, vector<1x128x128xf32>
    %235 = vector.shape_cast %234 : vector<1x128x128xf32> to vector<128x128xf32>
    %cst_148 = arith.constant dense<0.000000e+00> : vector<32x128xf32>
    %236 = tpu.matmul %230, %235, %cst_148 {dimension_numbers = #tpu.dot_dimension_numbers<[1], [0], [0], [1], [0, 0, 1, 1], [], []>} : vector<32x128xf32>, vector<128x128xf32>, vector<32x128xf32> -> vector<32x128xf32>
    %237 = arith.mulf %236, %3 : vector<32x128xf32>
    %cst_149 = arith.constant dense<0.000000e+00> : vector<128xf32>
    %238 = vector.multi_reduction <add>, %237, %cst_149 [0] : vector<32x128xf32> to vector<128xf32>
    %239 = vector.shape_cast %238 : vector<128xf32> to vector<1x128xf32>
    %240 = vector.broadcast %239 : vector<1x128xf32> to vector<32x128xf32>
    %241 = arith.addf %233, %240 : vector<32x128xf32>
    %cst_150 = arith.constant 0.000000e+00 : f32
    %242 = vector.broadcast %cst_150 : f32 to vector<32x128xf32>
    %243 = arith.cmpf ogt, %241, %242 : vector<32x128xf32>
    %cst_151 = arith.constant 2.000000e-01 : f32
    %244 = vector.broadcast %cst_151 : f32 to vector<32x128xf32>
    %245 = arith.mulf %244, %241 : vector<32x128xf32>
    %246 = arith.select %243, %241, %245 : vector<32x128xi1>, vector<32x128xf32>
    %247 = arith.addf %246, %2 : vector<32x128xf32>
    %cst_152 = arith.constant dense<0xFF800000> : vector<32xf32>
    %248 = vector.multi_reduction <maximumf>, %247, %cst_152 [1] : vector<32x128xf32> to vector<32xf32>
    %249 = vector.shape_cast %248 : vector<32xf32> to vector<32x1xf32>
    %250 = vector.broadcast %249 : vector<32x1xf32> to vector<32x128xf32>
    %251 = arith.subf %247, %250 : vector<32x128xf32>
    %252 = math.exp %251 : vector<32x128xf32>
    %253 = arith.mulf %252, %1 : vector<32x128xf32>
    %cst_153 = arith.constant dense<0.000000e+00> : vector<32x128xf32>
    %254 = tpu.matmul %253, %4, %cst_153 {dimension_numbers = #tpu.dot_dimension_numbers<[1], [0], [0], [1], [0, 0, 1, 1], [], []>} : vector<32x128xf32>, vector<128x128xf32>, vector<32x128xf32> -> vector<32x128xf32>
    %cst_154 = arith.constant 1.000000e-30 : f32
    %255 = vector.broadcast %cst_154 : f32 to vector<32x128xf32>
    %256 = arith.maximumf %254, %255 : vector<32x128xf32>
    %257 = arith.divf %253, %256 : vector<32x128xf32>
    %258 = tpu.concatenate %230, %230, %230, %230 in 0 : vector<32x128xf32>, vector<32x128xf32>, vector<32x128xf32>, vector<32x128xf32> -> vector<128x128xf32>
    %259 = arith.mulf %258, %5 : vector<128x128xf32>
    %cst_155 = arith.constant dense<0.000000e+00> : vector<32x128xf32>
    %260 = tpu.matmul %257, %259, %cst_155 {dimension_numbers = #tpu.dot_dimension_numbers<[1], [0], [0], [1], [0, 0, 1, 1], [], []>} : vector<32x128xf32>, vector<128x128xf32>, vector<32x128xf32> -> vector<32x128xf32>
    %c3_156 = arith.constant 3 : index
    %c0_157 = arith.constant 0 : index
    %c0_158 = arith.constant 0 : index
    %261 = vector.load %arg9[%c3_156, %c0_157, %c0_158] : memref<4x1x128xf32, #tpu.memory_space<vmem>>, vector<1x1x128xf32>
    %262 = vector.shape_cast %261 : vector<1x1x128xf32> to vector<1x128xf32>
    %263 = vector.broadcast %262 : vector<1x128xf32> to vector<32x128xf32>
    %264 = arith.addf %260, %263 : vector<32x128xf32>
    %c3_159 = arith.constant 3 : index
    %c0_160 = arith.constant 0 : index
    %c0_161 = arith.constant 0 : index
    %265 = vector.load %arg10[%c3_159, %c0_160, %c0_161] : memref<4x128x32xf32, #tpu.memory_space<vmem>>, vector<1x128x32xf32>
    %266 = vector.shape_cast %265 : vector<1x128x32xf32> to vector<128x32xf32>
    %cst_162 = arith.constant dense<0.000000e+00> : vector<32x32xf32>
    %267 = tpu.matmul %264, %266, %cst_162 {dimension_numbers = #tpu.dot_dimension_numbers<[1], [0], [0], [1], [0, 0, 1, 1], [], []>} : vector<32x128xf32>, vector<128x32xf32>, vector<32x32xf32> -> vector<32x32xf32>
    %c3_163 = arith.constant 3 : index
    %c0_164 = arith.constant 0 : index
    %c0_165 = arith.constant 0 : index
    %268 = vector.load %arg11[%c3_163, %c0_164, %c0_165] : memref<4x1x32xf32, #tpu.memory_space<vmem>>, vector<1x1x32xf32>
    %269 = vector.shape_cast %268 : vector<1x1x32xf32> to vector<1x32xf32>
    %270 = vector.broadcast %269 : vector<1x32xf32> to vector<32x32xf32>
    %271 = arith.addf %267, %270 : vector<32x32xf32>
    %cst_166 = arith.constant 0.000000e+00 : f32
    %272 = vector.broadcast %cst_166 : f32 to vector<32x32xf32>
    %273 = arith.maximumf %271, %272 : vector<32x32xf32>
    %cst_167 = arith.constant dense<0.000000e+00> : vector<32xf32>
    %274 = vector.multi_reduction <add>, %273, %cst_167 [0] : vector<32x32xf32> to vector<32xf32>
    %275 = vector.shape_cast %274 : vector<32xf32> to vector<1x32xf32>
    %cst_168 = arith.constant 3.200000e+01 : f32
    %276 = vector.broadcast %cst_168 : f32 to vector<1x32xf32>
    %277 = arith.divf %275, %276 : vector<1x32xf32>
    %278 = vector.broadcast %277 : vector<1x32xf32> to vector<32x32xf32>
    %279 = arith.subf %273, %278 : vector<32x32xf32>
    %280 = arith.mulf %279, %279 : vector<32x32xf32>
    %cst_169 = arith.constant dense<0.000000e+00> : vector<32xf32>
    %281 = vector.multi_reduction <add>, %280, %cst_169 [0] : vector<32x32xf32> to vector<32xf32>
    %282 = vector.shape_cast %281 : vector<32xf32> to vector<1x32xf32>
    %cst_170 = arith.constant 3.200000e+01 : f32
    %283 = vector.broadcast %cst_170 : f32 to vector<1x32xf32>
    %284 = arith.divf %282, %283 : vector<1x32xf32>
    %285 = vector.broadcast %277 : vector<1x32xf32> to vector<32x32xf32>
    %286 = arith.subf %273, %285 : vector<32x32xf32>
    %cst_171 = arith.constant 9.99999974E-6 : f32
    %287 = vector.broadcast %cst_171 : f32 to vector<1x32xf32>
    %288 = arith.addf %284, %287 : vector<1x32xf32>
    %289 = math.rsqrt %288 : vector<1x32xf32>
    %290 = vector.broadcast %289 : vector<1x32xf32> to vector<32x32xf32>
    %291 = arith.mulf %286, %290 : vector<32x32xf32>
    %c3_172 = arith.constant 3 : index
    %c0_173 = arith.constant 0 : index
    %c0_174 = arith.constant 0 : index
    %292 = vector.load %arg12[%c3_172, %c0_173, %c0_174] : memref<4x1x32xf32, #tpu.memory_space<vmem>>, vector<1x1x32xf32>
    %293 = vector.shape_cast %292 : vector<1x1x32xf32> to vector<1x32xf32>
    %294 = vector.broadcast %293 : vector<1x32xf32> to vector<32x32xf32>
    %295 = arith.mulf %291, %294 : vector<32x32xf32>
    %c3_175 = arith.constant 3 : index
    %c0_176 = arith.constant 0 : index
    %c0_177 = arith.constant 0 : index
    %296 = vector.load %arg13[%c3_175, %c0_176, %c0_177] : memref<4x1x32xf32, #tpu.memory_space<vmem>>, vector<1x1x32xf32>
    %297 = vector.shape_cast %296 : vector<1x1x32xf32> to vector<1x32xf32>
    %298 = vector.broadcast %297 : vector<1x32xf32> to vector<32x32xf32>
    %299 = arith.addf %295, %298 : vector<32x32xf32>
    %c0_178 = arith.constant 0 : index
    %c0_179 = arith.constant 0 : index
    %300 = vector.load %arg14[%c0_178, %c0_179] : memref<32x16xf32, #tpu.memory_space<vmem>>, vector<32x16xf32>
    %cst_180 = arith.constant dense<0.000000e+00> : vector<32x16xf32>
    %301 = tpu.matmul %299, %300, %cst_180 {dimension_numbers = #tpu.dot_dimension_numbers<[1], [0], [0], [1], [0, 0, 1, 1], [], []>} : vector<32x32xf32>, vector<32x16xf32>, vector<32x16xf32> -> vector<32x16xf32>
    %c0_181 = arith.constant 0 : index
    %c0_182 = arith.constant 0 : index
    %302 = vector.load %arg15[%c0_181, %c0_182] : memref<1x16xf32, #tpu.memory_space<vmem>>, vector<1x16xf32>
    %303 = vector.broadcast %302 : vector<1x16xf32> to vector<32x16xf32>
    %304 = arith.addf %301, %303 : vector<32x16xf32>
    %305 = arith.subf %304, %0 : vector<32x16xf32>
    %306 = arith.mulf %305, %305 : vector<32x16xf32>
    %cst_183 = arith.constant dense<0.000000e+00> : vector<32xf32>
    %307 = vector.multi_reduction <add>, %306, %cst_183 [1] : vector<32x16xf32> to vector<32xf32>
    %308 = vector.shape_cast %307 : vector<32xf32> to vector<32x1xf32>
    %cst_184 = arith.constant dense<0.000000e+00> : vector<1xf32>
    %309 = vector.multi_reduction <add>, %308, %cst_184 [0] : vector<32x1xf32> to vector<1xf32>
    %310 = vector.shape_cast %309 : vector<1xf32> to vector<1x1xf32>
    %cst_185 = arith.constant 0.001953125 : f32
    %311 = vector.broadcast %cst_185 : f32 to vector<1x1xf32>
    %312 = arith.mulf %310, %311 : vector<1x1xf32>
    %c0_186 = arith.constant 0 : index
    %c0_187 = arith.constant 0 : index
    %313 = vector.load %arg20[%c0_186, %c0_187] : memref<1x1xf32, #tpu.memory_space<vmem>>, vector<1x1xf32>
    tpu.vector_store %arg20[%c0_186, %c0_187], %312 {strides = array<i32>} : memref<1x1xf32, #tpu.memory_space<vmem>>, vector<1x1xf32>,
    return
  }
  func.func @transform_0(%arg0: i32) -> (i32, i32) {
    %c0_i32 = arith.constant 0 : i32
    %c0_i32_0 = arith.constant 0 : i32
    %c0_i32_1 = arith.constant 0 : i32
    return %c0_i32, %c0_i32_0 : i32, i32
  }
  func.func @transform_1(%arg0: i32) -> (i32, i32) {
    %c0_i32 = arith.constant 0 : i32
    %c0_i32_0 = arith.constant 0 : i32
    %c0_i32_1 = arith.constant 0 : i32
    return %c0_i32, %c0_i32_0 : i32, i32
  }
  func.func @transform_2(%arg0: i32) -> (i32, i32) {
    %c0_i32 = arith.constant 0 : i32
    %c0_i32_0 = arith.constant 0 : i32
    %c0_i32_1 = arith.constant 0 : i32
    return %c0_i32, %c0_i32_0 : i32, i32
  }
  func.func @transform_3(%arg0: i32) -> (i32, i32) {
    %c0_i32 = arith.constant 0 : i32
    %c0_i32_0 = arith.constant 0 : i32
    %c0_i32_1 = arith.constant 0 : i32
    return %c0_i32, %c0_i32_0 : i32, i32
  }
  func.func @transform_4(%arg0: i32) -> (i32, i32) {
    %c0_i32 = arith.constant 0 : i32
    %c0_i32_0 = arith.constant 0 : i32
    %c0_i32_1 = arith.constant 0 : i32
    return %c0_i32, %c0_i32_0 : i32, i32
  }
  func.func @transform_5(%arg0: i32) -> (i32, i32, i32) {
    %c0_i32 = arith.constant 0 : i32
    %c0_i32_0 = arith.constant 0 : i32
    %c0_i32_1 = arith.constant 0 : i32
    %c0_i32_2 = arith.constant 0 : i32
    return %c0_i32, %c0_i32_0, %c0_i32_1 : i32, i32, i32
  }
  func.func @transform_6(%arg0: i32) -> (i32, i32, i32) {
    %c0_i32 = arith.constant 0 : i32
    %c0_i32_0 = arith.constant 0 : i32
    %c0_i32_1 = arith.constant 0 : i32
    %c0_i32_2 = arith.constant 0 : i32
    return %c0_i32, %c0_i32_0, %c0_i32_1 : i32, i32, i32
  }
  func.func @transform_7(%arg0: i32) -> (i32, i32, i32) {
    %c0_i32 = arith.constant 0 : i32
    %c0_i32_0 = arith.constant 0 : i32
    %c0_i32_1 = arith.constant 0 : i32
    %c0_i32_2 = arith.constant 0 : i32
    return %c0_i32, %c0_i32_0, %c0_i32_1 : i32, i32, i32
  }
  func.func @transform_8(%arg0: i32) -> (i32, i32, i32) {
    %c0_i32 = arith.constant 0 : i32
    %c0_i32_0 = arith.constant 0 : i32
    %c0_i32_1 = arith.constant 0 : i32
    %c0_i32_2 = arith.constant 0 : i32
    return %c0_i32, %c0_i32_0, %c0_i32_1 : i32, i32, i32
  }
  func.func @transform_9(%arg0: i32) -> (i32, i32, i32) {
    %c0_i32 = arith.constant 0 : i32
    %c0_i32_0 = arith.constant 0 : i32
    %c0_i32_1 = arith.constant 0 : i32
    %c0_i32_2 = arith.constant 0 : i32
    return %c0_i32, %c0_i32_0, %c0_i32_1 : i32, i32, i32
  }
  func.func @transform_10(%arg0: i32) -> (i32, i32, i32) {
    %c0_i32 = arith.constant 0 : i32
    %c0_i32_0 = arith.constant 0 : i32
    %c0_i32_1 = arith.constant 0 : i32
    %c0_i32_2 = arith.constant 0 : i32
    return %c0_i32, %c0_i32_0, %c0_i32_1 : i32, i32, i32
  }
  func.func @transform_11(%arg0: i32) -> (i32, i32, i32) {
    %c0_i32 = arith.constant 0 : i32
    %c0_i32_0 = arith.constant 0 : i32
    %c0_i32_1 = arith.constant 0 : i32
    %c0_i32_2 = arith.constant 0 : i32
    return %c0_i32, %c0_i32_0, %c0_i32_1 : i32, i32, i32
  }
  func.func @transform_12(%arg0: i32) -> (i32, i32, i32) {
    %c0_i32 = arith.constant 0 : i32
    %c0_i32_0 = arith.constant 0 : i32
    %c0_i32_1 = arith.constant 0 : i32
    %c0_i32_2 = arith.constant 0 : i32
    return %c0_i32, %c0_i32_0, %c0_i32_1 : i32, i32, i32
  }
  func.func @transform_13(%arg0: i32) -> (i32, i32) {
    %c0_i32 = arith.constant 0 : i32
    %c0_i32_0 = arith.constant 0 : i32
    %c0_i32_1 = arith.constant 0 : i32
    return %c0_i32, %c0_i32_0 : i32, i32
  }
  func.func @transform_14(%arg0: i32) -> (i32, i32) {
    %c0_i32 = arith.constant 0 : i32
    %c0_i32_0 = arith.constant 0 : i32
    %c0_i32_1 = arith.constant 0 : i32
    return %c0_i32, %c0_i32_0 : i32, i32
  }
  func.func @transform_15(%arg0: i32) -> (i32, i32) {
    %c0_i32 = arith.constant 0 : i32
    %c0_i32_0 = arith.constant 0 : i32
    %c0_i32_1 = arith.constant 0 : i32
    return %c0_i32, %c0_i32_0 : i32, i32
  }
  func.func @transform_16(%arg0: i32) -> (i32, i32) {
    %c0_i32 = arith.constant 0 : i32
    %c0_i32_0 = arith.constant 0 : i32
    %c0_i32_1 = arith.constant 0 : i32
    return %c0_i32, %c0_i32_0 : i32, i32
  }
  func.func @transform_17(%arg0: i32) -> (i32, i32) {
    %c0_i32 = arith.constant 0 : i32
    %c0_i32_0 = arith.constant 0 : i32
    %c0_i32_1 = arith.constant 0 : i32
    return %c0_i32, %c0_i32_0 : i32, i32
  }
  func.func @transform_18(%arg0: i32) -> (i32, i32) {
    %c0_i32 = arith.constant 0 : i32
    %c0_i32_0 = arith.constant 0 : i32
    %c0_i32_1 = arith.constant 0 : i32
    return %c0_i32, %c0_i32_0 : i32, i32
  }
  func.func @transform_19(%arg0: i32) -> (i32, i32) {
    %c0_i32 = arith.constant 0 : i32
    %c0_i32_0 = arith.constant 0 : i32
    %c0_i32_1 = arith.constant 0 : i32
    return %c0_i32, %c0_i32_0 : i32, i32
  }
}

</mosaic_0001>

<bundles_post_ra>
// kernel: tile.9
= control target key start
LH: loop header
LB: loop body
LE: loop exit
PB: predicated region body
PF: predicated region fallthrough
CT: control target
= control target key end

     0   :  { %vm132_vm0 = vcmask 1047556   ;;  %s338_s15 = smov 96   ;;  %s339_s30 = smov 64   ;;  %vm134_vm1 = vcmask 261120   ;;  %vm171_vm2 = vcmask 1048320   ;;  %vm214_vm3 = vcmask 785920   ;;  %s535_s0 = inlined_call_operand.vmem [shape: f32[32,4,32], index: 0, kind: input, shape index: {}]   ;;  %s536_s1 = inlined_call_operand.vmem [shape: f32[32,128], index: 1, kind: output, shape index: {}]  }
   0x1   :  { %v316_v0 = vld [vmem:[%s535_s0 + $0x1c] sm:$0xf]  ;;  %v317_v1 = vld [vmem:[%s535_s0 + $0x18] sm:$0xf]  ;;  %v318_v2 = vld [vmem:[%s535_s0 + $0x14] sm:$0xf] }
   0x2   :  { %103 = vst [vmem:[#allocation0 + $0x38] sm:$0xf] %v316_v0  ;;  %v319_v3 = vld [vmem:[%s535_s0 + $0x10] sm:$0xf]  ;;  %v320_v4 = vld [vmem:[%s535_s0 + $0xc] sm:$0xf] }
   0x3   :  { %107 = vst [vmem:[#allocation0 + $0x30] sm:$0xf] %v317_v1  ;;  %v321_v5 = vld [vmem:[%s535_s0 + $0x8] sm:$0xf]  ;;  %v322_v6 = vld [vmem:[%s535_s0 + $0x4] sm:$0xf] }
   0x4   :  { %111 = vst [vmem:[#allocation0 + $0x28] sm:$0xf] %v318_v2  ;;  %v128_v7 = vld [vmem:[%s535_s0] sm:$0xf]  ;;  %v300_v8 = vld [vmem:[%s535_s0 + $0x5c] sm:$0xf] }
   0x5   :  { %115 = vst [vmem:[#allocation0 + $0x20] sm:$0xf] %v319_v3  ;;  %v301_v9 = vld [vmem:[%s535_s0 + $0x58] sm:$0xf]  ;;  %v302_v10 = vld [vmem:[%s535_s0 + $0x54] sm:$0xf] }
   0x6   :  { %119 = vst [vmem:[#allocation0 + $0x18] sm:$0xf] %v320_v4  ;;  %v303_v11 = vld [vmem:[%s535_s0 + $0x50] sm:$0xf]  ;;  %v304_v12 = vld [vmem:[%s535_s0 + $0x4c] sm:$0xf] }
   0x7   :  { %123 = vst [vmem:[#allocation0 + $0x10] sm:$0xf] %v321_v5  ;;  %v305_v13 = vld [vmem:[%s535_s0 + $0x48] sm:$0xf]  ;;  %v306_v14 = vld [vmem:[%s535_s0 + $0x44] sm:$0xf] }
   0x8   :  { %127 = vst [vmem:[#allocation0 + $0x8] sm:$0xf] %v322_v6  ;;  %v307_v15 = vld [vmem:[%s535_s0 + $0x40] sm:$0xf]  ;;  %v308_v17 = vld [vmem:[%s535_s0 + $0x3c] sm:$0xf] }
   0x9   :  { %129 = vst [vmem:[#allocation0] sm:$0xf] %v128_v7  ;;  %v309_v18 = vld [vmem:[%s535_s0 + $0x38] sm:$0xf]  ;;  %v310_v21 = vld [vmem:[%s535_s0 + $0x34] sm:$0xf] }
   0xa   :  { %39 = vst [vmem:[#allocation0 + $0xb8] sm:$0xf] %v300_v8  ;;  %v311_v22 = vld [vmem:[%s535_s0 + $0x30] sm:$0xf]  ;;  %v312_v23 = vld [vmem:[%s535_s0 + $0x2c] sm:$0xf] }
   0xb   :  { %43 = vst [vmem:[#allocation0 + $0xb0] sm:$0xf] %v301_v9  ;;  %v313_v24 = vld [vmem:[%s535_s0 + $0x28] sm:$0xf]  ;;  %v314_v25 = vld [vmem:[%s535_s0 + $0x24] sm:$0xf] }
   0xc   :  { %47 = vst [vmem:[#allocation0 + $0xa8] sm:$0xf] %v302_v10  ;;  %v166_v16 = vld [vmem:[#allocation0 + $0x3] ss:$8 sm:$0xf0]   ;;  %vm257_vm4 = vcmask 523520  }
   0xd   :  { %51 = vst [vmem:[#allocation0 + $0xa0] sm:$0xf] %v303_v11  ;;  %v315_v26 = vld [vmem:[%s535_s0 + $0x20] sm:$0xf]  ;;  %v292_v30 = vld [vmem:[%s535_s0 + $0x7c] sm:$0xf] }
   0xe   :  { %55 = vst [vmem:[#allocation0 + $0x98] sm:$0xf] %v304_v12  ;;  %v209_v29 = vld [vmem:[#allocation0 + $0x2] ss:$8 sm:$0xf0]  }
   0xf   :  { %59 = vst [vmem:[#allocation0 + $0x90] sm:$0xf] %v305_v13  ;;  %v293_v31 = vld [vmem:[%s535_s0 + $0x78] sm:$0xf]  ;;  %v294_v35 = vld [vmem:[%s535_s0 + $0x74] sm:$0xf] }
  0x10   :  { %v164_v19 = vld [vmem:[#allocation0 + $0x3] ss:$8 sm:$0xf]   ;;  %63 = vst [vmem:[#allocation0 + $0x88] sm:$0xf] %v306_v14 }
  0x11   :  { %v168_v20 = vsel %vm132_vm0, %v166_v16, %v164_v19  ;;  %67 = vst [vmem:[#allocation0 + $0x80] sm:$0xf] %v307_v15  ;;  %v207_v27 = vld [vmem:[#allocation0 + $0x2] ss:$8 sm:$0xf]  }
  0x12   :  { %169 = vrot.lane.b32.xlu0 %v168_v20, %s338_s15  ;;  %71 = vst [vmem:[#allocation0 + $0x78] sm:$0xf] %v308_v17  ;;  %v211_v32 = vsel %vm132_vm0, %v209_v29, %v207_v27  ;;  %v295_v36 = vld [vmem:[%s535_s0 + $0x70] sm:$0xf]  ;;  %v296_v37 = vld [vmem:[%s535_s0 + $0x6c] sm:$0xf] }
  0x13   :  { %75 = vst [vmem:[#allocation0 + $0x70] sm:$0xf] %v309_v18  ;;  %212 = vrot.lane.b32.xlu2 %v211_v32, %s339_s30  ;;  %v297_v38 = vld [vmem:[%s535_s0 + $0x68] sm:$0xf]  ;;  %v298_v39 = vld [vmem:[%s535_s0 + $0x64] sm:$0xf] }
  0x14   :  { %79 = vst [vmem:[#allocation0 + $0x68] sm:$0xf] %v310_v21  ;;  %v187_v28 = vld [vmem:[#allocation0 + $0x83] ss:$8 sm:$0xf0]  }
  0x15   :  { %83 = vst [vmem:[#allocation0 + $0x60] sm:$0xf] %v311_v22  ;;  %v299_v40 = vld [vmem:[%s535_s0 + $0x60] sm:$0xf]  ;;  %s340_s0 = smov 32  }
  0x16   :  { %87 = vst [vmem:[#allocation0 + $0x58] sm:$0xf] %v312_v23  ;;  %v230_v48 = vld [vmem:[#allocation0 + $0x82] ss:$8 sm:$0xf0]  }
  0x17   :  { %91 = vst [vmem:[#allocation0 + $0x50] sm:$0xf] %v313_v24  ;;  %v250_v49 = vld [vmem:[#allocation0 + $0x1] ss:$8 sm:$0xf]  }
  0x18   :  { %v185_v33 = vld [vmem:[#allocation0 + $0x83] ss:$8 sm:$0xf]   ;;  %95 = vst [vmem:[#allocation0 + $0x48] sm:$0xf] %v314_v25 }
  0x19   :  { %v189_v34 = vsel %vm132_vm0, %v187_v28, %v185_v33  ;;  %99 = vst [vmem:[#allocation0 + $0x40] sm:$0xf] %v315_v26  ;;  %v228_v47 = vld [vmem:[#allocation0 + $0x82] ss:$8 sm:$0xf]  }
  0x1a   :  { %190 = vrot.lane.b32.xlu1 %v189_v34, %s338_s15  ;;  %7 = vst [vmem:[#allocation0 + $0xf8] sm:$0xf] %v292_v30  ;;  %v252_v51 = vld [vmem:[#allocation0 + $0x1] ss:$8 sm:$0xf0]   ;;  %v232_v52 = vsel %vm132_vm0, %v230_v48, %v228_v47 }
  0x1b   :  { %11 = vst [vmem:[#allocation0 + $0xf0] sm:$0xf] %v293_v31  ;;  %v254_v55 = vsel %vm132_vm0, %v252_v51, %v250_v49  ;;  %v271_v1 = vld [vmem:[#allocation0 + $0x81] ss:$8 sm:$0xf]  }
  0x1c   :  { %15 = vst [vmem:[#allocation0 + $0xe8] sm:$0xf] %v294_v35  ;;  %v176_v41 = vld [vmem:[#allocation0 + $0x43] ss:$8 sm:$0xf0]  }
  0x1d   :  { %19 = vst [vmem:[#allocation0 + $0xe0] sm:$0xf] %v295_v36  ;;  %v219_v42 = vld [vmem:[#allocation0 + $0x42] ss:$8 sm:$0xf0]  }
  0x1e   :  { %23 = vst [vmem:[#allocation0 + $0xd8] sm:$0xf] %v296_v37  ;;  %v262_v57 = vld [vmem:[#allocation0 + $0x41] ss:$8 sm:$0xf0]  }
  0x1f   :  { %27 = vst [vmem:[#allocation0 + $0xd0] sm:$0xf] %v297_v38  ;;  %v273_v2 = vld [vmem:[#allocation0 + $0x81] ss:$8 sm:$0xf0]  }
  0x20   :  { %v174_v43 = vld [vmem:[#allocation0 + $0x43] ss:$8 sm:$0xf]   ;;  %31 = vst [vmem:[#allocation0 + $0xc8] sm:$0xf] %v298_v39  ;;  %v275_v3 = vsel %vm132_vm0, %v273_v2, %v271_v1 }
  0x21   :  { %v178_v44 = vsel %vm132_vm0, %v176_v41, %v174_v43  ;;  %35 = vst [vmem:[#allocation0 + $0xc0] sm:$0xf] %v299_v40  ;;  %v217_v45 = vld [vmem:[#allocation0 + $0x42] ss:$8 sm:$0xf]  }
  0x22   :  { %179 = vrot.lane.b32.xlu0 %v178_v44, %s338_s15  ;;  %v221_v46 = vsel %vm132_vm0, %v219_v42, %v217_v45  ;;  %v260_v56 = vld [vmem:[#allocation0 + $0x41] ss:$8 sm:$0xf]   ;;  %v130_v4 = vld [vmem:[#allocation0] ss:$8 sm:$0xf]  }
  0x23   :  { %222 = vrot.lane.b32.xlu2 %v221_v46, %s339_s30  ;;  %v264_v63 = vsel %vm132_vm0, %v262_v57, %v260_v56  ;;  %v131_v5 = vld [vmem:[#allocation0] ss:$8 sm:$0xf0]  }
  0x24   :  { %v198_v50 = vld [vmem:[#allocation0 + $0xc3] ss:$8 sm:$0xf0]   ;;  %v241_v59 = vld [vmem:[#allocation0 + $0xc2] ss:$8 sm:$0xf0]   ;;  %v133_v6 = vsel %vm132_vm0, %v131_v5, %v130_v4 }
  0x25   :  { %v284_v61 = vld [vmem:[#allocation0 + $0xc1] ss:$8 sm:$0xf0]   ;;  %135 = vst.msk [vmem:[%s536_s1] sm:$0xff] %vm134_vm1, %v133_v6  }
  0x26   :  { %v146_v7 = vld [vmem:[#allocation0 + $0x80] ss:$8 sm:$0xf]  }
  0x27   :  { %v148_v8 = vld [vmem:[#allocation0 + $0x80] ss:$8 sm:$0xf0]  }
  0x28   :  { %v196_v53 = vld [vmem:[#allocation0 + $0xc3] ss:$8 sm:$0xf]   ;;  %v239_v58 = vld [vmem:[#allocation0 + $0xc2] ss:$8 sm:$0xf]   ;;  %v150_v9 = vsel %vm132_vm0, %v148_v8, %v146_v7 }
  0x29   :  { %v200_v54 = vsel %vm132_vm0, %v198_v50, %v196_v53  ;;  %v282_v60 = vld [vmem:[#allocation0 + $0xc1] ss:$8 sm:$0xf]   ;;  %v243_v62 = vsel %vm132_vm0, %v241_v59, %v239_v58  ;;  %324 = vst.msk [vmem:[%s536_s1 + $0x10] sm:$0xff] %vm134_vm1, %v150_v9  }
  0x2a   :  { %201 = vrot.lane.b32.xlu1 %v200_v54, %s338_s15  ;;  %233 = vrot.lane.b32.xlu0 %v232_v52, %s339_s30  ;;  %v286_v0 = vsel %vm132_vm0, %v284_v61, %v282_v60  ;;  %v137_v11 = vld [vmem:[#allocation0 + $0x40] ss:$8 sm:$0xf]  }
  0x2b   :  { %255 = vrot.lane.b32.xlu2 %v254_v55, %s340_s0  ;;  %v139_v12 = vld [vmem:[#allocation0 + $0x40] ss:$8 sm:$0xf0]  }
  0x2c   :  { %v141_v13 = vsel %vm132_vm0, %v139_v12, %v137_v11  ;;  %v155_v14 = vld [vmem:[#allocation0 + $0xc0] ss:$8 sm:$0xf]  }
  0x2d   :  { %323 = vst.msk [vmem:[%s536_s1 + $0x8] sm:$0xff] %vm134_vm1, %v141_v13   ;;  %v157_v15 = vld [vmem:[#allocation0 + $0xc0] ss:$8 sm:$0xf0]  }
  0x2e   :  { %v159_v16 = vsel %vm132_vm0, %v157_v15, %v155_v14 }
  0x2f   :  { %325 = vst.msk [vmem:[%s536_s1 + $0x18] sm:$0xff] %vm134_vm1, %v159_v16  }
  0x32   :  { %244 = vrot.lane.b32.xlu1 %v243_v62, %s339_s30  ;;  %265 = vrot.lane.b32.xlu0 %v264_v63, %s340_s0 }
  0x33   :  { %287 = vrot.lane.b32.xlu2 %v286_v0, %s340_s0 }
  0x3a   :  { %276 = vrot.lane.b32.xlu1 %v275_v3, %s340_s0 }
  0x6d   :  { %v213_v10 = vpop.permute.xlu2 %212  }
  0x7d   :  { %v223_v17 = vpop.permute.xlu2 %222  }
  0x84   :  { %v170_v18 = vpop.permute.xlu0 %169  }
  0x85   :  { %172 = vst.msk [vmem:[%s536_s1] sm:$0xff] %vm171_vm2, %v170_v18   ;;  %v256_v19 = vpop.permute.xlu2 %255  }
  0x86   :  { %215 = vst.msk [vmem:[%s536_s1] sm:$0xff] %vm214_vm3, %v213_v10  }
  0x87   :  { %258 = vst.msk [vmem:[%s536_s1] sm:$0xff] %vm257_vm4, %v256_v19  }
  0x8c   :  { %v191_v20 = vpop.permute.xlu1 %190  }
  0x8d   :  { %327 = vst.msk [vmem:[%s536_s1 + $0x10] sm:$0xff] %vm171_vm2, %v191_v20   ;;  %v288_v21 = vpop.permute.xlu2 %287  }
  0x94   :  { %v180_v22 = vpop.permute.xlu0 %179  }
  0x95   :  { %326 = vst.msk [vmem:[%s536_s1 + $0x8] sm:$0xff] %vm171_vm2, %v180_v22  }
  0x96   :  { %329 = vst.msk [vmem:[%s536_s1 + $0x8] sm:$0xff] %vm214_vm3, %v223_v17  }
  0x9c   :  { %v202_v23 = vpop.permute.xlu1 %201   ;;  %v234_v24 = vpop.permute.xlu0 %233  }
  0x9d   :  { %328 = vst.msk [vmem:[%s536_s1 + $0x18] sm:$0xff] %vm171_vm2, %v202_v23  }
  0x9e   :  { %330 = vst.msk [vmem:[%s536_s1 + $0x10] sm:$0xff] %vm214_vm3, %v234_v24  }
  0xa4   :  { %v245_v25 = vpop.permute.xlu1 %244   ;;  %v266_v26 = vpop.permute.xlu0 %265  }
  0xa5   :  { %331 = vst.msk [vmem:[%s536_s1 + $0x18] sm:$0xff] %vm214_vm3, %v245_v25  }
  0xa6   :  { %332 = vst.msk [vmem:[%s536_s1 + $0x8] sm:$0xff] %vm257_vm4, %v266_v26  }
  0xa7   :  { %334 = vst.msk [vmem:[%s536_s1 + $0x18] sm:$0xff] %vm257_vm4, %v288_v21  }
  0xac   :  { %v277_v27 = vpop.permute.xlu1 %276  }
  0xad   :  { %333 = vst.msk [vmem:[%s536_s1 + $0x10] sm:$0xff] %vm257_vm4, %v277_v27  }

// kernel: recnet1_forward.1
= control target key start
LH: loop header
LB: loop body
LE: loop exit
PB: predicated region body
PF: predicated region fallthrough
CT: control target
= control target key end

     0   :  { %s3932_s0 = inlined_call_operand.vmem [shape: f32[32,16], index: 0, kind: input, shape index: {}]   ;;  %s3933_s1 = inlined_call_operand.vmem [shape: f32[32,128], index: 1, kind: input, shape index: {}]   ;;  %s3934_s2 = inlined_call_operand.vmem [shape: f32[32,128], index: 2, kind: input, shape index: {}]   ;;  %s3935_s3 = inlined_call_operand.vmem [shape: f32[16,32], index: 3, kind: input, shape index: {}]   ;;  %s3936_s4 = inlined_call_operand.vmem [shape: f32[1,32], index: 4, kind: input, shape index: {}]   ;;  %s3937_s5 = inlined_call_operand.vmem [shape: f32[4,32,128], index: 5, kind: input, shape index: {}]   ;;  %s3938_s6 = inlined_call_operand.vmem [shape: f32[4,128,128], index: 6, kind: input, shape index: {}]   ;;  %s3939_s7 = inlined_call_operand.hbm [shape: f32[4,128,128], index: 7, kind: input, shape index: {}]   ;;  %s3940_s8 = inlined_call_operand.vmem [shape: f32[4,1,128], index: 8, kind: input, shape index: {}]   ;;  %s3941_s9 = inlined_call_operand.vmem [shape: f32[4,128,32], index: 9, kind: input, shape index: {}]   ;;  %s3942_s10 = inlined_call_operand.vmem [shape: f32[4,1,32], index: 10, kind: input, shape index: {}]   ;;  %s3943_s11 = inlined_call_operand.vmem [shape: f32[4,1,32], index: 11, kind: input, shape index: {}]   ;;  %s3944_s12 = inlined_call_operand.vmem [shape: f32[4,1,32], index: 12, kind: input, shape index: {}]   ;;  %s3945_s13 = inlined_call_operand.vmem [shape: f32[32,16], index: 13, kind: input, shape index: {}]   ;;  %s3946_s14 = inlined_call_operand.vmem [shape: f32[1,16], index: 14, kind: input, shape index: {}]   ;;  %s3947_s15 = inlined_call_operand.vmem [shape: f32[32,128], index: 15, kind: input, shape index: {}]   ;;  %s3948_s16 = inlined_call_operand.vmem [shape: f32[128,128], index: 16, kind: input, shape index: {}]   ;;  %s3949_s17 = inlined_call_operand.vmem [shape: f32[128,128], index: 17, kind: input, shape index: {}]   ;;  %s3950_s18 = inlined_call_operand.hbm [shape: f32[32,32], index: 18, kind: output, shape index: {0}]   ;;  %s3951_s19 = inlined_call_operand.hbm [shape: f32[1,1], index: 19, kind: output, shape index: {1}]  }
   0x1   :  { %3961 = sst [smem:[#allocation14_spill]] %s3932_s0 }
   0x2   :  { %3962 = sst [smem:[#allocation15_spill]] %s3933_s1 }
   0x3   :  { %3963 = sst [smem:[#allocation16_spill]] %s3934_s2 }
   0x4   :  { %3964 = sst [smem:[#allocation17_spill]] %s3935_s3 }
   0x5   :  { %25 = vsyncpa [#allocation3], 0 }
   0x6   :  { %26 = vsyncpa [#allocation4], 0 }
   0x7   :  { %27 = vsyncpa [#allocation7], 0  ;;  %s46_s20 = sshll.u32 %s3939_s7, 4  ;;  %s2495_s21 = smov [#allocation2]   ;;  %s47_s20 = int_to_ptr.hbm [resolvable:$true] %s46_s20 }
   0x8   :  { %s48_s1 = sshll.u32 %s2495_s21, 4  ;;  %s2496_s22 = smov 128   ;;  %s49_s1 = int_to_ptr.vmem [resolvable:$true] %s48_s1 }
   0x9   :  { %s2497_s2 = smov 8  }
   0xa   :  { %54 = dma.hbm_to_vmem [thread:$0]  %s47_s20, 8192, %s49_s1, [#allocation3], %s2496_s22, %s2496_s22, %s2497_s2  }
   0xb   :  { %2489 = dma.done.wait [#allocation3], 8192  }
   0xc   :  { %2490 = vsyncadd [#allocation3], 4294959104  ;;  %s3965_s25 = sld [smem:[#allocation17_spill]]  ;;  %vm133_vm0 = vcmask 130048   ;;  %v178_v3 = vld [vmem:[%s3937_s5 + $0x18] sm:$0xff]  ;;  %v177_v4 = vld [vmem:[%s3937_s5 + $0x10] sm:$0xff] }
   0xd   :  { %s3966_s28 = sld [smem:[#allocation14_spill]]  ;;  %204 = vmatpush.msra.mxu1 %v178_v3  ;;  %v176_v8 = vld [vmem:[%s3937_s5 + $0x8] sm:$0xff]  ;;  %v175_v9 = vld [vmem:[%s3937_s5] sm:$0xff]  ;;  %v252_v10 = vld [vmem:[#allocation2 + $0x78] sm:$0xff]  ;;  %vm179_vm1 = vcmask 261120   ;;  %s2499_s0 = smov [#allocation5]  }
   0xe   :  { %v236_v11 = vld [vmem:[%s3938_s6 + $0x78] sm:$0xff]  ;;  %v251_v12 = vld [vmem:[#allocation2 + $0x70] sm:$0xff]  ;;  %253 = vmatpush.msra.mxu2 %v252_v10  ;;  %v2650_v14 = vld [vmem:[%s3936_s4] ss:$0 sm:$0xff]  ;;  %s3967_s27 = sld [smem:[#allocation16_spill]]  ;;  %s2112_s20 = sshll.u32 %s3951_s19, 4  ;;  %s2113_s20 = int_to_ptr.hbm [resolvable:$true] %s2112_s20 }
   0xf   :  { %205 = vmatpush.msra.mxu1 %v177_v4  ;;  %295 = vmatpush.msra.mxu3 %v236_v11  ;;  %v235_v13 = vld [vmem:[%s3938_s6 + $0x70] sm:$0xff]  ;;  %v250_v15 = vld [vmem:[#allocation2 + $0x68] sm:$0xff]  ;;  %v249_v17 = vld [vmem:[#allocation2 + $0x60] sm:$0xff]  ;;  %s3968_s24 = sld [smem:[#allocation15_spill]] }
  0x10   :  { %v234_v16 = vld [vmem:[%s3938_s6 + $0x68] sm:$0xff]  ;;  %254 = vmatpush.msra.mxu2 %v251_v12  ;;  %v233_v18 = vld [vmem:[%s3938_s6 + $0x60] sm:$0xff]  ;;  %v248_v21 = vld [vmem:[#allocation2 + $0x58] sm:$0xff] }
  0x11   :  { %206 = vmatpush.msra.mxu1 %v176_v8  ;;  %296 = vmatpush.msra.mxu3 %v235_v13  ;;  %v232_v22 = vld [vmem:[%s3938_s6 + $0x58] sm:$0xff]  ;;  %v247_v23 = vld [vmem:[#allocation2 + $0x50] sm:$0xff]  ;;  %v246_v25 = vld [vmem:[#allocation2 + $0x48] sm:$0xff] }
  0x12   :  { %v128_v0 = vld [vmem:[%s3965_s25 + $0x8] sm:$0xff]  ;;  %v127_v1 = vld [vmem:[%s3965_s25] sm:$0xff]  ;;  %255 = vmatpush.msra.mxu2 %v250_v15  ;;  %v231_v24 = vld [vmem:[%s3938_s6 + $0x50] sm:$0xff] }
  0x13   :  { %160 = vmatpush.msra.mxu0 %v128_v0  ;;  %v79_v2 = vld [vmem:[%s3966_s28] sm:$0xff]  ;;  %v80_v5 = vld [vmem:[%s3966_s28 + $0x8] sm:$0xff]  ;;  %v81_v6 = vld [vmem:[%s3966_s28 + $0x10] sm:$0xff]  ;;  %207 = vmatpush.msra.mxu1 %v175_v9 }
  0x14   :  { %v82_v7 = vld [vmem:[%s3966_s28 + $0x18] sm:$0xff]  ;;  %297 = vmatpush.msra.mxu3 %v234_v16  ;;  %256 = vmatpush.msra.mxu2 %v249_v17  ;;  %v230_v26 = vld [vmem:[%s3938_s6 + $0x48] sm:$0xff]  ;;  %v245_v27 = vld [vmem:[#allocation2 + $0x40] sm:$0xff] }
  0x15   :  { %161 = vmatpush.msra.mxu0 %v127_v1  ;;  %v229_v28 = vld [vmem:[%s3938_s6 + $0x40] sm:$0xff]  ;;  %v244_v31 = vld [vmem:[#allocation2 + $0x38] sm:$0xff]  ;;  %v243_v33 = vld [vmem:[#allocation2 + $0x30] sm:$0xff] }
  0x16   :  { %2127 = vmatmul.msk.f32.vlgmr.msra.gmra.mxu0 %vm133_vm0, %v79_v2  ;;  %298 = vmatpush.msra.mxu3 %v233_v18  ;;  %v228_v32 = vld [vmem:[%s3938_s6 + $0x38] sm:$0xff]  ;;  %v227_v34 = vld [vmem:[%s3938_s6 + $0x30] sm:$0xff]  ;;  %v242_v35 = vld [vmem:[#allocation2 + $0x28] sm:$0xff] }
  0x17   :  { %257 = vmatpush.msra.mxu2 %v248_v21  ;;  %v226_v36 = vld [vmem:[%s3938_s6 + $0x28] sm:$0xff]  ;;  %v241_v37 = vld [vmem:[#allocation2 + $0x20] sm:$0xff]  ;;  %v240_v41 = vld [vmem:[#allocation2 + $0x18] sm:$0xff] }
  0x18   :  { %299 = vmatpush.msra.mxu3 %v232_v22  ;;  %v225_v38 = vld [vmem:[%s3938_s6 + $0x20] sm:$0xff]  ;;  %v224_v42 = vld [vmem:[%s3938_s6 + $0x18] sm:$0xff]  ;;  %v239_v43 = vld [vmem:[#allocation2 + $0x10] sm:$0xff] }
  0x19   :  { %258 = vmatpush.msra.mxu2 %v247_v23  ;;  %v223_v44 = vld [vmem:[%s3938_s6 + $0x10] sm:$0xff]  ;;  %v238_v45 = vld [vmem:[#allocation2 + $0x8] sm:$0xff]  ;;  %v237_v49 = vld [vmem:[#allocation2] sm:$0xff] }
  0x1a   :  { %300 = vmatpush.msra.mxu3 %v231_v24  ;;  %v222_v46 = vld [vmem:[%s3938_s6 + $0x8] sm:$0xff]  ;;  %v221_v50 = vld [vmem:[%s3938_s6] sm:$0xff]  ;;  %v2705_v54 = vld [vmem:[%s3949_s17 + $0x78] sm:$0xff] }
  0x1b   :  { %259 = vmatpush.msra.mxu2 %v246_v25  ;;  %v2710_v56 = vld [vmem:[%s3949_s17 + $0x70] sm:$0xff]  ;;  %v2716_v58 = vld [vmem:[%s3949_s17 + $0x68] sm:$0xff]  ;;  %v2722_v60 = vld [vmem:[%s3949_s17 + $0x60] sm:$0xff] }
  0x1c   :  { %301 = vmatpush.msra.mxu3 %v230_v26  ;;  %v2728_v62 = vld [vmem:[%s3949_s17 + $0x58] sm:$0xff]  ;;  %v2734_v0 = vld [vmem:[%s3949_s17 + $0x50] sm:$0xff]  ;;  %v2740_v2 = vld [vmem:[%s3949_s17 + $0x48] sm:$0xff] }
  0x1d   :  { %260 = vmatpush.msra.mxu2 %v245_v27  ;;  %v2746_v4 = vld [vmem:[%s3949_s17 + $0x40] sm:$0xff]  ;;  %v2758_v8 = vld [vmem:[%s3949_s17 + $0x30] sm:$0xff]  ;;  %v2764_v10 = vld [vmem:[%s3949_s17 + $0x28] sm:$0xff] }
  0x1e   :  { %2128 = vmatmul.msk.f32.gmra.mxu0 %vm133_vm0, %v80_v5  ;;  %302 = vmatpush.msra.mxu3 %v229_v28  ;;  %v2770_v12 = vld [vmem:[%s3949_s17 + $0x20] sm:$0xff]  ;;  %v2782_v16 = vld [vmem:[%s3949_s17 + $0x10] sm:$0xff]  ;;  %v2788_v18 = vld [vmem:[%s3949_s17 + $0x8] sm:$0xff] }
  0x1f   :  { %261 = vmatpush.msra.mxu2 %v244_v31  ;;  %v2801_v26 = vld [vmem:[%s3947_s15 + $0x8] sm:$0xff]  ;;  %v2806_v28 = vld [vmem:[%s3947_s15] sm:$0xff] }
  0x20   :  { %303 = vmatpush.msra.mxu3 %v228_v32 }
  0x21   :  { %262 = vmatpush.msra.mxu2 %v243_v33 }
  0x22   :  { %304 = vmatpush.msra.mxu3 %v227_v34  ;;  %v2819_v34 = vld [vmem:[%s3947_s15 + $0x18] sm:$0xff] }
  0x23   :  { %263 = vmatpush.msra.mxu2 %v242_v35 }
  0x24   :  { %305 = vmatpush.msra.mxu3 %v226_v36 }
  0x25   :  { %264 = vmatpush.msra.mxu2 %v241_v37 }
  0x26   :  { %2129 = vmatmul.msk.f32.gmra.mxu0 %vm133_vm0, %v81_v6  ;;  %306 = vmatpush.msra.mxu3 %v225_v38  ;;  %v2752_v6 = vld [vmem:[%s3949_s17 + $0x38] sm:$0xff] }
  0x27   :  { %265 = vmatpush.msra.mxu2 %v240_v41 }
  0x28   :  { %307 = vmatpush.msra.mxu3 %v224_v42  ;;  %v2836_v42 = vld [vmem:[%s3948_s16 + $0x68] sm:$0xff] }
  0x29   :  { %266 = vmatpush.msra.mxu2 %v239_v43 }
  0x2a   :  { %308 = vmatpush.msra.mxu3 %v223_v44  ;;  %v2842_v44 = vld [vmem:[%s3948_s16 + $0x60] sm:$0xff] }
  0x2b   :  { %267 = vmatpush.msra.mxu2 %v238_v45 }
  0x2c   :  { %309 = vmatpush.msra.mxu3 %v222_v46  ;;  %v2848_v46 = vld [vmem:[%s3948_s16 + $0x58] sm:$0xff] }
  0x2d   :  { %268 = vmatpush.msra.mxu2 %v237_v49  ;;  %v2854_v49 = vld [vmem:[%s3948_s16 + $0x50] sm:$0xff] }
  0x2e   :  { %2130 = vmatmul.msk.f32.gmra.mxu0 %vm133_vm0, %v82_v7  ;;  %310 = vmatpush.msra.mxu3 %v221_v50 }
  0x93   :  { %v163_v19 = vpop.f32.mrf.mxu0 }
  0x94   :  { %v164_v20 = vadd.f32 %v2650_v14, %v163_v19 }
  0x96   :  { %2131 = vmatmul.msk.f32.vlgmr.msra.gmra.mxu1 %vm179_vm1, %v164_v20  ;;  %v2794_v20 = vld [vmem:[%s3949_s17] sm:$0xff] }
  0x9b   :  { %v166_v29 = vpop.f32.mrf.mxu0 }
  0x9c   :  { %v167_v30 = vadd.f32 %v2650_v14, %v166_v29  ;;  %v2811_v29 = vld [vmem:[%s3947_s15 + $0x10] sm:$0xff] }
  0x9e   :  { %2132 = vmatmul.msk.f32.gmra.mxu1 %vm179_vm1, %v167_v30 }
  0xa3   :  { %v169_v39 = vpop.f32.mrf.mxu0 }
  0xa4   :  { %v170_v40 = vadd.f32 %v2650_v14, %v169_v39  ;;  %v2825_v39 = vld [vmem:[%s3948_s16 + $0x78] sm:$0xff] }
  0xa5   :  { %364 = vmatpush.msrb.mxu0 %v2825_v39 }
  0xa6   :  { %2133 = vmatmul.msk.f32.gmra.mxu1 %vm179_vm1, %v170_v40  ;;  %v2830_v40 = vld [vmem:[%s3948_s16 + $0x70] sm:$0xff] }
  0xa7   :  { %365 = vmatpush.msrb.mxu0 %v2830_v40 }
  0xa9   :  { %366 = vmatpush.msrb.mxu0 %v2836_v42 }
  0xab   :  { %v172_v47 = vpop.f32.mrf.mxu0  ;;  %367 = vmatpush.msrb.mxu0 %v2842_v44 }
  0xac   :  { %v173_v48 = vadd.f32 %v2650_v14, %v172_v47  ;;  %v2776_v14 = vld [vmem:[%s3949_s17 + $0x18] sm:$0xff] }
  0xad   :  { %368 = vmatpush.msrb.mxu0 %v2848_v46 }
  0xae   :  { %2134 = vmatmul.msk.f32.gmra.mxu1 %vm179_vm1, %v173_v48 }
  0xaf   :  { %369 = vmatpush.msrb.mxu0 %v2854_v49 }
 0x113   :  { %v209_v51 = vpop.f32.mrf.mxu1 }
 0x114   :  { %269 = vmatmul.f32.vlgmr.msra.gmra.mxu2 %v209_v51  ;;  %311 = vmatmul.f32.vlgmr.msra.gmra.mxu3 %v209_v51  ;;  %v469_v63 = vmul.f32 %v209_v51, %v2722_v60  ;;  %v465_v7 = vmul.f32 %v209_v51, %v2746_v4  ;;  %v461_v15 = vmul.f32 %v209_v51, %v2770_v12 }
 0x115   :  { %v457_v22 = vmul.f32 %v209_v51, %v2794_v20  ;;  %v2860_v51 = vld [vmem:[%s3948_s16 + $0x48] sm:$0xff] }
 0x116   :  { %370 = vmatpush.msrb.mxu0 %v2860_v51 }
 0x11b   :  { %v212_v52 = vpop.f32.mrf.mxu1 }
 0x11c   :  { %272 = vmatmul.f32.gmra.mxu2 %v212_v52  ;;  %314 = vmatmul.f32.gmra.mxu3 %v212_v52  ;;  %v470_v61 = vmul.f32 %v212_v52, %v2716_v58  ;;  %v466_v5 = vmul.f32 %v212_v52, %v2740_v2  ;;  %v462_v13 = vmul.f32 %v212_v52, %v2764_v10 }
 0x11d   :  { %v458_v21 = vmul.f32 %v212_v52, %v2788_v18 }
 0x123   :  { %v215_v53 = vpop.f32.mrf.mxu1 }
 0x124   :  { %275 = vmatmul.f32.gmra.mxu2 %v215_v53  ;;  %317 = vmatmul.f32.gmra.mxu3 %v215_v53  ;;  %v471_v59 = vmul.f32 %v215_v53, %v2710_v56  ;;  %v467_v3 = vmul.f32 %v215_v53, %v2734_v0  ;;  %v463_v11 = vmul.f32 %v215_v53, %v2758_v8 }
 0x125   :  { %v459_v19 = vmul.f32 %v215_v53, %v2782_v16  ;;  %v2866_v53 = vld [vmem:[%s3948_s16 + $0x40] sm:$0xff] }
 0x126   :  { %371 = vmatpush.msrb.mxu0 %v2866_v53 }
 0x12b   :  { %v218_v55 = vpop.f32.mrf.mxu1 }
 0x12c   :  { %278 = vmatmul.f32.gmra.mxu2 %v218_v55  ;;  %320 = vmatmul.f32.gmra.mxu3 %v218_v55  ;;  %v472_v57 = vmul.f32 %v218_v55, %v2705_v54  ;;  %v468_v1 = vmul.f32 %v218_v55, %v2728_v62  ;;  %v464_v9 = vmul.f32 %v218_v55, %v2752_v6 }
 0x12d   :  { %v460_v17 = vmul.f32 %v218_v55, %v2776_v14 }
 0x12e   :  { %477 = vmatpush.msrb.mxu1 %v472_v57  ;;  %v2872_v57 = vld [vmem:[%s3948_s16 + $0x38] sm:$0xff] }
 0x12f   :  { %372 = vmatpush.msrb.mxu0 %v2872_v57 }
 0x130   :  { %478 = vmatpush.msrb.mxu1 %v471_v59 }
 0x132   :  { %479 = vmatpush.msrb.mxu1 %v470_v61 }
 0x134   :  { %480 = vmatpush.msrb.mxu1 %v469_v63  ;;  %v2878_v63 = vld [vmem:[%s3948_s16 + $0x30] sm:$0xff] }
 0x135   :  { %373 = vmatpush.msrb.mxu0 %v2878_v63 }
 0x136   :  { %481 = vmatpush.msrb.mxu1 %v468_v1 }
 0x138   :  { %482 = vmatpush.msrb.mxu1 %v467_v3 }
 0x13a   :  { %483 = vmatpush.msrb.mxu1 %v466_v5  ;;  %v2884_v5 = vld [vmem:[%s3967_s27 + $0x10] sm:$0xff] }
 0x13c   :  { %484 = vmatpush.msrb.mxu1 %v465_v7 }
 0x13e   :  { %485 = vmatpush.msrb.mxu1 %v464_v9  ;;  %v2889_v9 = vld [vmem:[%s3967_s27] sm:$0xff] }
 0x140   :  { %486 = vmatpush.msrb.mxu1 %v463_v11 }
 0x142   :  { %487 = vmatpush.msrb.mxu1 %v462_v13 }
 0x144   :  { %488 = vmatpush.msrb.mxu1 %v461_v15 }
 0x146   :  { %489 = vmatpush.msrb.mxu1 %v460_v17 }
 0x148   :  { %490 = vmatpush.msrb.mxu1 %v459_v19 }
 0x14a   :  { %491 = vmatpush.msrb.mxu1 %v458_v21 }
 0x14c   :  { %492 = vmatpush.msrb.mxu1 %v457_v22 }
 0x197   :  { %v270_v23 = vpop.f32.mrf.mxu2  ;;  %v312_v25 = vpop.f32.mrf.mxu3 }
 0x198   :  { %v282_v31 = vmul.f32 %v270_v23, %v2806_v28 }
 0x19f   :  { %v273_v24 = vpop.f32.mrf.mxu2  ;;  %v315_v33 = vpop.f32.mrf.mxu3 }
 0x1a0   :  { %v283_v30 = vmul.f32 %v273_v24, %v2801_v26  ;;  %v2897_v24 = vld [vmem:[%s3967_s27 + $0x18] sm:$0xff] }
 0x1a2   :  { %v286_v35 = vadd.f32 %v283_v30, %v282_v31 }
 0x1a7   :  { %v276_v27 = vpop.f32.mrf.mxu2  ;;  %v318_v47 = vpop.f32.mrf.mxu3 }
 0x1a8   :  { %v284_v32 = vmul.f32 %v276_v27, %v2811_v29  ;;  %v2902_v27 = vld [vmem:[%s3967_s27 + $0x8] sm:$0xff] }
 0x1aa   :  { %v287_v37 = vadd.f32 %v286_v35, %v284_v32  ;;  %v2915_v35 = vld [vmem:[%s3948_s16 + $0x20] sm:$0xff] }
 0x1af   :  { %v279_v36 = vpop.f32.mrf.mxu2  ;;  %v321_v1 = vpop.f32.mrf.mxu3 }
 0x1b0   :  { %v285_v38 = vmul.f32 %v279_v36, %v2819_v34  ;;  %v2921_v36 = vld [vmem:[%s3948_s16 + $0x18] sm:$0xff] }
 0x1b2   :  { %v288_v41 = vadd.f32 %v287_v37, %v285_v38  ;;  %v2926_v37 = vld [vmem:[%s3948_s16 + $0x10] sm:$0xff]  ;;  %v2933_v38 = vld [vmem:[%s3948_s16 + $0x8] sm:$0xff] }
 0x1b4   :  { %v289_v43 = vrot.slane %v288_v41, 4 }
 0x1b6   :  { %v290_v45 = vadd.f32 %v289_v43, %v288_v41  ;;  %v2939_v41 = vld [vmem:[%s3948_s16] sm:$0xff] }
 0x1b8   :  { %v291_v48 = vrot.slane %v290_v45, 2 }
 0x1ba   :  { %v292_v50 = vadd.f32 %v291_v48, %v290_v45 }
 0x1bc   :  { %v293_v52 = vrot.slane %v292_v50, 1 }
 0x1be   :  { %v294_v55 = vadd.f32 %v293_v52, %v292_v50 }
 0x1c0   :  { %v319_v59 = vadd.f32 %v318_v47, %v294_v55  ;;  %v313_v61 = vadd.f32 %v312_v25, %v294_v55  ;;  %v322_v3 = vadd.f32 %v321_v1, %v294_v55  ;;  %v316_v13 = vadd.f32 %v315_v33, %v294_v55  ;;  %v2909_v33 = vld [vmem:[%s3948_s16 + $0x28] sm:$0xff]  ;;  %v2945_v55 = vld [vmem:[%s3968_s24] sm:$0xff] }
 0x1c1   :  { %374 = vmatpush.msrb.mxu0 %v2909_v33 }
 0x1c2   :  { %vm326_vm2 = vcmp.gt.f32.partialorder %v319_v59, 0.0  ;;  %v330_v7 = vmul.f32 0.2, %v319_v59  ;;  %vm324_vm3 = vcmp.gt.f32.partialorder %v313_v61, 0.0  ;;  %v328_v11 = vmul.f32 0.2, %v313_v61 }
 0x1c3   :  { %v331_v21 = vmul.f32 0.2, %v322_v3  ;;  %vm327_vm4 = vcmp.gt.f32.partialorder %v322_v3, 0.0  ;;  %v329_v23 = vmul.f32 0.2, %v316_v13  ;;  %vm325_vm5 = vcmp.gt.f32.partialorder %v316_v13, 0.0  ;;  %375 = vmatpush.msrb.mxu0 %v2915_v35 }
 0x1c4   :  { %v334_v15 = vsel %vm326_vm2, %v319_v59, %v330_v7  ;;  %v332_v19 = vsel %vm324_vm3, %v313_v61, %v328_v11 }
 0x1c5   :  { %v338_v17 = vadd.f32 %v334_v15, %v2884_v5  ;;  %v336_v22 = vadd.f32 %v332_v19, %v2889_v9  ;;  %v335_v25 = vsel %vm327_vm4, %v322_v3, %v331_v21  ;;  %v333_v30 = vsel %vm325_vm5, %v316_v13, %v329_v23  ;;  %376 = vmatpush.msrb.mxu0 %v2921_v36  ;;  %v2951_v13 = vld [vmem:[%s3968_s24 + $0x8] sm:$0xff]  ;;  %v2960_v23 = vld [vmem:[%s3968_s24 + $0x10] sm:$0xff] }
 0x1c6   :  { %v339_v31 = vadd.f32 %v335_v25, %v2897_v24  ;;  %v337_v32 = vadd.f32 %v333_v30, %v2902_v27  ;;  %3969 = vst [vmem:[#allocation11_spill] sm:$0xff] %v2960_v23 }
 0x1c7   :  { %344 = vmax.xlane.f32.xlu1 %v338_v17  ;;  %340 = vmax.xlane.f32.xlu0 %v336_v22 }
 0x1c8   :  { %377 = vmatpush.msrb.mxu0 %v2926_v37 }
 0x1ca   :  { %378 = vmatpush.msrb.mxu0 %v2933_v38 }
 0x1cc   :  { %379 = vmatpush.msrb.mxu0 %v2939_v41 }
 0x1cf   :  { %346 = vmax.xlane.f32.xlu1 %v339_v31  ;;  %342 = vmax.xlane.f32.xlu0 %v337_v32 }
 0x23a   :  { %v341_v43 = vpop.xlane.xlu0 %340  ;;  %v345_v48 = vpop.xlane.xlu1 %344 }
 0x23b   :  { %v348_v45 = vsub.f32 %v336_v22, %v341_v43  ;;  %v350_v61 = vsub.f32 %v338_v17, %v345_v48 }
 0x23d   :  { %v352_v47 = vmul.f32 1.442695, %v348_v45  ;;  %v356_v7 = vmul.f32 1.442695, %v350_v61 }
 0x23f   :  { %2295 = vpow2.f32 %v352_v47 }
 0x242   :  { %v343_v50 = vpop.xlane.xlu0 %342  ;;  %v347_v11 = vpop.xlane.xlu1 %346 }
 0x243   :  { %v349_v52 = vsub.f32 %v337_v32, %v343_v50  ;;  %v351_v19 = vsub.f32 %v339_v31, %v347_v11  ;;  %v2969_v31 = vld [vmem:[%s3968_s24 + $0x18] sm:$0xff] }
 0x244   :  { %3970 = vst [vmem:[#allocation12_spill] sm:$0xff] %v2969_v31  ;;  %v521_v11 = vld [vmem:[%s3941_s9 + $0x78] sm:$0xff] }
 0x245   :  { %v2296_v59 = vpop.eup %2295  ;;  %v354_v1 = vmul.f32 1.442695, %v349_v52  ;;  %v358_v17 = vmul.f32 1.442695, %v351_v19  ;;  %526 = vmatpush.msrb.mxu2 %v521_v11 }
 0x246   :  { %v360_v3 = vmul.f32 %v2296_v59, %v2945_v55 }
 0x247   :  { %2297 = vpow2.f32 %v354_v1 }
 0x248   :  { %380 = vmatmul.f32.vlgmr.msrb.gmra.mxu0 %v360_v3  ;;  %2299 = vpow2.f32 %v356_v7 }
 0x249   :  { %2301 = vpow2.f32 %v358_v17 }
 0x24d   :  { %v2298_v15 = vpop.eup %2297 }
 0x24e   :  { %v2954_v21 = vmul.f32 %v2298_v15, %v2951_v13  ;;  %v2300_v22 = vpop.eup %2299  ;;  %v520_v15 = vld [vmem:[%s3941_s9 + $0x70] sm:$0xff] }
 0x24f   :  { %v2963_v25 = vmul.f32 %v2300_v22, %v2960_v23  ;;  %v2302_v30 = vpop.eup %2301  ;;  %v519_v22 = vld [vmem:[%s3941_s9 + $0x68] sm:$0xff]  ;;  %527 = vmatpush.msrb.mxu2 %v520_v15  ;;  %v517_v23 = vld [vmem:[%s3941_s9 + $0x58] sm:$0xff] }
 0x250   :  { %383 = vmatmul.f32.gmra.mxu0 %v2954_v21  ;;  %v2972_v32 = vmul.f32 %v2302_v30, %v2969_v31  ;;  %v518_v31 = vld [vmem:[%s3941_s9 + $0x60] sm:$0xff] }
 0x251   :  { %528 = vmatpush.msrb.mxu2 %v519_v22 }
 0x253   :  { %529 = vmatpush.msrb.mxu2 %v518_v31 }
 0x255   :  { %530 = vmatpush.msrb.mxu2 %v517_v23 }
 0x258   :  { %386 = vmatmul.f32.gmra.mxu0 %v2963_v25 }
 0x260   :  { %389 = vmatmul.f32.gmra.mxu0 %v2972_v32 }
 0x2c5   :  { %v381_v43 = vpop.f32.mrf.mxu0 }
 0x2c6   :  { %v393_v45 = vmax.f32 %v381_v43, 1e-30 }
 0x2c8   :  { %2303 = vrcp.f32 %v393_v45  ;;  %v408_v61 = vand.u32 2147483648, %v393_v45  ;;  %v406_v7 = vand.u32 2147483647, %v393_v45  ;;  %vm402_vm7 = vweird.f32 %v393_v45 }
 0x2ca   :  { %vm407_vm9 = vcmp.eq.f32.partialorder %v406_v7, 8.507059e+37  ;;  %v516_v7 = vld [vmem:[%s3941_s9 + $0x50] sm:$0xff] }
 0x2cb   :  { %531 = vmatpush.msrb.mxu2 %v516_v7 }
 0x2cd   :  { %v384_v47 = vpop.f32.mrf.mxu0 }
 0x2ce   :  { %v2304_v48 = vpop.eup %2303  ;;  %v394_v50 = vmax.f32 %v384_v47, 1e-30  ;;  %v409_v47 = vor.u32 1.1754944e-38, %v408_v61 }
 0x2cf   :  { %v398_v52 = vmul.f32 %v2304_v48, %v393_v45  ;;  %vm403_vm6 = vweird.f32 %v2304_v48 }
 0x2d0   :  { %2305 = vrcp.f32 %v394_v50  ;;  %vm404_vm8 = vmor %vm402_vm7, %vm403_vm6  ;;  %vm417_vm11 = vweird.f32 %v394_v50 }
 0x2d1   :  { %v399_v59 = vsub.f32 1.0, %v398_v52 }
 0x2d3   :  { %v400_v1 = vmul.f32 %v2304_v48, %v399_v59 }
 0x2d5   :  { %v387_v19 = vpop.f32.mrf.mxu0  ;;  %v401_v17 = vadd.f32 %v2304_v48, %v400_v1 }
 0x2d6   :  { %v2306_v30 = vpop.eup %2305  ;;  %v395_v43 = vmax.f32 %v387_v19, 1e-30  ;;  %v423_v19 = vand.u32 2147483648, %v394_v50 }
 0x2d7   :  { %v413_v52 = vmul.f32 %v2306_v30, %v394_v50  ;;  %v405_v59 = vsel %vm404_vm8, %v2304_v48, %v401_v17  ;;  %vm418_vm10 = vweird.f32 %v2306_v30  ;;  %v421_v48 = vand.u32 2147483647, %v394_v50 }
 0x2d8   :  { %2307 = vrcp.f32 %v395_v43  ;;  %v410_v11 = vsel %vm407_vm9, %v409_v47, %v405_v59  ;;  %vm419_vm12 = vmor %vm417_vm11, %vm418_vm10  ;;  %v424_v31 = vor.u32 1.1754944e-38, %v423_v19  ;;  %vm432_vm15 = vweird.f32 %v395_v43 }
 0x2d9   :  { %v411_v45 = vmul.f32 %v410_v11, %v360_v3  ;;  %v414_v1 = vsub.f32 1.0, %v413_v52  ;;  %v515_v3 = vld [vmem:[%s3941_s9 + $0x48] sm:$0xff]  ;;  %vm422_vm13 = vcmp.eq.f32.partialorder %v421_v48, 8.507059e+37  ;;  %v514_v11 = vld [vmem:[%s3941_s9 + $0x40] sm:$0xff]  ;;  %v512_v48 = vld [vmem:[%s3941_s9 + $0x30] sm:$0xff] }
 0x2da   :  { %532 = vmatpush.msrb.mxu2 %v515_v3 }
 0x2db   :  { %493 = vmatmul.f32.vlgmr.msrb.gmra.mxu1 %v411_v45  ;;  %v415_v61 = vmul.f32 %v2306_v30, %v414_v1  ;;  %v513_v1 = vld [vmem:[%s3941_s9 + $0x38] sm:$0xff] }
 0x2dc   :  { %533 = vmatpush.msrb.mxu2 %v514_v11 }
 0x2dd   :  { %v390_v15 = vpop.f32.mrf.mxu0  ;;  %v416_v17 = vadd.f32 %v2306_v30, %v415_v61  ;;  %v438_v61 = vand.u32 2147483648, %v395_v43 }
 0x2de   :  { %v2308_v22 = vpop.eup %2307  ;;  %v396_v47 = vmax.f32 %v390_v15, 1e-30  ;;  %534 = vmatpush.msrb.mxu2 %v513_v1  ;;  %v508_v1 = vld [vmem:[%s3941_s9 + $0x10] sm:$0xff] }
 0x2df   :  { %v428_v52 = vmul.f32 %v2308_v22, %v395_v43  ;;  %v420_v59 = vsel %vm419_vm12, %v2306_v30, %v416_v17  ;;  %vm433_vm14 = vweird.f32 %v2308_v22  ;;  %v436_v30 = vand.u32 2147483647, %v395_v43 }
 0x2e0   :  { %2309 = vrcp.f32 %v396_v47  ;;  %v425_v23 = vsel %vm422_vm13, %v424_v31, %v420_v59  ;;  %vm434_vm2 = vmor %vm432_vm15, %vm433_vm14  ;;  %v439_v17 = vor.u32 1.1754944e-38, %v438_v61  ;;  %535 = vmatpush.msrb.mxu2 %v512_v48  ;;  %vm447_vm5 = vweird.f32 %v396_v47 }
 0x2e1   :  { %v426_v50 = vmul.f32 %v425_v23, %v2954_v21  ;;  %v429_v45 = vsub.f32 1.0, %v428_v52  ;;  %v511_v21 = vld [vmem:[%s3941_s9 + $0x28] sm:$0xff]  ;;  %vm437_vm3 = vcmp.eq.f32.partialorder %v436_v30, 8.507059e+37  ;;  %v510_v52 = vld [vmem:[%s3941_s9 + $0x20] sm:$0xff]  ;;  %v509_v23 = vld [vmem:[%s3941_s9 + $0x18] sm:$0xff] }
 0x2e2   :  { %536 = vmatpush.msrb.mxu2 %v511_v21  ;;  %v506_v21 = vld [vmem:[%s3941_s9] sm:$0xff] }
 0x2e3   :  { %496 = vmatmul.f32.gmra.mxu1 %v426_v50  ;;  %v430_v19 = vmul.f32 %v2308_v22, %v429_v45  ;;  %v453_v50 = vand.u32 2147483648, %v396_v47 }
 0x2e4   :  { %537 = vmatpush.msrb.mxu2 %v510_v52 }
 0x2e5   :  { %v431_v7 = vadd.f32 %v2308_v22, %v430_v19  ;;  %v454_v19 = vor.u32 1.1754944e-38, %v453_v50 }
 0x2e6   :  { %v2310_v15 = vpop.eup %2309  ;;  %538 = vmatpush.msrb.mxu2 %v509_v23 }
 0x2e7   :  { %v443_v3 = vmul.f32 %v2310_v15, %v396_v47  ;;  %v435_v31 = vsel %vm434_vm2, %v2308_v22, %v431_v7  ;;  %vm448_vm4 = vweird.f32 %v2310_v15  ;;  %v451_v22 = vand.u32 2147483647, %v396_v47 }
 0x2e8   :  { %v440_v59 = vsel %vm437_vm3, %v439_v17, %v435_v31  ;;  %vm449_vm6 = vmor %vm447_vm5, %vm448_vm4  ;;  %539 = vmatpush.msrb.mxu2 %v508_v1 }
 0x2e9   :  { %v441_v11 = vmul.f32 %v440_v59, %v2963_v25  ;;  %v444_v43 = vsub.f32 1.0, %v443_v3  ;;  %v507_v25 = vld [vmem:[%s3941_s9 + $0x8] sm:$0xff]  ;;  %vm452_vm7 = vcmp.eq.f32.partialorder %v451_v22, 8.507059e+37 }
 0x2ea   :  { %540 = vmatpush.msrb.mxu2 %v507_v25 }
 0x2eb   :  { %499 = vmatmul.f32.gmra.mxu1 %v441_v11  ;;  %v445_v45 = vmul.f32 %v2310_v15, %v444_v43 }
 0x2ec   :  { %541 = vmatpush.msrb.mxu2 %v506_v21 }
 0x2ed   :  { %v446_v61 = vadd.f32 %v2310_v15, %v445_v45 }
 0x2ee   :  { %824 = vmatpush.msra.mxu2 %v2825_v39  ;;  %v2278_v39 = vld [vmem:[%s3940_s8] ss:$0 sm:$0xff] }
 0x2ef   :  { %v450_v30 = vsel %vm449_vm6, %v2310_v15, %v446_v61 }
 0x2f0   :  { %v455_v48 = vsel %vm452_vm7, %v454_v19, %v450_v30  ;;  %825 = vmatpush.msra.mxu2 %v2830_v40 }
 0x2f1   :  { %v456_v7 = vmul.f32 %v455_v48, %v2972_v32 }
 0x2f2   :  { %826 = vmatpush.msra.mxu2 %v2836_v42 }
 0x2f3   :  { %502 = vmatmul.f32.gmra.mxu1 %v456_v7 }
 0x2f4   :  { %827 = vmatpush.msra.mxu2 %v2842_v44 }
 0x2f6   :  { %828 = vmatpush.msra.mxu2 %v2848_v46 }
 0x2f8   :  { %829 = vmatpush.msra.mxu2 %v2854_v49 }
 0x2fa   :  { %830 = vmatpush.msra.mxu2 %v2860_v51 }
 0x2fc   :  { %831 = vmatpush.msra.mxu2 %v2866_v53 }
 0x2fe   :  { %832 = vmatpush.msra.mxu2 %v2872_v57 }
 0x300   :  { %833 = vmatpush.msra.mxu2 %v2878_v63 }
 0x302   :  { %834 = vmatpush.msra.mxu2 %v2909_v33 }
 0x304   :  { %835 = vmatpush.msra.mxu2 %v2915_v35  ;;  %v2279_v35 = vld [vmem:[%s3942_s10] ss:$0 sm:$0xff] }
 0x306   :  { %836 = vmatpush.msra.mxu2 %v2921_v36 }
 0x308   :  { %837 = vmatpush.msra.mxu2 %v2926_v37 }
 0x30a   :  { %838 = vmatpush.msra.mxu2 %v2933_v38  ;;  %v2498_v38 = vmov 32.0  }
 0x30b   :  { %2311 = vrcp.f32 %v2498_v38 }
 0x30c   :  { %839 = vmatpush.msra.mxu2 %v2939_v41 }
 0x311   :  { %v2312_v3 = vpop.eup %2311 }
 0x312   :  { %v573_v23 = vmul.f32 32.0, %v2312_v3  ;;  %vm577_vm8 = vweird.f32 %v2312_v3 }
 0x314   :  { %v574_v61 = vsub.f32 1.0, %v573_v23  ;;  %v2135_v23 = vld [vmem:[%s3937_s5 + $0x20] sm:$0xff] }
 0x316   :  { %v575_v30 = vmul.f32 %v2312_v3, %v574_v61 }
 0x318   :  { %v576_v21 = vadd.f32 %v2312_v3, %v575_v30 }
 0x358   :  { %v494_v40 = vpop.f32.mrf.mxu1 }
 0x359   :  { %v495_v42 = vadd.f32 %v2278_v39, %v494_v40 }
 0x35b   :  { %542 = vmatmul.f32.vlgmr.msrb.gmra.mxu2 %v495_v42  ;;  %v3052_v42 = vsel %vm577_vm8, %v2312_v3, %v576_v21 }
 0x360   :  { %v497_v44 = vpop.f32.mrf.mxu1 }
 0x361   :  { %v498_v46 = vadd.f32 %v2278_v39, %v497_v44 }
 0x363   :  { %545 = vmatmul.f32.gmra.mxu2 %v498_v46 }
 0x368   :  { %v500_v49 = vpop.f32.mrf.mxu1 }
 0x369   :  { %v501_v51 = vadd.f32 %v2278_v39, %v500_v49 }
 0x36b   :  { %548 = vmatmul.f32.gmra.mxu2 %v501_v51 }
 0x370   :  { %v503_v53 = vpop.f32.mrf.mxu1 }
 0x371   :  { %v504_v57 = vadd.f32 %v2278_v39, %v503_v53 }
 0x373   :  { %551 = vmatmul.f32.gmra.mxu2 %v504_v57 }
 0x3de   :  { %v543_v63 = vpop.f32.mrf.mxu2 }
 0x3df   :  { %v544_v41 = vadd.f32 %v2279_v35, %v543_v63 }
 0x3e1   :  { %v555_v15 = vmax.f32 %v544_v41, 0.0 }
 0x3e3   :  { %v559_v59 = vsel %vm179_vm1, %v555_v15, 0.0 }
 0x3e6   :  { %v546_v33 = vpop.f32.mrf.mxu2 }
 0x3e7   :  { %v547_v36 = vadd.f32 %v2279_v35, %v546_v33 }
 0x3e9   :  { %v556_v47 = vmax.f32 %v547_v36, 0.0 }
 0x3eb   :  { %v560_v31 = vsel %vm179_vm1, %v556_v47, 0.0 }
 0x3ec   :  { %v561_v50 = vadd.f32 %v560_v31, %v559_v59  ;;  %v2138_v31 = vld [vmem:[%s3937_s5 + $0x38] sm:$0xff]  ;;  %v2137_v59 = vld [vmem:[%s3937_s5 + $0x30] sm:$0xff] }
 0x3ed   :  { %662 = vmatpush.msrb.mxu3 %v2138_v31  ;;  %v707_v31 = vld [vmem:[#allocation2 + $0xd0] sm:$0xff] }
 0x3ee   :  { %v549_v37 = vpop.f32.mrf.mxu2 }
 0x3ef   :  { %v550_v32 = vadd.f32 %v2279_v35, %v549_v37  ;;  %663 = vmatpush.msrb.mxu3 %v2137_v59 }
 0x3f1   :  { %v557_v17 = vmax.f32 %v550_v32, 0.0 }
 0x3f3   :  { %v562_v11 = vsel %vm179_vm1, %v557_v17, 0.0 }
 0x3f4   :  { %v563_v22 = vadd.f32 %v562_v11, %v561_v50  ;;  %v2136_v11 = vld [vmem:[%s3937_s5 + $0x28] sm:$0xff] }
 0x3f5   :  { %664 = vmatpush.msrb.mxu3 %v2136_v11  ;;  %v706_v11 = vld [vmem:[#allocation2 + $0xc8] sm:$0xff] }
 0x3f6   :  { %v552_v52 = vpop.f32.mrf.mxu2 }
 0x3f7   :  { %v553_v43 = vadd.f32 %v2279_v35, %v552_v52  ;;  %665 = vmatpush.msrb.mxu3 %v2135_v23  ;;  %v2151_v23 = vld [vmem:[%s3938_s6 + $0xc0] sm:$0xff] }
 0x3f9   :  { %v558_v45 = vmax.f32 %v553_v43, 0.0 }
 0x3fb   :  { %v564_v1 = vsel %vm179_vm1, %v558_v45, 0.0 }
 0x3fc   :  { %v565_v25 = vadd.f32 %v564_v1, %v563_v22 }
 0x3fe   :  { %v566_v19 = vrot.slane %v565_v25, 4 }
 0x400   :  { %v567_v48 = vadd.f32 %v566_v19, %v565_v25 }
 0x402   :  { %v568_v7 = vrot.slane %v567_v48, 2 }
 0x404   :  { %v569_v39 = vadd.f32 %v568_v7, %v567_v48 }
 0x406   :  { %v570_v40 = vrot.slane %v569_v39, 1 }
 0x408   :  { %v571_v44 = vadd.f32 %v570_v40, %v569_v39  ;;  %v3083_v39 = vld [vmem:[%s3943_s11] ss:$0 sm:$0xff]  ;;  %v712_v40 = vld [vmem:[#allocation2 + $0xf8] sm:$0xff] }
 0x409   :  { %713 = vmatpush.msra.mxu0 %v712_v40 }
 0x40a   :  { %v579_v46 = vmul.f32 %v3052_v42, %v571_v44  ;;  %v2158_v44 = vld [vmem:[%s3938_s6 + $0xf8] sm:$0xff] }
 0x40b   :  { %755 = vmatpush.msra.mxu1 %v2158_v44  ;;  %v700_v44 = vld [vmem:[#allocation2 + $0x98] sm:$0xff] }
 0x40c   :  { %v580_v49 = vsub.f32 %v555_v15, %v579_v46  ;;  %v581_v51 = vsub.f32 %v556_v47, %v579_v46  ;;  %v3055_v53 = vsub.f32 %v557_v17, %v579_v46  ;;  %v3057_v57 = vsub.f32 %v558_v45, %v579_v46  ;;  %v711_v46 = vld [vmem:[#allocation2 + $0xf0] sm:$0xff] }
 0x40d   :  { %714 = vmatpush.msra.mxu0 %v711_v46  ;;  %v2146_v46 = vld [vmem:[%s3938_s6 + $0x98] sm:$0xff] }
 0x40e   :  { %v584_v63 = vmul.f32 %v580_v49, %v580_v49  ;;  %v585_v33 = vmul.f32 %v581_v51, %v581_v51  ;;  %v586_v35 = vmul.f32 %v3055_v53, %v3055_v53  ;;  %v587_v36 = vmul.f32 %v3057_v57, %v3057_v57 }
 0x410   :  { %v588_v37 = vsel %vm179_vm1, %v584_v63, 0.0  ;;  %v589_v38 = vsel %vm179_vm1, %v585_v33, 0.0  ;;  %v591_v32 = vsel %vm179_vm1, %v586_v35, 0.0  ;;  %v593_v15 = vsel %vm179_vm1, %v587_v36, 0.0  ;;  %v2157_v33 = vld [vmem:[%s3938_s6 + $0xf0] sm:$0xff] }
 0x411   :  { %v590_v41 = vadd.f32 %v589_v38, %v588_v37  ;;  %v3094_v36 = vld [vmem:[%s3944_s12] ss:$0 sm:$0xff]  ;;  %v710_v37 = vld [vmem:[#allocation2 + $0xe8] sm:$0xff]  ;;  %756 = vmatpush.msra.mxu1 %v2157_v33  ;;  %v699_v33 = vld [vmem:[#allocation2 + $0x90] sm:$0xff] }
 0x412   :  { %v2156_v38 = vld [vmem:[%s3938_s6 + $0xe8] sm:$0xff]  ;;  %715 = vmatpush.msra.mxu0 %v710_v37 }
 0x413   :  { %v592_v47 = vadd.f32 %v591_v32, %v590_v41  ;;  %v709_v32 = vld [vmem:[#allocation2 + $0xe0] sm:$0xff]  ;;  %757 = vmatpush.msra.mxu1 %v2156_v38  ;;  %v2144_v37 = vld [vmem:[%s3938_s6 + $0x88] sm:$0xff] }
 0x414   :  { %716 = vmatpush.msra.mxu0 %v709_v32  ;;  %v697_v38 = vld [vmem:[#allocation2 + $0x80] sm:$0xff] }
 0x415   :  { %v594_v17 = vadd.f32 %v593_v15, %v592_v47  ;;  %v2155_v47 = vld [vmem:[%s3938_s6 + $0xe0] sm:$0xff] }
 0x416   :  { %758 = vmatpush.msra.mxu1 %v2155_v47  ;;  %v2143_v32 = vld [vmem:[%s3938_s6 + $0x80] sm:$0xff] }
 0x417   :  { %v595_v3 = vrot.slane %v594_v17, 4 }
 0x419   :  { %v596_v52 = vadd.f32 %v595_v3, %v594_v17  ;;  %v708_v17 = vld [vmem:[#allocation2 + $0xd8] sm:$0xff] }
 0x41a   :  { %v2154_v3 = vld [vmem:[%s3938_s6 + $0xd8] sm:$0xff]  ;;  %717 = vmatpush.msra.mxu0 %v708_v17 }
 0x41b   :  { %v597_v43 = vrot.slane %v596_v52, 2  ;;  %759 = vmatpush.msra.mxu1 %v2154_v3 }
 0x41c   :  { %718 = vmatpush.msra.mxu0 %v707_v31 }
 0x41d   :  { %v598_v50 = vadd.f32 %v597_v43, %v596_v52  ;;  %v2153_v52 = vld [vmem:[%s3938_s6 + $0xd0] sm:$0xff]  ;;  %v705_v43 = vld [vmem:[#allocation2 + $0xc0] sm:$0xff] }
 0x41e   :  { %760 = vmatpush.msra.mxu1 %v2153_v52  ;;  %719 = vmatpush.msra.mxu0 %v706_v11 }
 0x41f   :  { %v599_v45 = vrot.slane %v598_v50, 1 }
 0x420   :  { %720 = vmatpush.msra.mxu0 %v705_v43 }
 0x421   :  { %v600_v22 = vadd.f32 %v599_v45, %v598_v50 }
 0x423   :  { %v601_v1 = vmul.f32 %v600_v22, %v3052_v42  ;;  %v704_v22 = vld [vmem:[#allocation2 + $0xb8] sm:$0xff] }
 0x424   :  { %721 = vmatpush.msra.mxu0 %v704_v22 }
 0x425   :  { %v602_v61 = vadd.f32 1e-05, %v601_v1  ;;  %v2150_v1 = vld [vmem:[%s3938_s6 + $0xb8] sm:$0xff] }
 0x427   :  { %2313 = vrsqrt.f32 %v602_v61  ;;  %vm609_vm10 = vweird.f32 %v602_v61 }
 0x42d   :  { %v2314_v25 = vpop.eup %2313 }
 0x42e   :  { %v604_v19 = vmul.f32 %v2314_v25, %v602_v61  ;;  %vm610_vm9 = vweird.f32 %v2314_v25  ;;  %v703_v61 = vld [vmem:[#allocation2 + $0xb0] sm:$0xff] }
 0x42f   :  { %vm611_vm11 = vmor %vm609_vm10, %vm610_vm9  ;;  %722 = vmatpush.msra.mxu0 %v703_v61 }
 0x430   :  { %v605_v30 = vmul.f32 %v2314_v25, %v604_v19 }
 0x432   :  { %v606_v48 = vmul.f32 0.5, %v605_v30  ;;  %v702_v30 = vld [vmem:[#allocation2 + $0xa8] sm:$0xff] }
 0x433   :  { %723 = vmatpush.msra.mxu0 %v702_v30 }
 0x434   :  { %v607_v7 = vsub.f32 1.5, %v606_v48  ;;  %v701_v48 = vld [vmem:[#allocation2 + $0xa0] sm:$0xff] }
 0x435   :  { %724 = vmatpush.msra.mxu0 %v701_v48 }
 0x436   :  { %v608_v21 = vmul.f32 %v2314_v25, %v607_v7  ;;  %v2147_v7 = vld [vmem:[%s3938_s6 + $0xa0] sm:$0xff] }
 0x437   :  { %725 = vmatpush.msra.mxu0 %v700_v44 }
 0x438   :  { %v612_v63 = vsel %vm611_vm11, %v2314_v25, %v608_v21  ;;  %v2149_v25 = vld [vmem:[%s3938_s6 + $0xb0] sm:$0xff] }
 0x439   :  { %v613_v35 = vmul.f32 %v612_v63, %v580_v49  ;;  %v614_v15 = vmul.f32 %v612_v63, %v581_v51  ;;  %v2152_v51 = vld [vmem:[%s3938_s6 + $0xc8] sm:$0xff]  ;;  %v615_v45 = vmul.f32 %v612_v63, %v3055_v53  ;;  %v616_v21 = vmul.f32 %v612_v63, %v3057_v57  ;;  %726 = vmatpush.msra.mxu0 %v699_v33 }
 0x43a   :  { %761 = vmatpush.msra.mxu1 %v2152_v51  ;;  %v2148_v53 = vld [vmem:[%s3938_s6 + $0xa8] sm:$0xff] }
 0x43b   :  { %v621_v41 = vmul.f32 %v3083_v39, %v613_v35  ;;  %v622_v59 = vmul.f32 %v3083_v39, %v614_v15  ;;  %v623_v19 = vmul.f32 %v3083_v39, %v615_v45  ;;  %v2145_v35 = vld [vmem:[%s3938_s6 + $0x90] sm:$0xff]  ;;  %v624_v57 = vmul.f32 %v3083_v39, %v616_v21  ;;  %v698_v63 = vld [vmem:[#allocation2 + $0x88] sm:$0xff] }
 0x43c   :  { %762 = vmatpush.msra.mxu1 %v2151_v23  ;;  %727 = vmatpush.msra.mxu0 %v698_v63 }
 0x43d   :  { %v629_v49 = vadd.f32 %v3094_v36, %v621_v41  ;;  %v630_v50 = vadd.f32 %v3094_v36, %v622_v59  ;;  %v631_v40 = vadd.f32 %v3094_v36, %v623_v19  ;;  %v632_v41 = vadd.f32 %v3094_v36, %v624_v57 }
 0x43e   :  { %763 = vmatpush.msra.mxu1 %v2150_v1  ;;  %728 = vmatpush.msra.mxu0 %v697_v38 }
 0x43f   :  { %2139 = vmatmul.msk.f32.vlgmr.msrb.gmra.mxu3 %vm179_vm1, %v629_v49 }
 0x440   :  { %764 = vmatpush.msra.mxu1 %v2149_v25 }
 0x442   :  { %765 = vmatpush.msra.mxu1 %v2148_v53 }
 0x444   :  { %766 = vmatpush.msra.mxu1 %v2147_v7 }
 0x446   :  { %767 = vmatpush.msra.mxu1 %v2146_v46 }
 0x447   :  { %2140 = vmatmul.msk.f32.gmra.mxu3 %vm179_vm1, %v630_v50 }
 0x448   :  { %768 = vmatpush.msra.mxu1 %v2145_v35 }
 0x44a   :  { %769 = vmatpush.msra.mxu1 %v2144_v37 }
 0x44c   :  { %770 = vmatpush.msra.mxu1 %v2143_v32 }
 0x44f   :  { %2141 = vmatmul.msk.f32.gmra.mxu3 %vm179_vm1, %v631_v40 }
 0x457   :  { %2142 = vmatmul.msk.f32.gmra.mxu3 %vm179_vm1, %v632_v41 }
 0x4c2   :  { %v667_v39 = vpop.f32.mrf.mxu3 }
 0x4c3   :  { %729 = vmatmul.f32.vlgmr.msra.gmra.mxu0 %v667_v39  ;;  %771 = vmatmul.f32.vlgmr.msra.gmra.mxu1 %v667_v39  ;;  %v929_v31 = vmul.f32 %v667_v39, %v2722_v60 }
 0x4ca   :  { %v670_v47 = vpop.f32.mrf.mxu3 }
 0x4cb   :  { %732 = vmatmul.f32.gmra.mxu0 %v670_v47  ;;  %774 = vmatmul.f32.gmra.mxu1 %v670_v47  ;;  %v930_v3 = vmul.f32 %v670_v47, %v2716_v58  ;;  %v926_v11 = vmul.f32 %v670_v47, %v2740_v2  ;;  %v922_v60 = vmul.f32 %v670_v47, %v2764_v10 }
 0x4d2   :  { %v673_v49 = vpop.f32.mrf.mxu3 }
 0x4d3   :  { %735 = vmatmul.f32.gmra.mxu0 %v673_v49  ;;  %777 = vmatmul.f32.gmra.mxu1 %v673_v49  ;;  %v931_v17 = vmul.f32 %v673_v49, %v2710_v56  ;;  %v927_v59 = vmul.f32 %v673_v49, %v2734_v0  ;;  %v923_v58 = vmul.f32 %v673_v49, %v2758_v8 }
 0x4d4   :  { %v919_v2 = vmul.f32 %v673_v49, %v2782_v16 }
 0x4da   :  { %v676_v15 = vpop.f32.mrf.mxu3 }
 0x4db   :  { %738 = vmatmul.f32.gmra.mxu0 %v676_v15  ;;  %780 = vmatmul.f32.gmra.mxu1 %v676_v15  ;;  %v932_v36 = vmul.f32 %v676_v15, %v2705_v54  ;;  %v928_v52 = vmul.f32 %v676_v15, %v2728_v62  ;;  %v925_v54 = vmul.f32 %v667_v39, %v2746_v4 }
 0x4dc   :  { %v924_v56 = vmul.f32 %v676_v15, %v2752_v6  ;;  %v921_v62 = vmul.f32 %v667_v39, %v2770_v12  ;;  %v920_v0 = vmul.f32 %v676_v15, %v2776_v14  ;;  %v918_v4 = vmul.f32 %v670_v47, %v2788_v18 }
 0x4dd   :  { %938 = vmatpush.msra.mxu3 %v932_v36  ;;  %v917_v6 = vmul.f32 %v667_v39, %v2794_v20 }
 0x4df   :  { %939 = vmatpush.msra.mxu3 %v931_v17 }
 0x4e1   :  { %940 = vmatpush.msra.mxu3 %v930_v3 }
 0x4e3   :  { %941 = vmatpush.msra.mxu3 %v929_v31 }
 0x4e5   :  { %942 = vmatpush.msra.mxu3 %v928_v52 }
 0x4e7   :  { %943 = vmatpush.msra.mxu3 %v927_v59 }
 0x4e9   :  { %944 = vmatpush.msra.mxu3 %v926_v11 }
 0x4eb   :  { %945 = vmatpush.msra.mxu3 %v925_v54 }
 0x4ed   :  { %946 = vmatpush.msra.mxu3 %v924_v56 }
 0x4ef   :  { %947 = vmatpush.msra.mxu3 %v923_v58  ;;  %v3971_v58 = vld [vmem:[#allocation11_spill] sm:$0xff] }
 0x4f1   :  { %948 = vmatpush.msra.mxu3 %v922_v60 }
 0x4f3   :  { %949 = vmatpush.msra.mxu3 %v921_v62  ;;  %v3972_v62 = vld [vmem:[#allocation12_spill] sm:$0xff] }
 0x4f5   :  { %950 = vmatpush.msra.mxu3 %v920_v0 }
 0x4f7   :  { %951 = vmatpush.msra.mxu3 %v919_v2 }
 0x4f9   :  { %952 = vmatpush.msra.mxu3 %v918_v4 }
 0x4fb   :  { %953 = vmatpush.msra.mxu3 %v917_v6 }
 0x540   :  { %v730_v8 = vpop.f32.mrf.mxu0  ;;  %v772_v43 = vpop.f32.mrf.mxu1 }
 0x541   :  { %v742_v50 = vmul.f32 %v730_v8, %v2806_v28 }
 0x548   :  { %v733_v51 = vpop.f32.mrf.mxu0  ;;  %v775_v12 = vpop.f32.mrf.mxu1 }
 0x549   :  { %v743_v23 = vmul.f32 %v733_v51, %v2801_v26 }
 0x54b   :  { %v746_v45 = vadd.f32 %v743_v23, %v742_v50  ;;  %v2175_v50 = vld [vmem:[%s3941_s9 + $0xf8] sm:$0xff] }
 0x54c   :  { %989 = vmatpush.msrb.mxu0 %v2175_v50  ;;  %v3273_v50 = vld [vmem:[%s3948_s16 + $0x50] sm:$0xff] }
 0x550   :  { %v736_v10 = vpop.f32.mrf.mxu0  ;;  %v778_v20 = vpop.f32.mrf.mxu1 }
 0x551   :  { %v744_v14 = vmul.f32 %v736_v10, %v2811_v29 }
 0x553   :  { %v747_v22 = vadd.f32 %v746_v45, %v744_v14  ;;  %v2174_v14 = vld [vmem:[%s3941_s9 + $0xf0] sm:$0xff] }
 0x554   :  { %990 = vmatpush.msrb.mxu0 %v2174_v14  ;;  %v3279_v14 = vld [vmem:[%s3948_s16 + $0x48] sm:$0xff] }
 0x558   :  { %v739_v16 = vpop.f32.mrf.mxu0  ;;  %v781_v7 = vpop.f32.mrf.mxu1 }
 0x559   :  { %v745_v18 = vmul.f32 %v739_v16, %v2819_v34 }
 0x55b   :  { %v748_v1 = vadd.f32 %v747_v22, %v745_v18  ;;  %v2173_v22 = vld [vmem:[%s3941_s9 + $0xe8] sm:$0xff] }
 0x55c   :  { %991 = vmatpush.msrb.mxu0 %v2173_v22  ;;  %v3297_v22 = vld [vmem:[%s3948_s16 + $0x30] sm:$0xff] }
 0x55d   :  { %v749_v61 = vrot.slane %v748_v1, 4 }
 0x55f   :  { %v750_v25 = vadd.f32 %v749_v61, %v748_v1 }
 0x561   :  { %v751_v19 = vrot.slane %v750_v25, 2 }
 0x563   :  { %v752_v30 = vadd.f32 %v751_v19, %v750_v25  ;;  %v2172_v19 = vld [vmem:[%s3941_s9 + $0xe0] sm:$0xff] }
 0x564   :  { %992 = vmatpush.msrb.mxu0 %v2172_v19  ;;  %v3330_v19 = vld [vmem:[%s3948_s16 + $0x8] sm:$0xff] }
 0x565   :  { %v753_v53 = vrot.slane %v752_v30, 1 }
 0x567   :  { %v754_v48 = vadd.f32 %v753_v53, %v752_v30 }
 0x569   :  { %v782_v26 = vadd.f32 %v781_v7, %v754_v48  ;;  %v779_v21 = vadd.f32 %v778_v20, %v754_v48  ;;  %v773_v40 = vadd.f32 %v772_v43, %v754_v48  ;;  %v776_v46 = vadd.f32 %v775_v12, %v754_v48  ;;  %v2171_v7 = vld [vmem:[%s3941_s9 + $0xd8] sm:$0xff] }
 0x56a   :  { %993 = vmatpush.msrb.mxu0 %v2171_v7 }
 0x56b   :  { %v791_v28 = vmul.f32 0.2, %v782_v26  ;;  %vm787_vm12 = vcmp.gt.f32.partialorder %v782_v26, 0.0  ;;  %vm786_vm13 = vcmp.gt.f32.partialorder %v779_v21, 0.0  ;;  %v790_v29 = vmul.f32 0.2, %v779_v21 }
 0x56c   :  { %vm784_vm14 = vcmp.gt.f32.partialorder %v773_v40, 0.0  ;;  %v788_v44 = vmul.f32 0.2, %v773_v40  ;;  %v789_v38 = vmul.f32 0.2, %v776_v46  ;;  %vm785_vm15 = vcmp.gt.f32.partialorder %v776_v46, 0.0 }
 0x56d   :  { %v795_v34 = vsel %vm787_vm12, %v782_v26, %v791_v28  ;;  %v794_v33 = vsel %vm786_vm13, %v779_v21, %v790_v29  ;;  %v2170_v28 = vld [vmem:[%s3941_s9 + $0xd0] sm:$0xff] }
 0x56e   :  { %v799_v35 = vadd.f32 %v795_v34, %v2897_v24  ;;  %v798_v57 = vadd.f32 %v794_v33, %v2884_v5  ;;  %v792_v63 = vsel %vm784_vm14, %v773_v40, %v788_v44  ;;  %v793_v41 = vsel %vm785_vm15, %v776_v46, %v789_v38  ;;  %v2169_v46 = vld [vmem:[%s3941_s9 + $0xc8] sm:$0xff]  ;;  %994 = vmatpush.msrb.mxu0 %v2170_v28 }
 0x56f   :  { %v796_v37 = vadd.f32 %v792_v63, %v2889_v9  ;;  %v797_v32 = vadd.f32 %v793_v41, %v2902_v27 }
 0x570   :  { %806 = vmax.xlane.f32.xlu1 %v799_v35  ;;  %804 = vmax.xlane.f32.xlu0 %v798_v57 }
 0x571   :  { %800 = vmax.xlane.f32.xlu2 %v796_v37  ;;  %995 = vmatpush.msrb.mxu0 %v2169_v46 }
 0x579   :  { %802 = vmax.xlane.f32.xlu2 %v797_v32 }
 0x5e3   :  { %v805_v24 = vpop.xlane.xlu0 %804  ;;  %v807_v52 = vpop.xlane.xlu1 %806 }
 0x5e4   :  { %v801_v39 = vpop.xlane.xlu2 %800  ;;  %v810_v3 = vsub.f32 %v798_v57, %v805_v24  ;;  %v811_v11 = vsub.f32 %v799_v35, %v807_v52  ;;  %v2166_v24 = vld [vmem:[%s3941_s9 + $0xb0] sm:$0xff]  ;;  %v2164_v52 = vld [vmem:[%s3941_s9 + $0xa0] sm:$0xff] }
 0x5e5   :  { %v808_v47 = vsub.f32 %v796_v37, %v801_v39  ;;  %v2168_v37 = vld [vmem:[%s3941_s9 + $0xc0] sm:$0xff]  ;;  %v2167_v39 = vld [vmem:[%s3941_s9 + $0xb8] sm:$0xff] }
 0x5e6   :  { %v816_v31 = vmul.f32 1.442695, %v810_v3  ;;  %v818_v54 = vmul.f32 1.442695, %v811_v11  ;;  %996 = vmatpush.msrb.mxu0 %v2168_v37 }
 0x5e7   :  { %v812_v49 = vmul.f32 1.442695, %v808_v47 }
 0x5e8   :  { %997 = vmatpush.msrb.mxu0 %v2167_v39 }
 0x5e9   :  { %2315 = vpow2.f32 %v812_v49 }
 0x5ea   :  { %998 = vmatpush.msrb.mxu0 %v2166_v24 }
 0x5ec   :  { %v803_v15 = vpop.xlane.xlu2 %802 }
 0x5ed   :  { %v809_v36 = vsub.f32 %v797_v32, %v803_v15 }
 0x5ef   :  { %v814_v5 = vmul.f32 1.442695, %v809_v36  ;;  %v2316_v17 = vpop.eup %2315 }
 0x5f0   :  { %v820_v9 = vmul.f32 %v2316_v17, %v2945_v55 }
 0x5f1   :  { %2317 = vpow2.f32 %v814_v5  ;;  %v2165_v5 = vld [vmem:[%s3941_s9 + $0xa8] sm:$0xff] }
 0x5f2   :  { %840 = vmatmul.f32.vlgmr.msra.gmra.mxu2 %v820_v9  ;;  %2319 = vpow2.f32 %v816_v31  ;;  %999 = vmatpush.msrb.mxu0 %v2165_v5 }
 0x5f3   :  { %2321 = vpow2.f32 %v818_v54  ;;  %v2163_v54 = vld [vmem:[%s3941_s9 + $0x98] sm:$0xff] }
 0x5f4   :  { %1000 = vmatpush.msrb.mxu0 %v2164_v52 }
 0x5f6   :  { %1001 = vmatpush.msrb.mxu0 %v2163_v54 }
 0x5f7   :  { %v2318_v59 = vpop.eup %2317 }
 0x5f8   :  { %v3178_v27 = vmul.f32 %v2318_v59, %v2951_v13  ;;  %v2320_v56 = vpop.eup %2319 }
 0x5f9   :  { %v3182_v60 = vmul.f32 %v2320_v56, %v3971_v58  ;;  %v2322_v55 = vpop.eup %2321 }
 0x5fa   :  { %843 = vmatmul.f32.gmra.mxu2 %v3178_v27  ;;  %v3186_v0 = vmul.f32 %v2322_v55, %v3972_v62  ;;  %v2162_v62 = vld [vmem:[%s3941_s9 + $0x90] sm:$0xff] }
 0x5fb   :  { %1002 = vmatpush.msrb.mxu0 %v2162_v62 }
 0x602   :  { %846 = vmatmul.f32.gmra.mxu2 %v3182_v60 }
 0x60a   :  { %849 = vmatmul.f32.gmra.mxu2 %v3186_v0 }
 0x675   :  { %v841_v2 = vpop.f32.mrf.mxu2 }
 0x676   :  { %v853_v4 = vmax.f32 %v841_v2, 1e-30 }
 0x678   :  { %2323 = vrcp.f32 %v853_v4  ;;  %v868_v10 = vand.u32 2147483648, %v853_v4  ;;  %v866_v12 = vand.u32 2147483647, %v853_v4  ;;  %vm862_vm3 = vweird.f32 %v853_v4 }
 0x67a   :  { %v869_v61 = vor.u32 1.1754944e-38, %v868_v10  ;;  %vm867_vm5 = vcmp.eq.f32.partialorder %v866_v12, 8.507059e+37  ;;  %v3249_v10 = vld [vmem:[%s3948_s16 + $0x70] sm:$0xff]  ;;  %v3267_v12 = vld [vmem:[%s3948_s16 + $0x58] sm:$0xff] }
 0x67d   :  { %v844_v13 = vpop.f32.mrf.mxu2 }
 0x67e   :  { %v2324_v6 = vpop.eup %2323  ;;  %v854_v8 = vmax.f32 %v844_v13, 1e-30 }
 0x67f   :  { %v858_v51 = vmul.f32 %v2324_v6, %v853_v4  ;;  %vm863_vm2 = vweird.f32 %v2324_v6 }
 0x680   :  { %2325 = vrcp.f32 %v854_v8  ;;  %vm864_vm4 = vmor %vm862_vm3, %vm863_vm2  ;;  %v883_v26 = vand.u32 2147483648, %v854_v8  ;;  %v881_v40 = vand.u32 2147483647, %v854_v8  ;;  %vm877_vm7 = vweird.f32 %v854_v8 }
 0x681   :  { %v859_v43 = vsub.f32 1.0, %v858_v51  ;;  %v2160_v51 = vld [vmem:[%s3941_s9 + $0x80] sm:$0xff] }
 0x682   :  { %v884_v35 = vor.u32 1.1754944e-38, %v883_v26  ;;  %vm882_vm9 = vcmp.eq.f32.partialorder %v881_v40, 8.507059e+37 }
 0x683   :  { %v860_v23 = vmul.f32 %v2324_v6, %v859_v43  ;;  %v3243_v43 = vld [vmem:[%s3948_s16 + $0x78] sm:$0xff] }
 0x685   :  { %v847_v45 = vpop.f32.mrf.mxu2  ;;  %v861_v16 = vadd.f32 %v2324_v6, %v860_v23  ;;  %v3261_v23 = vld [vmem:[%s3948_s16 + $0x60] sm:$0xff] }
 0x686   :  { %v2326_v18 = vpop.eup %2325  ;;  %v855_v1 = vmax.f32 %v847_v45, 1e-30  ;;  %v3285_v45 = vld [vmem:[%s3948_s16 + $0x40] sm:$0xff] }
 0x687   :  { %v873_v20 = vmul.f32 %v2326_v18, %v854_v8  ;;  %v865_v25 = vsel %vm864_vm4, %v2324_v6, %v861_v16  ;;  %vm878_vm6 = vweird.f32 %v2326_v18  ;;  %v3291_v16 = vld [vmem:[%s3948_s16 + $0x38] sm:$0xff] }
 0x688   :  { %2327 = vrcp.f32 %v855_v1  ;;  %v870_v30 = vsel %vm867_vm5, %v869_v61, %v865_v25  ;;  %vm879_vm8 = vmor %vm877_vm7, %vm878_vm6  ;;  %v898_v47 = vand.u32 2147483648, %v855_v1  ;;  %v896_v15 = vand.u32 2147483647, %v855_v1  ;;  %v3315_v61 = vld [vmem:[%s3948_s16 + $0x18] sm:$0xff]  ;;  %v3324_v25 = vld [vmem:[%s3948_s16 + $0x10] sm:$0xff] }
 0x689   :  { %v871_v53 = vmul.f32 %v870_v30, %v820_v9  ;;  %v874_v48 = vsub.f32 1.0, %v873_v20  ;;  %vm892_vm11 = vweird.f32 %v855_v1  ;;  %v2282_v20 = vld [vmem:[%s3940_s8 + $0x1] ss:$0 sm:$0xff] }
 0x68a   :  { %v899_v3 = vor.u32 1.1754944e-38, %v898_v47  ;;  %vm897_vm13 = vcmp.eq.f32.partialorder %v896_v15, 8.507059e+37 }
 0x68b   :  { %954 = vmatmul.f32.vlgmr.msra.gmra.mxu3 %v871_v53  ;;  %v875_v21 = vmul.f32 %v2326_v18, %v874_v48  ;;  %v3336_v48 = vld [vmem:[%s3948_s16] sm:$0xff] }
 0x68d   :  { %v850_v29 = vpop.f32.mrf.mxu2  ;;  %v876_v44 = vadd.f32 %v2326_v18, %v875_v21 }
 0x68e   :  { %v2328_v34 = vpop.eup %2327  ;;  %v856_v33 = vmax.f32 %v850_v29, 1e-30 }
 0x68f   :  { %v888_v57 = vmul.f32 %v2328_v34, %v855_v1  ;;  %v880_v63 = vsel %vm879_vm8, %v2326_v18, %v876_v44  ;;  %vm893_vm10 = vweird.f32 %v2328_v34  ;;  %v3303_v18 = vld [vmem:[%s3948_s16 + $0x28] sm:$0xff]  ;;  %v3309_v1 = vld [vmem:[%s3948_s16 + $0x20] sm:$0xff] }
 0x690   :  { %2329 = vrcp.f32 %v856_v33  ;;  %v885_v38 = vsel %vm882_vm9, %v884_v35, %v880_v63  ;;  %vm894_vm12 = vmor %vm892_vm11, %vm893_vm10  ;;  %v913_v56 = vand.u32 2147483648, %v856_v33  ;;  %v911_v55 = vand.u32 2147483647, %v856_v33 }
 0x691   :  { %v886_v41 = vmul.f32 %v885_v38, %v3178_v27  ;;  %v889_v32 = vsub.f32 1.0, %v888_v57  ;;  %vm907_vm15 = vweird.f32 %v856_v33 }
 0x692   :  { %v914_v4 = vor.u32 1.1754944e-38, %v913_v56  ;;  %vm912_vm3 = vcmp.eq.f32.partialorder %v911_v55, 8.507059e+37 }
 0x693   :  { %957 = vmatmul.f32.gmra.mxu3 %v886_v41  ;;  %v890_v49 = vmul.f32 %v2328_v34, %v889_v32 }
 0x695   :  { %v891_v36 = vadd.f32 %v2328_v34, %v890_v49 }
 0x696   :  { %v2330_v17 = vpop.eup %2329 }
 0x697   :  { %v903_v9 = vmul.f32 %v2330_v17, %v856_v33  ;;  %v895_v31 = vsel %vm894_vm12, %v2328_v34, %v891_v36  ;;  %vm908_vm14 = vweird.f32 %v2330_v17  ;;  %v2283_v34 = vld [vmem:[%s3942_s10 + $0x1] ss:$0 sm:$0xff] }
 0x698   :  { %v900_v59 = vsel %vm897_vm13, %v899_v3, %v895_v31  ;;  %vm909_vm2 = vmor %vm907_vm15, %vm908_vm14 }
 0x699   :  { %v901_v11 = vmul.f32 %v900_v59, %v3182_v60  ;;  %v904_v27 = vsub.f32 1.0, %v903_v9  ;;  %v2161_v60 = vld [vmem:[%s3941_s9 + $0x88] sm:$0xff] }
 0x69a   :  { %1003 = vmatpush.msrb.mxu0 %v2161_v60 }
 0x69b   :  { %960 = vmatmul.f32.gmra.mxu3 %v901_v11  ;;  %v905_v58 = vmul.f32 %v2330_v17, %v904_v27 }
 0x69c   :  { %1004 = vmatpush.msrb.mxu0 %v2160_v51 }
 0x69d   :  { %v906_v2 = vadd.f32 %v2330_v17, %v905_v58 }
 0x69e   :  { %1286 = vmatpush.msra.mxu0 %v3243_v43 }
 0x69f   :  { %v910_v13 = vsel %vm909_vm2, %v2330_v17, %v906_v2 }
 0x6a0   :  { %v915_v6 = vsel %vm912_vm3, %v914_v4, %v910_v13  ;;  %1287 = vmatpush.msra.mxu0 %v3249_v10 }
 0x6a1   :  { %v916_v8 = vmul.f32 %v915_v6, %v3186_v0  ;;  %v3255_v0 = vld [vmem:[%s3948_s16 + $0x68] sm:$0xff] }
 0x6a2   :  { %1288 = vmatpush.msra.mxu0 %v3255_v0 }
 0x6a3   :  { %963 = vmatmul.f32.gmra.mxu3 %v916_v8 }
 0x6a4   :  { %1289 = vmatpush.msra.mxu0 %v3261_v23 }
 0x6a6   :  { %1290 = vmatpush.msra.mxu0 %v3267_v12 }
 0x6a8   :  { %1291 = vmatpush.msra.mxu0 %v3273_v50 }
 0x6aa   :  { %1292 = vmatpush.msra.mxu0 %v3279_v14 }
 0x6ac   :  { %1293 = vmatpush.msra.mxu0 %v3285_v45 }
 0x6ae   :  { %1294 = vmatpush.msra.mxu0 %v3291_v16 }
 0x6b0   :  { %1295 = vmatpush.msra.mxu0 %v3297_v22 }
 0x6b2   :  { %1296 = vmatpush.msra.mxu0 %v3303_v18 }
 0x6b4   :  { %1297 = vmatpush.msra.mxu0 %v3309_v1 }
 0x6b6   :  { %1298 = vmatpush.msra.mxu0 %v3315_v61 }
 0x6b8   :  { %1299 = vmatpush.msra.mxu0 %v3324_v25 }
 0x6ba   :  { %1300 = vmatpush.msra.mxu0 %v3330_v19 }
 0x6bc   :  { %1301 = vmatpush.msra.mxu0 %v3336_v48 }
 0x70e   :  { %v955_v30 = vpop.f32.mrf.mxu3 }
 0x70f   :  { %v956_v53 = vadd.f32 %v2282_v20, %v955_v30 }
 0x711   :  { %1005 = vmatmul.f32.vlgmr.msrb.gmra.mxu0 %v956_v53 }
 0x716   :  { %v958_v7 = vpop.f32.mrf.mxu3 }
 0x717   :  { %v959_v26 = vadd.f32 %v2282_v20, %v958_v7 }
 0x719   :  { %1008 = vmatmul.f32.gmra.mxu0 %v959_v26 }
 0x71e   :  { %v961_v21 = vpop.f32.mrf.mxu3 }
 0x71f   :  { %v962_v40 = vadd.f32 %v2282_v20, %v961_v21  ;;  %v2182_v21 = vld [vmem:[%s3937_s5 + $0x58] sm:$0xff] }
 0x720   :  { %1124 = vmatpush.msrb.mxu1 %v2182_v21  ;;  %v2195_v21 = vld [vmem:[%s3938_s6 + $0x140] sm:$0xff] }
 0x721   :  { %1011 = vmatmul.f32.gmra.mxu0 %v962_v40 }
 0x726   :  { %v964_v28 = vpop.f32.mrf.mxu3 }
 0x727   :  { %v965_v29 = vadd.f32 %v2282_v20, %v964_v28  ;;  %v2181_v28 = vld [vmem:[%s3937_s5 + $0x50] sm:$0xff] }
 0x728   :  { %1125 = vmatpush.msrb.mxu1 %v2181_v28  ;;  %v2194_v28 = vld [vmem:[%s3938_s6 + $0x138] sm:$0xff] }
 0x729   :  { %1014 = vmatmul.f32.gmra.mxu0 %v965_v29  ;;  %v2180_v29 = vld [vmem:[%s3937_s5 + $0x48] sm:$0xff] }
 0x72a   :  { %1126 = vmatpush.msrb.mxu1 %v2180_v29  ;;  %v1165_v29 = vld [vmem:[#allocation2 + $0x130] sm:$0xff] }
 0x78e   :  { %v1006_v44 = vpop.f32.mrf.mxu0 }
 0x78f   :  { %v1007_v57 = vadd.f32 %v2283_v34, %v1006_v44 }
 0x791   :  { %v1018_v38 = vmax.f32 %v1007_v57, 0.0 }
 0x793   :  { %v1022_v47 = vsel %vm179_vm1, %v1018_v38, 0.0 }
 0x796   :  { %v1009_v46 = vpop.f32.mrf.mxu0 }
 0x797   :  { %v1010_v33 = vadd.f32 %v2283_v34, %v1009_v46  ;;  %v2179_v46 = vld [vmem:[%s3937_s5 + $0x40] sm:$0xff] }
 0x798   :  { %1127 = vmatpush.msrb.mxu1 %v2179_v46  ;;  %v1164_v46 = vld [vmem:[#allocation2 + $0x128] sm:$0xff] }
 0x799   :  { %v1019_v37 = vmax.f32 %v1010_v33, 0.0 }
 0x79b   :  { %v1023_v32 = vsel %vm179_vm1, %v1019_v37, 0.0 }
 0x79c   :  { %v1024_v24 = vadd.f32 %v1023_v32, %v1022_v47 }
 0x79e   :  { %v1012_v35 = vpop.f32.mrf.mxu0 }
 0x79f   :  { %v1013_v63 = vadd.f32 %v2283_v34, %v1012_v35 }
 0x7a1   :  { %v1020_v41 = vmax.f32 %v1013_v63, 0.0 }
 0x7a3   :  { %v1025_v49 = vsel %vm179_vm1, %v1020_v41, 0.0 }
 0x7a4   :  { %v1026_v5 = vadd.f32 %v1025_v49, %v1024_v24  ;;  %v2284_v49 = vld [vmem:[%s3943_s11 + $0x1] ss:$0 sm:$0xff]  ;;  %v2202_v24 = vld [vmem:[%s3938_s6 + $0x178] sm:$0xff] }
 0x7a5   :  { %1217 = vmatpush.msrb.mxu3 %v2202_v24 }
 0x7a6   :  { %v1015_v39 = vpop.f32.mrf.mxu0 }
 0x7a7   :  { %v1016_v15 = vadd.f32 %v2283_v34, %v1015_v39 }
 0x7a9   :  { %v1021_v36 = vmax.f32 %v1016_v15, 0.0  ;;  %v1174_v15 = vld [vmem:[#allocation2 + $0x178] sm:$0xff] }
 0x7aa   :  { %1175 = vmatpush.msrb.mxu2 %v1174_v15 }
 0x7ab   :  { %v1027_v17 = vsel %vm179_vm1, %v1021_v36, 0.0 }
 0x7ac   :  { %v1028_v3 = vadd.f32 %v1027_v17, %v1026_v5  ;;  %v2201_v17 = vld [vmem:[%s3938_s6 + $0x170] sm:$0xff] }
 0x7ad   :  { %1218 = vmatpush.msrb.mxu3 %v2201_v17 }
 0x7ae   :  { %v1029_v9 = vrot.slane %v1028_v3, 4 }
 0x7b0   :  { %v1030_v31 = vadd.f32 %v1029_v9, %v1028_v3 }
 0x7b2   :  { %v1031_v52 = vrot.slane %v1030_v31, 2 }
 0x7b4   :  { %v1032_v59 = vadd.f32 %v1031_v52, %v1030_v31  ;;  %v2285_v31 = vld [vmem:[%s3944_s12 + $0x1] ss:$0 sm:$0xff] }
 0x7b6   :  { %v1033_v11 = vrot.slane %v1032_v59, 1 }
 0x7b8   :  { %v1034_v27 = vadd.f32 %v1033_v11, %v1032_v59  ;;  %v1172_v11 = vld [vmem:[#allocation2 + $0x168] sm:$0xff] }
 0x7ba   :  { %v1035_v54 = vmul.f32 %v1034_v27, %v3052_v42  ;;  %v2200_v27 = vld [vmem:[%s3938_s6 + $0x168] sm:$0xff] }
 0x7bb   :  { %1219 = vmatpush.msrb.mxu3 %v2200_v27  ;;  %v3453_v27 = vld [vmem:[%s3949_s17 + $0x58] sm:$0xff] }
 0x7bc   :  { %v1036_v56 = vsub.f32 %v1018_v38, %v1035_v54  ;;  %v1037_v58 = vsub.f32 %v1019_v37, %v1035_v54  ;;  %v1038_v55 = vsub.f32 %v1020_v41, %v1035_v54  ;;  %v1039_v62 = vsub.f32 %v1021_v36, %v1035_v54  ;;  %v1173_v36 = vld [vmem:[#allocation2 + $0x170] sm:$0xff] }
 0x7bd   :  { %1176 = vmatpush.msrb.mxu2 %v1173_v36 }
 0x7be   :  { %v1040_v2 = vmul.f32 %v1036_v56, %v1036_v56  ;;  %v1041_v60 = vmul.f32 %v1037_v58, %v1037_v58  ;;  %v1042_v4 = vmul.f32 %v1038_v55, %v1038_v55  ;;  %v1043_v13 = vmul.f32 %v1039_v62, %v1039_v62 }
 0x7bf   :  { %1177 = vmatpush.msrb.mxu2 %v1172_v11 }
 0x7c0   :  { %v1044_v6 = vsel %vm179_vm1, %v1040_v2, 0.0  ;;  %v1045_v8 = vsel %vm179_vm1, %v1041_v60, 0.0  ;;  %v1047_v20 = vsel %vm179_vm1, %v1042_v4, 0.0  ;;  %v1049_v53 = vsel %vm179_vm1, %v1043_v13, 0.0  ;;  %v1171_v13 = vld [vmem:[#allocation2 + $0x160] sm:$0xff] }
 0x7c1   :  { %v1046_v51 = vadd.f32 %v1045_v8, %v1044_v6  ;;  %v1170_v6 = vld [vmem:[#allocation2 + $0x158] sm:$0xff]  ;;  %1178 = vmatpush.msrb.mxu2 %v1171_v13 }
 0x7c2   :  { %v2198_v8 = vld [vmem:[%s3938_s6 + $0x158] sm:$0xff] }
 0x7c3   :  { %v1048_v30 = vadd.f32 %v1047_v20, %v1046_v51  ;;  %v1169_v20 = vld [vmem:[#allocation2 + $0x150] sm:$0xff]  ;;  %1179 = vmatpush.msrb.mxu2 %v1170_v6 }
 0x7c4   :  { %v3483_v6 = vld [vmem:[%s3949_s17 + $0x30] sm:$0xff] }
 0x7c5   :  { %v1050_v7 = vadd.f32 %v1049_v53, %v1048_v30  ;;  %v2197_v30 = vld [vmem:[%s3938_s6 + $0x150] sm:$0xff]  ;;  %v1168_v53 = vld [vmem:[#allocation2 + $0x148] sm:$0xff]  ;;  %1180 = vmatpush.msrb.mxu2 %v1169_v20 }
 0x7c7   :  { %v1051_v26 = vrot.slane %v1050_v7, 4  ;;  %1181 = vmatpush.msrb.mxu2 %v1168_v53 }
 0x7c9   :  { %v1052_v40 = vadd.f32 %v1051_v26, %v1050_v7  ;;  %v2196_v7 = vld [vmem:[%s3938_s6 + $0x148] sm:$0xff]  ;;  %v1167_v26 = vld [vmem:[#allocation2 + $0x140] sm:$0xff] }
 0x7ca   :  { %1182 = vmatpush.msrb.mxu2 %v1167_v26 }
 0x7cb   :  { %v1053_v44 = vrot.slane %v1052_v40, 2 }
 0x7cd   :  { %v1054_v34 = vadd.f32 %v1053_v44, %v1052_v40  ;;  %v1166_v40 = vld [vmem:[#allocation2 + $0x138] sm:$0xff]  ;;  %v2193_v44 = vld [vmem:[%s3938_s6 + $0x130] sm:$0xff] }
 0x7ce   :  { %1183 = vmatpush.msrb.mxu2 %v1166_v40 }
 0x7cf   :  { %v1055_v33 = vrot.slane %v1054_v34, 1 }
 0x7d0   :  { %1184 = vmatpush.msrb.mxu2 %v1165_v29 }
 0x7d1   :  { %v1056_v35 = vadd.f32 %v1055_v33, %v1054_v34  ;;  %v2192_v34 = vld [vmem:[%s3938_s6 + $0x128] sm:$0xff]  ;;  %v1163_v33 = vld [vmem:[#allocation2 + $0x120] sm:$0xff] }
 0x7d2   :  { %1185 = vmatpush.msrb.mxu2 %v1164_v46 }
 0x7d3   :  { %v1057_v57 = vmul.f32 %v1056_v35, %v3052_v42  ;;  %v2191_v35 = vld [vmem:[%s3938_s6 + $0x120] sm:$0xff] }
 0x7d4   :  { %1186 = vmatpush.msrb.mxu2 %v1163_v33 }
 0x7d5   :  { %v1058_v63 = vadd.f32 1e-05, %v1057_v57  ;;  %v1162_v57 = vld [vmem:[#allocation2 + $0x118] sm:$0xff] }
 0x7d6   :  { %1187 = vmatpush.msrb.mxu2 %v1162_v57 }
 0x7d7   :  { %2331 = vrsqrt.f32 %v1058_v63  ;;  %vm1065_vm5 = vweird.f32 %v1058_v63 }
 0x7dd   :  { %v2332_v37 = vpop.eup %2331 }
 0x7de   :  { %v1060_v38 = vmul.f32 %v2332_v37, %v1058_v63  ;;  %vm1066_vm4 = vweird.f32 %v2332_v37  ;;  %v2190_v63 = vld [vmem:[%s3938_s6 + $0x118] sm:$0xff] }
 0x7df   :  { %vm1067_vm6 = vmor %vm1065_vm5, %vm1066_vm4 }
 0x7e0   :  { %v1061_v41 = vmul.f32 %v2332_v37, %v1060_v38  ;;  %v2189_v38 = vld [vmem:[%s3938_s6 + $0x110] sm:$0xff] }
 0x7e2   :  { %v1062_v32 = vmul.f32 0.5, %v1061_v41  ;;  %v1160_v41 = vld [vmem:[#allocation2 + $0x108] sm:$0xff] }
 0x7e4   :  { %v1063_v39 = vsub.f32 1.5, %v1062_v32  ;;  %v2188_v32 = vld [vmem:[%s3938_s6 + $0x108] sm:$0xff] }
 0x7e6   :  { %v1064_v47 = vmul.f32 %v2332_v37, %v1063_v39  ;;  %v1159_v39 = vld [vmem:[#allocation2 + $0x100] sm:$0xff] }
 0x7e8   :  { %v1068_v5 = vsel %vm1067_vm6, %v2332_v37, %v1064_v47  ;;  %v1161_v37 = vld [vmem:[#allocation2 + $0x110] sm:$0xff]  ;;  %v2187_v47 = vld [vmem:[%s3938_s6 + $0x100] sm:$0xff] }
 0x7e9   :  { %v1069_v3 = vmul.f32 %v1068_v5, %v1036_v56  ;;  %v1072_v9 = vmul.f32 %v1068_v5, %v1039_v62  ;;  %v1070_v52 = vmul.f32 %v1068_v5, %v1037_v58  ;;  %v1071_v59 = vmul.f32 %v1068_v5, %v1038_v55  ;;  %v2199_v56 = vld [vmem:[%s3938_s6 + $0x160] sm:$0xff]  ;;  %1188 = vmatpush.msrb.mxu2 %v1161_v37  ;;  %v3429_v5 = vld [vmem:[%s3949_s17 + $0x78] sm:$0xff] }
 0x7ea   :  { %1220 = vmatpush.msrb.mxu3 %v2199_v56  ;;  %v3471_v56 = vld [vmem:[%s3949_s17 + $0x40] sm:$0xff] }
 0x7eb   :  { %v1078_v54 = vmul.f32 %v2284_v49, %v1069_v3  ;;  %v1079_v2 = vmul.f32 %v2284_v49, %v1070_v52  ;;  %v1080_v60 = vmul.f32 %v2284_v49, %v1071_v59  ;;  %v1081_v4 = vmul.f32 %v2284_v49, %v1072_v9  ;;  %1189 = vmatpush.msrb.mxu2 %v1160_v41  ;;  %v3435_v3 = vld [vmem:[%s3949_s17 + $0x70] sm:$0xff]  ;;  %v3447_v59 = vld [vmem:[%s3949_s17 + $0x60] sm:$0xff] }
 0x7ec   :  { %1221 = vmatpush.msrb.mxu3 %v2198_v8 }
 0x7ed   :  { %v1087_v58 = vadd.f32 %v2285_v31, %v1078_v54  ;;  %v1088_v55 = vadd.f32 %v2285_v31, %v1079_v2  ;;  %v1089_v62 = vadd.f32 %v2285_v31, %v1080_v60  ;;  %v1090_v51 = vadd.f32 %v2285_v31, %v1081_v4  ;;  %1190 = vmatpush.msrb.mxu2 %v1159_v39  ;;  %v3441_v31 = vld [vmem:[%s3949_s17 + $0x68] sm:$0xff]  ;;  %v3459_v2 = vld [vmem:[%s3949_s17 + $0x50] sm:$0xff] }
 0x7ee   :  { %1222 = vmatpush.msrb.mxu3 %v2197_v30  ;;  %v3465_v4 = vld [vmem:[%s3949_s17 + $0x48] sm:$0xff]  ;;  %v3495_v30 = vld [vmem:[%s3949_s17 + $0x20] sm:$0xff] }
 0x7ef   :  { %2183 = vmatmul.msk.f32.vlgmr.msrb.gmra.mxu1 %vm179_vm1, %v1087_v58  ;;  %1091 = vst.msk [vmem:[#allocation5] sm:$0xff] %vm179_vm1, %v1087_v58 }
 0x7f0   :  { %1092 = vst.msk [vmem:[#allocation5 + $0x8] sm:$0xff] %vm179_vm1, %v1088_v55  ;;  %1223 = vmatpush.msrb.mxu3 %v2196_v7  ;;  %v3501_v7 = vld [vmem:[%s3949_s17 + $0x18] sm:$0xff] }
 0x7f1   :  { %1093 = vst.msk [vmem:[#allocation5 + $0x10] sm:$0xff] %vm179_vm1, %v1089_v62 }
 0x7f2   :  { %1094 = vst.msk [vmem:[#allocation5 + $0x18] sm:$0xff] %vm179_vm1, %v1090_v51  ;;  %1224 = vmatpush.msrb.mxu3 %v2195_v21  ;;  %v3507_v21 = vld [vmem:[%s3949_s17 + $0x10] sm:$0xff] }
 0x7f4   :  { %1225 = vmatpush.msrb.mxu3 %v2194_v28  ;;  %v3513_v28 = vld [vmem:[%s3949_s17 + $0x8] sm:$0xff] }
 0x7f6   :  { %1226 = vmatpush.msrb.mxu3 %v2193_v44  ;;  %v3519_v44 = vld [vmem:[%s3949_s17] sm:$0xff] }
 0x7f7   :  { %2184 = vmatmul.msk.f32.gmra.mxu1 %vm179_vm1, %v1088_v55  ;;  %v3477_v55 = vld [vmem:[%s3949_s17 + $0x38] sm:$0xff] }
 0x7f8   :  { %1227 = vmatpush.msrb.mxu3 %v2192_v34 }
 0x7fa   :  { %1228 = vmatpush.msrb.mxu3 %v2191_v35 }
 0x7fc   :  { %1229 = vmatpush.msrb.mxu3 %v2190_v63  ;;  %v3525_v63 = vld [vmem:[%s3947_s15 + $0x8] sm:$0xff] }
 0x7fe   :  { %1230 = vmatpush.msrb.mxu3 %v2189_v38  ;;  %v3531_v38 = vld [vmem:[%s3947_s15] sm:$0xff] }
 0x7ff   :  { %2185 = vmatmul.msk.f32.gmra.mxu1 %vm179_vm1, %v1089_v62 }
 0x800   :  { %1231 = vmatpush.msrb.mxu3 %v2188_v32  ;;  %v3537_v32 = vld [vmem:[%s3947_s15 + $0x10] sm:$0xff] }
 0x802   :  { %1232 = vmatpush.msrb.mxu3 %v2187_v47 }
 0x807   :  { %2186 = vmatmul.msk.f32.gmra.mxu1 %vm179_vm1, %v1090_v51  ;;  %v3489_v51 = vld [vmem:[%s3949_s17 + $0x28] sm:$0xff] }
 0x86c   :  { %v1129_v49 = vpop.f32.mrf.mxu1 }
 0x86d   :  { %1191 = vmatmul.f32.vlgmr.msrb.gmra.mxu2 %v1129_v49  ;;  %1233 = vmatmul.f32.vlgmr.msrb.gmra.mxu3 %v1129_v49  ;;  %v1391_v11 = vmul.f32 %v3447_v59, %v1129_v49  ;;  %v1387_v58 = vmul.f32 %v3471_v56, %v1129_v49  ;;  %v1383_v53 = vmul.f32 %v3495_v30, %v1129_v49 }
 0x86e   :  { %v1379_v46 = vmul.f32 %v3519_v44, %v1129_v49 }
 0x874   :  { %v1132_v15 = vpop.f32.mrf.mxu1 }
 0x875   :  { %1194 = vmatmul.f32.gmra.mxu2 %v1132_v15  ;;  %1236 = vmatmul.f32.gmra.mxu3 %v1132_v15  ;;  %v1392_v52 = vmul.f32 %v3441_v31, %v1132_v15  ;;  %v1388_v13 = vmul.f32 %v3465_v4, %v1132_v15  ;;  %v1384_v20 = vmul.f32 %v3489_v51, %v1132_v15 }
 0x876   :  { %v1380_v29 = vmul.f32 %v3513_v28, %v1132_v15 }
 0x87c   :  { %v1135_v24 = vpop.f32.mrf.mxu1 }
 0x87d   :  { %1197 = vmatmul.f32.gmra.mxu2 %v1135_v24  ;;  %1239 = vmatmul.f32.gmra.mxu3 %v1135_v24  ;;  %v1393_v9 = vmul.f32 %v3435_v3, %v1135_v24  ;;  %v1389_v60 = vmul.f32 %v3459_v2, %v1135_v24  ;;  %v1385_v8 = vmul.f32 %v3483_v6, %v1135_v24 }
 0x87e   :  { %v1381_v40 = vmul.f32 %v3507_v21, %v1135_v24 }
 0x884   :  { %v1138_v36 = vpop.f32.mrf.mxu1 }
 0x885   :  { %1200 = vmatmul.f32.gmra.mxu2 %v1138_v36  ;;  %1242 = vmatmul.f32.gmra.mxu3 %v1138_v36  ;;  %v1394_v17 = vmul.f32 %v3429_v5, %v1138_v36  ;;  %v1390_v54 = vmul.f32 %v3453_v27, %v1138_v36  ;;  %v1386_v62 = vmul.f32 %v3477_v55, %v1138_v36 }
 0x886   :  { %v1382_v26 = vmul.f32 %v3501_v7, %v1138_v36  ;;  %v3543_v36 = vld [vmem:[%s3947_s15 + $0x18] sm:$0xff] }
 0x887   :  { %1400 = vmatpush.msra.mxu1 %v1394_v17 }
 0x889   :  { %1401 = vmatpush.msra.mxu1 %v1393_v9 }
 0x88b   :  { %1402 = vmatpush.msra.mxu1 %v1392_v52 }
 0x88d   :  { %1403 = vmatpush.msra.mxu1 %v1391_v11 }
 0x88f   :  { %1404 = vmatpush.msra.mxu1 %v1390_v54 }
 0x891   :  { %1405 = vmatpush.msra.mxu1 %v1389_v60 }
 0x893   :  { %1406 = vmatpush.msra.mxu1 %v1388_v13 }
 0x895   :  { %1407 = vmatpush.msra.mxu1 %v1387_v58 }
 0x897   :  { %1408 = vmatpush.msra.mxu1 %v1386_v62 }
 0x899   :  { %1409 = vmatpush.msra.mxu1 %v1385_v8 }
 0x89b   :  { %1410 = vmatpush.msra.mxu1 %v1384_v20 }
 0x89d   :  { %1411 = vmatpush.msra.mxu1 %v1383_v53 }
 0x89f   :  { %1412 = vmatpush.msra.mxu1 %v1382_v26 }
 0x8a1   :  { %1413 = vmatpush.msra.mxu1 %v1381_v40 }
 0x8a3   :  { %1414 = vmatpush.msra.mxu1 %v1380_v29 }
 0x8a5   :  { %1415 = vmatpush.msra.mxu1 %v1379_v46 }
 0x8f0   :  { %v1192_v34 = vpop.f32.mrf.mxu2  ;;  %v1234_v35 = vpop.f32.mrf.mxu3 }
 0x8f1   :  { %v1204_v41 = vmul.f32 %v3531_v38, %v1192_v34 }
 0x8f8   :  { %v1195_v33 = vpop.f32.mrf.mxu2  ;;  %v1237_v49 = vpop.f32.mrf.mxu3 }
 0x8f9   :  { %v1205_v37 = vmul.f32 %v3525_v63, %v1195_v33 }
 0x8fb   :  { %v1208_v47 = vadd.f32 %v1205_v37, %v1204_v41 }
 0x900   :  { %v1198_v57 = vpop.f32.mrf.mxu2  ;;  %v1240_v54 = vpop.f32.mrf.mxu3 }
 0x901   :  { %v1206_v39 = vmul.f32 %v3537_v32, %v1198_v57  ;;  %v3549_v57 = vld [vmem:[%s3967_s27 + $0x10] sm:$0xff] }
 0x903   :  { %v1209_v24 = vadd.f32 %v1208_v47, %v1206_v39 }
 0x908   :  { %v1201_v15 = vpop.f32.mrf.mxu2  ;;  %v1243_v26 = vpop.f32.mrf.mxu3 }
 0x909   :  { %v1207_v17 = vmul.f32 %v3543_v36, %v1201_v15 }
 0x90b   :  { %v1210_v9 = vadd.f32 %v1209_v24, %v1207_v17 }
 0x90d   :  { %v1211_v52 = vrot.slane %v1210_v9, 4 }
 0x90f   :  { %v1212_v11 = vadd.f32 %v1211_v52, %v1210_v9  ;;  %v3567_v9 = vld [vmem:[%s3967_s27 + $0x18] sm:$0xff] }
 0x911   :  { %v1213_v60 = vrot.slane %v1212_v11, 2 }
 0x913   :  { %v1214_v13 = vadd.f32 %v1213_v60, %v1212_v11 }
 0x915   :  { %v1215_v58 = vrot.slane %v1214_v13, 1 }
 0x917   :  { %v1216_v62 = vadd.f32 %v1215_v58, %v1214_v13 }
 0x919   :  { %v1241_v8 = vadd.f32 %v1240_v54, %v1216_v62  ;;  %v1238_v20 = vadd.f32 %v1237_v49, %v1216_v62  ;;  %v1235_v53 = vadd.f32 %v1234_v35, %v1216_v62  ;;  %v1244_v29 = vadd.f32 %v1243_v26, %v1216_v62  ;;  %v3555_v35 = vld [vmem:[%s3967_s27 + $0x8] sm:$0xff]  ;;  %v3561_v49 = vld [vmem:[%s3967_s27] sm:$0xff] }
 0x91a   :  { %v3573_v26 = vld [vmem:[%s3968_s24] sm:$0xff] }
 0x91b   :  { %vm1248_vm7 = vcmp.gt.f32.partialorder %v1241_v8, 0.0  ;;  %v1252_v40 = vmul.f32 0.2, %v1241_v8  ;;  %vm1247_vm8 = vcmp.gt.f32.partialorder %v1238_v20, 0.0  ;;  %v1251_v46 = vmul.f32 0.2, %v1238_v20 }
 0x91c   :  { %vm1246_vm9 = vcmp.gt.f32.partialorder %v1235_v53, 0.0  ;;  %v1250_v34 = vmul.f32 0.2, %v1235_v53  ;;  %v1253_v24 = vmul.f32 0.2, %v1244_v29  ;;  %vm1249_vm10 = vcmp.gt.f32.partialorder %v1244_v29, 0.0 }
 0x91d   :  { %v1256_v33 = vsel %vm1248_vm7, %v1241_v8, %v1252_v40  ;;  %v1255_v41 = vsel %vm1247_vm8, %v1238_v20, %v1251_v46 }
 0x91e   :  { %v1260_v37 = vadd.f32 %v3549_v57, %v1256_v33  ;;  %v1254_v39 = vsel %vm1246_vm9, %v1235_v53, %v1250_v34  ;;  %v1259_v47 = vadd.f32 %v3555_v35, %v1255_v41  ;;  %v1257_v17 = vsel %vm1249_vm10, %v1244_v29, %v1253_v24  ;;  %v3579_v41 = vld [vmem:[%s3968_s24 + $0x8] sm:$0xff] }
 0x91f   :  { %v1258_v15 = vadd.f32 %v3561_v49, %v1254_v39  ;;  %v1261_v52 = vadd.f32 %v3567_v9, %v1257_v17  ;;  %3973 = vst [vmem:[#allocation11_spill] sm:$0xff] %v3579_v41 }
 0x920   :  { %1266 = vmax.xlane.f32.xlu1 %v1260_v37  ;;  %1264 = vmax.xlane.f32.xlu0 %v1259_v47 }
 0x921   :  { %1262 = vmax.xlane.f32.xlu2 %v1258_v15 }
 0x929   :  { %1268 = vmax.xlane.f32.xlu2 %v1261_v52 }
 0x993   :  { %v1265_v54 = vpop.xlane.xlu0 %1264  ;;  %v1267_v8 = vpop.xlane.xlu1 %1266 }
 0x994   :  { %v1263_v11 = vpop.xlane.xlu2 %1262  ;;  %v1271_v58 = vsub.f32 %v1259_v47, %v1265_v54  ;;  %v1272_v53 = vsub.f32 %v1260_v37, %v1267_v8 }
 0x995   :  { %v1270_v60 = vsub.f32 %v1258_v15, %v1263_v11  ;;  %v3588_v15 = vld [vmem:[%s3968_s24 + $0x10] sm:$0xff] }
 0x996   :  { %v1276_v62 = vmul.f32 1.442695, %v1271_v58  ;;  %v1278_v29 = vmul.f32 1.442695, %v1272_v53  ;;  %3974 = vst [vmem:[#allocation12_spill] sm:$0xff] %v3588_v15 }
 0x997   :  { %v1274_v13 = vmul.f32 1.442695, %v1270_v60 }
 0x999   :  { %2333 = vpow2.f32 %v1274_v13 }
 0x99a   :  { %2335 = vpow2.f32 %v1276_v62 }
 0x99b   :  { %2337 = vpow2.f32 %v1278_v29 }
 0x99c   :  { %v1269_v46 = vpop.xlane.xlu2 %1268 }
 0x99d   :  { %v1273_v33 = vsub.f32 %v1261_v52, %v1269_v46  ;;  %v3597_v52 = vld [vmem:[%s3968_s24 + $0x18] sm:$0xff] }
 0x99e   :  { %3975 = vst [vmem:[#allocation13_spill] sm:$0xff] %v3597_v52 }
 0x99f   :  { %v2334_v20 = vpop.eup %2333  ;;  %v1280_v39 = vmul.f32 1.442695, %v1273_v33  ;;  %v2218_v33 = vld [vmem:[%s3941_s9 + $0x170] sm:$0xff] }
 0x9a0   :  { %v1282_v40 = vmul.f32 %v3573_v26, %v2334_v20  ;;  %v2336_v34 = vpop.eup %2335 }
 0x9a1   :  { %v3582_v37 = vmul.f32 %v3579_v41, %v2336_v34  ;;  %v2338_v47 = vpop.eup %2337  ;;  %2339 = vpow2.f32 %v1280_v39  ;;  %v2219_v34 = vld [vmem:[%s3941_s9 + $0x178] sm:$0xff] }
 0x9a2   :  { %1302 = vmatmul.f32.vlgmr.msra.gmra.mxu0 %v1282_v40  ;;  %v3591_v24 = vmul.f32 %v3588_v15, %v2338_v47  ;;  %1451 = vmatpush.msra.mxu2 %v2219_v34  ;;  %v2216_v15 = vld [vmem:[%s3941_s9 + $0x160] sm:$0xff]  ;;  %v2215_v41 = vld [vmem:[%s3941_s9 + $0x158] sm:$0xff] }
 0x9a4   :  { %1452 = vmatpush.msra.mxu2 %v2218_v33 }
 0x9a7   :  { %v2340_v17 = vpop.eup %2339 }
 0x9a8   :  { %v3600_v11 = vmul.f32 %v3597_v52, %v2340_v17  ;;  %v2217_v17 = vld [vmem:[%s3941_s9 + $0x168] sm:$0xff] }
 0x9a9   :  { %1453 = vmatpush.msra.mxu2 %v2217_v17 }
 0x9aa   :  { %1305 = vmatmul.f32.gmra.mxu0 %v3582_v37 }
 0x9ab   :  { %1454 = vmatpush.msra.mxu2 %v2216_v15 }
 0x9ad   :  { %1455 = vmatpush.msra.mxu2 %v2215_v41 }
 0x9b2   :  { %1308 = vmatmul.f32.gmra.mxu0 %v3591_v24 }
 0x9ba   :  { %1311 = vmatmul.f32.gmra.mxu0 %v3600_v11 }
 0xa1f   :  { %v1303_v54 = vpop.f32.mrf.mxu0 }
 0xa20   :  { %v1315_v60 = vmax.f32 %v1303_v54, 1e-30 }
 0xa22   :  { %2341 = vrcp.f32 %v1315_v60  ;;  %v1330_v53 = vand.u32 2147483648, %v1315_v60  ;;  %v1328_v46 = vand.u32 2147483647, %v1315_v60  ;;  %vm1324_vm12 = vweird.f32 %v1315_v60 }
 0xa24   :  { %vm1329_vm14 = vcmp.eq.f32.partialorder %v1328_v46, 8.507059e+37  ;;  %v2214_v46 = vld [vmem:[%s3941_s9 + $0x150] sm:$0xff] }
 0xa25   :  { %1456 = vmatpush.msra.mxu2 %v2214_v46 }
 0xa27   :  { %v1306_v13 = vpop.f32.mrf.mxu0 }
 0xa28   :  { %v2342_v58 = vpop.eup %2341  ;;  %v1316_v62 = vmax.f32 %v1306_v13, 1e-30 }
 0xa29   :  { %v1320_v8 = vmul.f32 %v2342_v58, %v1315_v60  ;;  %vm1325_vm11 = vweird.f32 %v2342_v58 }
 0xa2a   :  { %2343 = vrcp.f32 %v1316_v62  ;;  %vm1326_vm13 = vmor %vm1324_vm12, %vm1325_vm11  ;;  %vm1339_vm2 = vweird.f32 %v1316_v62 }
 0xa2b   :  { %v1321_v20 = vsub.f32 1.0, %v1320_v8  ;;  %v1331_v8 = vor.u32 1.1754944e-38, %v1330_v53 }
 0xa2d   :  { %v1322_v29 = vmul.f32 %v2342_v58, %v1321_v20 }
 0xa2f   :  { %v1309_v39 = vpop.f32.mrf.mxu0  ;;  %v1323_v47 = vadd.f32 %v2342_v58, %v1322_v29 }
 0xa30   :  { %v2344_v54 = vpop.eup %2343  ;;  %v1317_v13 = vmax.f32 %v1309_v39, 1e-30  ;;  %v1345_v39 = vand.u32 2147483648, %v1316_v62 }
 0xa31   :  { %v1335_v20 = vmul.f32 %v2344_v54, %v1316_v62  ;;  %v1327_v52 = vsel %vm1326_vm13, %v2342_v58, %v1323_v47  ;;  %vm1340_vm15 = vweird.f32 %v2344_v54  ;;  %v1343_v58 = vand.u32 2147483647, %v1316_v62 }
 0xa32   :  { %2345 = vrcp.f32 %v1317_v13  ;;  %v1332_v60 = vsel %vm1329_vm14, %v1331_v8, %v1327_v52  ;;  %vm1341_vm3 = vmor %vm1339_vm2, %vm1340_vm15  ;;  %v1346_v15 = vor.u32 1.1754944e-38, %v1345_v39  ;;  %vm1354_vm6 = vweird.f32 %v1317_v13 }
 0xa33   :  { %v1333_v29 = vmul.f32 %v1332_v60, %v1282_v40  ;;  %v1336_v34 = vsub.f32 1.0, %v1335_v20  ;;  %v2213_v40 = vld [vmem:[%s3941_s9 + $0x148] sm:$0xff]  ;;  %vm1344_vm4 = vcmp.eq.f32.partialorder %v1343_v58, 8.507059e+37  ;;  %v2212_v60 = vld [vmem:[%s3941_s9 + $0x140] sm:$0xff]  ;;  %v2210_v58 = vld [vmem:[%s3941_s9 + $0x130] sm:$0xff] }
 0xa34   :  { %1457 = vmatpush.msra.mxu2 %v2213_v40 }
 0xa35   :  { %1416 = vmatmul.f32.vlgmr.msra.gmra.mxu1 %v1333_v29  ;;  %v1337_v53 = vmul.f32 %v2344_v54, %v1336_v34  ;;  %v2211_v34 = vld [vmem:[%s3941_s9 + $0x138] sm:$0xff] }
 0xa36   :  { %1458 = vmatpush.msra.mxu2 %v2212_v60 }
 0xa37   :  { %v1312_v33 = vpop.f32.mrf.mxu0  ;;  %v1338_v52 = vadd.f32 %v2344_v54, %v1337_v53  ;;  %v1360_v53 = vand.u32 2147483648, %v1317_v13 }
 0xa38   :  { %v2346_v47 = vpop.eup %2345  ;;  %v1318_v17 = vmax.f32 %v1312_v33, 1e-30  ;;  %1459 = vmatpush.msra.mxu2 %v2211_v34  ;;  %v2206_v34 = vld [vmem:[%s3941_s9 + $0x110] sm:$0xff] }
 0xa39   :  { %v1350_v8 = vmul.f32 %v2346_v47, %v1317_v13  ;;  %v1342_v20 = vsel %vm1341_vm3, %v2344_v54, %v1338_v52  ;;  %vm1355_vm5 = vweird.f32 %v2346_v47  ;;  %v1358_v54 = vand.u32 2147483647, %v1317_v13 }
 0xa3a   :  { %2347 = vrcp.f32 %v1318_v17  ;;  %v1347_v41 = vsel %vm1344_vm4, %v1346_v15, %v1342_v20  ;;  %vm1356_vm7 = vmor %vm1354_vm6, %vm1355_vm5  ;;  %v1361_v52 = vor.u32 1.1754944e-38, %v1360_v53  ;;  %1460 = vmatpush.msra.mxu2 %v2210_v58  ;;  %vm1369_vm10 = vweird.f32 %v1318_v17 }
 0xa3b   :  { %v1348_v62 = vmul.f32 %v1347_v41, %v3582_v37  ;;  %v1351_v29 = vsub.f32 1.0, %v1350_v8  ;;  %v2209_v37 = vld [vmem:[%s3941_s9 + $0x128] sm:$0xff]  ;;  %vm1359_vm8 = vcmp.eq.f32.partialorder %v1358_v54, 8.507059e+37  ;;  %v2208_v8 = vld [vmem:[%s3941_s9 + $0x120] sm:$0xff]  ;;  %v2207_v41 = vld [vmem:[%s3941_s9 + $0x118] sm:$0xff] }
 0xa3c   :  { %1461 = vmatpush.msra.mxu2 %v2209_v37  ;;  %v2204_v37 = vld [vmem:[%s3941_s9 + $0x100] sm:$0xff] }
 0xa3d   :  { %1419 = vmatmul.f32.gmra.mxu1 %v1348_v62  ;;  %v1352_v39 = vmul.f32 %v2346_v47, %v1351_v29  ;;  %v1375_v62 = vand.u32 2147483648, %v1318_v17 }
 0xa3e   :  { %1462 = vmatpush.msra.mxu2 %v2208_v8 }
 0xa3f   :  { %v1353_v46 = vadd.f32 %v2346_v47, %v1352_v39  ;;  %v1376_v39 = vor.u32 1.1754944e-38, %v1375_v62 }
 0xa40   :  { %v2348_v33 = vpop.eup %2347  ;;  %1463 = vmatpush.msra.mxu2 %v2207_v41 }
 0xa41   :  { %v1365_v40 = vmul.f32 %v2348_v33, %v1318_v17  ;;  %v1357_v15 = vsel %vm1356_vm7, %v2346_v47, %v1353_v46  ;;  %vm1370_vm9 = vweird.f32 %v2348_v33  ;;  %v1373_v47 = vand.u32 2147483647, %v1318_v17 }
 0xa42   :  { %v1362_v20 = vsel %vm1359_vm8, %v1361_v52, %v1357_v15  ;;  %vm1371_vm11 = vmor %vm1369_vm10, %vm1370_vm9  ;;  %1464 = vmatpush.msra.mxu2 %v2206_v34 }
 0xa43   :  { %v1363_v60 = vmul.f32 %v1362_v20, %v3591_v24  ;;  %v1366_v13 = vsub.f32 1.0, %v1365_v40  ;;  %v2205_v24 = vld [vmem:[%s3941_s9 + $0x108] sm:$0xff]  ;;  %vm1374_vm12 = vcmp.eq.f32.partialorder %v1373_v47, 8.507059e+37 }
 0xa44   :  { %1465 = vmatpush.msra.mxu2 %v2205_v24 }
 0xa45   :  { %1422 = vmatmul.f32.gmra.mxu1 %v1363_v60  ;;  %v1367_v29 = vmul.f32 %v2348_v33, %v1366_v13 }
 0xa46   :  { %1466 = vmatpush.msra.mxu2 %v2204_v37 }
 0xa47   :  { %v1368_v53 = vadd.f32 %v2348_v33, %v1367_v29 }
 0xa48   :  { %1744 = vmatpush.msrb.mxu2 %v3243_v43  ;;  %v2286_v43 = vld [vmem:[%s3940_s8 + $0x2] ss:$0 sm:$0xff] }
 0xa49   :  { %v1372_v54 = vsel %vm1371_vm11, %v2348_v33, %v1368_v53 }
 0xa4a   :  { %v1377_v58 = vsel %vm1374_vm12, %v1376_v39, %v1372_v54  ;;  %1745 = vmatpush.msrb.mxu2 %v3249_v10 }
 0xa4b   :  { %v1378_v46 = vmul.f32 %v1377_v58, %v3600_v11 }
 0xa4c   :  { %1746 = vmatpush.msrb.mxu2 %v3255_v0 }
 0xa4d   :  { %1425 = vmatmul.f32.gmra.mxu1 %v1378_v46 }
 0xa4e   :  { %1747 = vmatpush.msrb.mxu2 %v3261_v23 }
 0xa50   :  { %1748 = vmatpush.msrb.mxu2 %v3267_v12 }
 0xa52   :  { %1749 = vmatpush.msrb.mxu2 %v3273_v50 }
 0xa54   :  { %1750 = vmatpush.msrb.mxu2 %v3279_v14 }
 0xa56   :  { %1751 = vmatpush.msrb.mxu2 %v3285_v45 }
 0xa58   :  { %1752 = vmatpush.msrb.mxu2 %v3291_v16 }
 0xa5a   :  { %1753 = vmatpush.msrb.mxu2 %v3297_v22 }
 0xa5c   :  { %1754 = vmatpush.msrb.mxu2 %v3303_v18 }
 0xa5e   :  { %1755 = vmatpush.msrb.mxu2 %v3309_v1  ;;  %v2287_v1 = vld [vmem:[%s3942_s10 + $0x2] ss:$0 sm:$0xff] }
 0xa60   :  { %1756 = vmatpush.msrb.mxu2 %v3315_v61 }
 0xa62   :  { %1757 = vmatpush.msrb.mxu2 %v3324_v25 }
 0xa64   :  { %1758 = vmatpush.msrb.mxu2 %v3330_v19 }
 0xa66   :  { %1759 = vmatpush.msrb.mxu2 %v3336_v48 }
 0xab2   :  { %v1417_v10 = vpop.f32.mrf.mxu1 }
 0xab3   :  { %v1418_v0 = vadd.f32 %v2286_v43, %v1417_v10 }
 0xab5   :  { %1467 = vmatmul.f32.vlgmr.msra.gmra.mxu2 %v1418_v0 }
 0xaba   :  { %v1420_v23 = vpop.f32.mrf.mxu1 }
 0xabb   :  { %v1421_v12 = vadd.f32 %v2286_v43, %v1420_v23 }
 0xabd   :  { %1470 = vmatmul.f32.gmra.mxu2 %v1421_v12 }
 0xac2   :  { %v1423_v50 = vpop.f32.mrf.mxu1 }
 0xac3   :  { %v1424_v14 = vadd.f32 %v2286_v43, %v1423_v50 }
 0xac5   :  { %1473 = vmatmul.f32.gmra.mxu2 %v1424_v14 }
 0xaca   :  { %v1426_v45 = vpop.f32.mrf.mxu1 }
 0xacb   :  { %v1427_v16 = vadd.f32 %v2286_v43, %v1426_v45 }
 0xacd   :  { %1476 = vmatmul.f32.gmra.mxu2 %v1427_v16 }
 0xb38   :  { %v1468_v22 = vpop.f32.mrf.mxu2 }
 0xb39   :  { %v1469_v19 = vadd.f32 %v2287_v1, %v1468_v22 }
 0xb3b   :  { %v1480_v17 = vmax.f32 %v1469_v19, 0.0  ;;  %v2226_v19 = vld [vmem:[%s3937_s5 + $0x78] sm:$0xff] }
 0xb3c   :  { %1582 = vmatpush.msra.mxu3 %v2226_v19  ;;  %v2241_v19 = vld [vmem:[%s3938_s6 + $0x1d0] sm:$0xff] }
 0xb3d   :  { %v1484_v15 = vsel %vm179_vm1, %v1480_v17, 0.0 }
 0xb40   :  { %v1471_v18 = vpop.f32.mrf.mxu2 }
 0xb41   :  { %v1472_v61 = vadd.f32 %v2287_v1, %v1471_v18 }
 0xb43   :  { %v1481_v11 = vmax.f32 %v1472_v61, 0.0 }
 0xb45   :  { %v1485_v52 = vsel %vm179_vm1, %v1481_v11, 0.0 }
 0xb46   :  { %v1486_v60 = vadd.f32 %v1485_v52, %v1484_v15  ;;  %v2223_v52 = vld [vmem:[%s3937_s5 + $0x60] sm:$0xff] }
 0xb48   :  { %v1474_v25 = vpop.f32.mrf.mxu2 }
 0xb49   :  { %v1475_v48 = vadd.f32 %v2287_v1, %v1474_v25 }
 0xb4b   :  { %v1482_v33 = vmax.f32 %v1475_v48, 0.0 }
 0xb4d   :  { %v1487_v8 = vsel %vm179_vm1, %v1482_v33, 0.0 }
 0xb4e   :  { %v1488_v41 = vadd.f32 %v1487_v8, %v1486_v60 }
 0xb50   :  { %v1477_v40 = vpop.f32.mrf.mxu2 }
 0xb51   :  { %v1478_v20 = vadd.f32 %v2287_v1, %v1477_v40 }
 0xb53   :  { %v1483_v13 = vmax.f32 %v1478_v20, 0.0 }
 0xb55   :  { %v1489_v62 = vsel %vm179_vm1, %v1483_v13, 0.0 }
 0xb56   :  { %v1490_v29 = vadd.f32 %v1489_v62, %v1488_v41 }
 0xb58   :  { %v1491_v47 = vrot.slane %v1490_v29, 4 }
 0xb5a   :  { %v1492_v34 = vadd.f32 %v1491_v47, %v1490_v29 }
 0xb5c   :  { %v1493_v53 = vrot.slane %v1492_v34, 2 }
 0xb5e   :  { %v1494_v24 = vadd.f32 %v1493_v53, %v1492_v34  ;;  %v3709_v53 = vld [vmem:[%s3943_s11 + $0x2] ss:$0 sm:$0xff] }
 0xb60   :  { %v1495_v39 = vrot.slane %v1494_v24, 1 }
 0xb62   :  { %v1496_v54 = vadd.f32 %v1495_v39, %v1494_v24  ;;  %v1632_v24 = vld [vmem:[#allocation2 + $0x1f8] sm:$0xff] }
 0xb63   :  { %v2246_v39 = vld [vmem:[%s3938_s6 + $0x1f8] sm:$0xff]  ;;  %1633 = vmatpush.msrb.mxu0 %v1632_v24 }
 0xb64   :  { %v1497_v58 = vmul.f32 %v1496_v54, %v3052_v42  ;;  %v1631_v54 = vld [vmem:[#allocation2 + $0x1f0] sm:$0xff]  ;;  %1675 = vmatpush.msrb.mxu1 %v2246_v39  ;;  %v1620_v24 = vld [vmem:[#allocation2 + $0x198] sm:$0xff] }
 0xb65   :  { %1634 = vmatpush.msrb.mxu0 %v1631_v54  ;;  %v2234_v39 = vld [vmem:[%s3938_s6 + $0x198] sm:$0xff]  ;;  %v1619_v54 = vld [vmem:[#allocation2 + $0x190] sm:$0xff] }
 0xb66   :  { %v1498_v46 = vsub.f32 %v1480_v17, %v1497_v58  ;;  %v1499_v37 = vsub.f32 %v1481_v11, %v1497_v58  ;;  %v3681_v43 = vsub.f32 %v1482_v33, %v1497_v58  ;;  %v3683_v10 = vsub.f32 %v1483_v13, %v1497_v58  ;;  %v2225_v11 = vld [vmem:[%s3937_s5 + $0x70] sm:$0xff]  ;;  %v2224_v17 = vld [vmem:[%s3937_s5 + $0x68] sm:$0xff] }
 0xb67   :  { %1583 = vmatpush.msra.mxu3 %v2225_v11  ;;  %v1626_v11 = vld [vmem:[#allocation2 + $0x1c8] sm:$0xff] }
 0xb68   :  { %v1502_v0 = vmul.f32 %v1498_v46, %v1498_v46  ;;  %v1503_v23 = vmul.f32 %v1499_v37, %v1499_v37  ;;  %v1504_v12 = vmul.f32 %v3681_v43, %v3681_v43  ;;  %v1505_v50 = vmul.f32 %v3683_v10, %v3683_v10 }
 0xb69   :  { %1584 = vmatpush.msra.mxu3 %v2224_v17  ;;  %v1625_v17 = vld [vmem:[#allocation2 + $0x1c0] sm:$0xff] }
 0xb6a   :  { %v1506_v14 = vsel %vm179_vm1, %v1502_v0, 0.0  ;;  %v1507_v45 = vsel %vm179_vm1, %v1503_v23, 0.0  ;;  %v1509_v22 = vsel %vm179_vm1, %v1504_v12, 0.0  ;;  %v1511_v1 = vsel %vm179_vm1, %v1505_v50, 0.0  ;;  %v2245_v0 = vld [vmem:[%s3938_s6 + $0x1f0] sm:$0xff]  ;;  %v1630_v50 = vld [vmem:[#allocation2 + $0x1e8] sm:$0xff] }
 0xb6b   :  { %v1508_v16 = vadd.f32 %v1507_v45, %v1506_v14  ;;  %1585 = vmatpush.msra.mxu3 %v2223_v52  ;;  %v3720_v12 = vld [vmem:[%s3944_s12 + $0x2] ss:$0 sm:$0xff]  ;;  %v2244_v14 = vld [vmem:[%s3938_s6 + $0x1e8] sm:$0xff]  ;;  %1676 = vmatpush.msrb.mxu1 %v2245_v0  ;;  %v2233_v0 = vld [vmem:[%s3938_s6 + $0x190] sm:$0xff] }
 0xb6c   :  { %1635 = vmatpush.msrb.mxu0 %v1630_v50  ;;  %v1617_v50 = vld [vmem:[#allocation2 + $0x180] sm:$0xff] }
 0xb6d   :  { %v1510_v18 = vadd.f32 %v1509_v22, %v1508_v16  ;;  %v1629_v16 = vld [vmem:[#allocation2 + $0x1e0] sm:$0xff]  ;;  %1677 = vmatpush.msrb.mxu1 %v2244_v14 }
 0xb6e   :  { %v2243_v22 = vld [vmem:[%s3938_s6 + $0x1e0] sm:$0xff]  ;;  %1636 = vmatpush.msrb.mxu0 %v1629_v16 }
 0xb6f   :  { %v1512_v61 = vadd.f32 %v1511_v1, %v1510_v18  ;;  %v1628_v1 = vld [vmem:[#allocation2 + $0x1d8] sm:$0xff]  ;;  %1678 = vmatpush.msrb.mxu1 %v2243_v22 }
 0xb70   :  { %1637 = vmatpush.msrb.mxu0 %v1628_v1 }
 0xb71   :  { %v1513_v25 = vrot.slane %v1512_v61, 4 }
 0xb73   :  { %v1514_v48 = vadd.f32 %v1513_v25, %v1512_v61  ;;  %v2242_v61 = vld [vmem:[%s3938_s6 + $0x1d8] sm:$0xff]  ;;  %v1627_v25 = vld [vmem:[#allocation2 + $0x1d0] sm:$0xff] }
 0xb74   :  { %1679 = vmatpush.msrb.mxu1 %v2242_v61  ;;  %1638 = vmatpush.msrb.mxu0 %v1627_v25 }
 0xb75   :  { %v1515_v33 = vrot.slane %v1514_v48, 2 }
 0xb76   :  { %1680 = vmatpush.msrb.mxu1 %v2241_v19  ;;  %1639 = vmatpush.msrb.mxu0 %v1626_v11 }
 0xb77   :  { %v1516_v40 = vadd.f32 %v1515_v33, %v1514_v48  ;;  %v2239_v33 = vld [vmem:[%s3938_s6 + $0x1c0] sm:$0xff] }
 0xb78   :  { %1640 = vmatpush.msrb.mxu0 %v1625_v17 }
 0xb79   :  { %v1517_v15 = vrot.slane %v1516_v40, 1 }
 0xb7b   :  { %v1518_v8 = vadd.f32 %v1517_v15, %v1516_v40  ;;  %v1624_v15 = vld [vmem:[#allocation2 + $0x1b8] sm:$0xff] }
 0xb7c   :  { %1641 = vmatpush.msrb.mxu0 %v1624_v15 }
 0xb7d   :  { %v1519_v20 = vmul.f32 %v1518_v8, %v3052_v42  ;;  %v2238_v8 = vld [vmem:[%s3938_s6 + $0x1b8] sm:$0xff] }
 0xb7f   :  { %v1520_v60 = vadd.f32 1e-05, %v1519_v20  ;;  %v1623_v20 = vld [vmem:[#allocation2 + $0x1b0] sm:$0xff] }
 0xb80   :  { %1642 = vmatpush.msrb.mxu0 %v1623_v20 }
 0xb81   :  { %2349 = vrsqrt.f32 %v1520_v60  ;;  %vm1527_vm14 = vweird.f32 %v1520_v60 }
 0xb87   :  { %v2350_v13 = vpop.eup %2349 }
 0xb88   :  { %v1522_v41 = vmul.f32 %v2350_v13, %v1520_v60  ;;  %vm1528_vm13 = vweird.f32 %v2350_v13  ;;  %v2237_v60 = vld [vmem:[%s3938_s6 + $0x1b0] sm:$0xff] }
 0xb89   :  { %vm1529_vm15 = vmor %vm1527_vm14, %vm1528_vm13 }
 0xb8a   :  { %v1523_v62 = vmul.f32 %v2350_v13, %v1522_v41  ;;  %v1622_v41 = vld [vmem:[#allocation2 + $0x1a8] sm:$0xff] }
 0xb8b   :  { %1643 = vmatpush.msrb.mxu0 %v1622_v41 }
 0xb8c   :  { %v1524_v29 = vmul.f32 0.5, %v1523_v62  ;;  %v1621_v62 = vld [vmem:[#allocation2 + $0x1a0] sm:$0xff] }
 0xb8d   :  { %1644 = vmatpush.msrb.mxu0 %v1621_v62 }
 0xb8e   :  { %v1525_v47 = vsub.f32 1.5, %v1524_v29  ;;  %v2235_v29 = vld [vmem:[%s3938_s6 + $0x1a0] sm:$0xff] }
 0xb8f   :  { %1645 = vmatpush.msrb.mxu0 %v1620_v24 }
 0xb90   :  { %v1526_v34 = vmul.f32 %v2350_v13, %v1525_v47 }
 0xb91   :  { %1646 = vmatpush.msrb.mxu0 %v1619_v54 }
 0xb92   :  { %v1530_v58 = vsel %vm1529_vm15, %v2350_v13, %v1526_v34 }
 0xb93   :  { %v1531_v23 = vmul.f32 %v1530_v58, %v1498_v46  ;;  %v1532_v18 = vmul.f32 %v1530_v58, %v1499_v37  ;;  %v2240_v37 = vld [vmem:[%s3938_s6 + $0x1c8] sm:$0xff]  ;;  %v1533_v40 = vmul.f32 %v1530_v58, %v3681_v43  ;;  %v1534_v47 = vmul.f32 %v1530_v58, %v3683_v10 }
 0xb94   :  { %1681 = vmatpush.msrb.mxu1 %v2240_v37  ;;  %v2236_v43 = vld [vmem:[%s3938_s6 + $0x1a8] sm:$0xff] }
 0xb95   :  { %v1540_v45 = vmul.f32 %v3709_v53, %v1531_v23  ;;  %v1541_v48 = vmul.f32 %v3709_v53, %v1532_v18  ;;  %v1542_v13 = vmul.f32 %v3709_v53, %v1533_v40  ;;  %v1543_v10 = vmul.f32 %v3709_v53, %v1534_v47  ;;  %v1618_v58 = vld [vmem:[#allocation2 + $0x188] sm:$0xff] }
 0xb96   :  { %1682 = vmatpush.msrb.mxu1 %v2239_v33  ;;  %v2232_v23 = vld [vmem:[%s3938_s6 + $0x188] sm:$0xff]  ;;  %1647 = vmatpush.msrb.mxu0 %v1618_v58 }
 0xb97   :  { %v1549_v46 = vadd.f32 %v3720_v12, %v1540_v45  ;;  %v1550_v52 = vadd.f32 %v3720_v12, %v1541_v48  ;;  %v1551_v34 = vadd.f32 %v3720_v12, %v1542_v13  ;;  %v1552_v14 = vadd.f32 %v3720_v12, %v1543_v10  ;;  %v2231_v45 = vld [vmem:[%s3938_s6 + $0x180] sm:$0xff] }
 0xb98   :  { %1683 = vmatpush.msrb.mxu1 %v2238_v8  ;;  %1648 = vmatpush.msrb.mxu0 %v1617_v50 }
 0xb99   :  { %2227 = vmatmul.msk.f32.vlgmr.msra.gmra.mxu3 %vm179_vm1, %v1549_v46 }
 0xb9a   :  { %1684 = vmatpush.msrb.mxu1 %v2237_v60 }
 0xb9c   :  { %1685 = vmatpush.msrb.mxu1 %v2236_v43 }
 0xb9e   :  { %1686 = vmatpush.msrb.mxu1 %v2235_v29 }
 0xba0   :  { %1687 = vmatpush.msrb.mxu1 %v2234_v39 }
 0xba1   :  { %2228 = vmatmul.msk.f32.gmra.mxu3 %vm179_vm1, %v1550_v52 }
 0xba2   :  { %1688 = vmatpush.msrb.mxu1 %v2233_v0 }
 0xba4   :  { %1689 = vmatpush.msrb.mxu1 %v2232_v23 }
 0xba6   :  { %1690 = vmatpush.msrb.mxu1 %v2231_v45 }
 0xba9   :  { %2229 = vmatmul.msk.f32.gmra.mxu3 %vm179_vm1, %v1551_v34 }
 0xbb1   :  { %2230 = vmatmul.msk.f32.gmra.mxu3 %vm179_vm1, %v1552_v14 }
 0xc1c   :  { %v1587_v53 = vpop.f32.mrf.mxu3 }
 0xc1d   :  { %1649 = vmatmul.f32.vlgmr.msrb.gmra.mxu0 %v1587_v53  ;;  %1691 = vmatmul.f32.vlgmr.msrb.gmra.mxu1 %v1587_v53  ;;  %v1849_v61 = vmul.f32 %v3447_v59, %v1587_v53 }
 0xc24   :  { %v1590_v16 = vpop.f32.mrf.mxu3 }
 0xc25   :  { %1652 = vmatmul.f32.gmra.mxu0 %v1590_v16  ;;  %1694 = vmatmul.f32.gmra.mxu1 %v1590_v16  ;;  %v1850_v1 = vmul.f32 %v3441_v31, %v1590_v16  ;;  %v1846_v48 = vmul.f32 %v3465_v4, %v1590_v16  ;;  %v1842_v59 = vmul.f32 %v3489_v51, %v1590_v16 }
 0xc2c   :  { %v1593_v22 = vpop.f32.mrf.mxu3 }
 0xc2d   :  { %1655 = vmatmul.f32.gmra.mxu0 %v1593_v22  ;;  %1697 = vmatmul.f32.gmra.mxu1 %v1593_v22  ;;  %v1851_v18 = vmul.f32 %v3435_v3, %v1593_v22  ;;  %v1847_v19 = vmul.f32 %v3459_v2, %v1593_v22  ;;  %v1843_v31 = vmul.f32 %v3483_v6, %v1593_v22 }
 0xc2e   :  { %v1839_v4 = vmul.f32 %v3507_v21, %v1593_v22 }
 0xc34   :  { %v1596_v46 = vpop.f32.mrf.mxu3 }
 0xc35   :  { %1658 = vmatmul.f32.gmra.mxu0 %v1596_v46  ;;  %1700 = vmatmul.f32.gmra.mxu1 %v1596_v46  ;;  %v1852_v12 = vmul.f32 %v3429_v5, %v1596_v46  ;;  %v1848_v25 = vmul.f32 %v3453_v27, %v1596_v46  ;;  %v1845_v5 = vmul.f32 %v3471_v56, %v1587_v53 }
 0xc36   :  { %v1844_v3 = vmul.f32 %v3477_v55, %v1596_v46  ;;  %v1841_v27 = vmul.f32 %v3495_v30, %v1587_v53  ;;  %v1840_v2 = vmul.f32 %v3501_v7, %v1596_v46  ;;  %v1838_v56 = vmul.f32 %v3513_v28, %v1590_v16 }
 0xc37   :  { %1858 = vmatpush.msrb.mxu3 %v1852_v12  ;;  %v1837_v55 = vmul.f32 %v3519_v44, %v1587_v53 }
 0xc39   :  { %1859 = vmatpush.msrb.mxu3 %v1851_v18 }
 0xc3b   :  { %1860 = vmatpush.msrb.mxu3 %v1850_v1 }
 0xc3d   :  { %1861 = vmatpush.msrb.mxu3 %v1849_v61 }
 0xc3f   :  { %1862 = vmatpush.msrb.mxu3 %v1848_v25 }
 0xc41   :  { %1863 = vmatpush.msrb.mxu3 %v1847_v19  ;;  %v3976_v19 = vld [vmem:[#allocation11_spill] sm:$0xff] }
 0xc43   :  { %1864 = vmatpush.msrb.mxu3 %v1846_v48 }
 0xc45   :  { %1865 = vmatpush.msrb.mxu3 %v1845_v5 }
 0xc47   :  { %1866 = vmatpush.msrb.mxu3 %v1844_v3 }
 0xc49   :  { %1867 = vmatpush.msrb.mxu3 %v1843_v31  ;;  %v3977_v31 = vld [vmem:[#allocation12_spill] sm:$0xff] }
 0xc4b   :  { %1868 = vmatpush.msrb.mxu3 %v1842_v59 }
 0xc4d   :  { %1869 = vmatpush.msrb.mxu3 %v1841_v27  ;;  %v3978_v27 = vld [vmem:[#allocation13_spill] sm:$0xff] }
 0xc4f   :  { %1870 = vmatpush.msrb.mxu3 %v1840_v2 }
 0xc51   :  { %1871 = vmatpush.msrb.mxu3 %v1839_v4 }
 0xc53   :  { %1872 = vmatpush.msrb.mxu3 %v1838_v56 }
 0xc55   :  { %1873 = vmatpush.msrb.mxu3 %v1837_v55 }
 0xc9a   :  { %v1650_v6 = vpop.f32.mrf.mxu0  ;;  %v1692_v37 = vpop.f32.mrf.mxu1 }
 0xc9b   :  { %v1662_v30 = vmul.f32 %v3531_v38, %v1650_v6 }
 0xca2   :  { %v1653_v11 = vpop.f32.mrf.mxu0  ;;  %v1695_v52 = vpop.f32.mrf.mxu1 }
 0xca3   :  { %v1663_v17 = vmul.f32 %v3525_v63, %v1653_v11 }
 0xca5   :  { %v1666_v33 = vadd.f32 %v1663_v17, %v1662_v30 }
 0xcaa   :  { %v1656_v51 = vpop.f32.mrf.mxu0  ;;  %v1698_v20 = vpop.f32.mrf.mxu1 }
 0xcab   :  { %v1664_v7 = vmul.f32 %v3537_v32, %v1656_v51 }
 0xcad   :  { %v1667_v40 = vadd.f32 %v1666_v33, %v1664_v7  ;;  %v2263_v33 = vld [vmem:[%s3941_s9 + $0x1f8] sm:$0xff] }
 0xcae   :  { %1909 = vmatpush.msra.mxu0 %v2263_v33 }
 0xcb2   :  { %v1659_v21 = vpop.f32.mrf.mxu0  ;;  %v1701_v38 = vpop.f32.mrf.mxu1 }
 0xcb3   :  { %v1665_v28 = vmul.f32 %v3543_v36, %v1659_v21 }
 0xcb5   :  { %v1668_v15 = vadd.f32 %v1667_v40, %v1665_v28  ;;  %v2261_v28 = vld [vmem:[%s3941_s9 + $0x1e8] sm:$0xff] }
 0xcb7   :  { %v1669_v8 = vrot.slane %v1668_v15, 4 }
 0xcb9   :  { %v1670_v44 = vadd.f32 %v1669_v8, %v1668_v15 }
 0xcbb   :  { %v1671_v60 = vrot.slane %v1670_v44, 2 }
 0xcbd   :  { %v1672_v13 = vadd.f32 %v1671_v60, %v1670_v44 }
 0xcbf   :  { %v1673_v41 = vrot.slane %v1672_v13, 1 }
 0xcc1   :  { %v1674_v43 = vadd.f32 %v1673_v41, %v1672_v13  ;;  %v2260_v13 = vld [vmem:[%s3941_s9 + $0x1e0] sm:$0xff] }
 0xcc3   :  { %v1699_v62 = vadd.f32 %v1698_v20, %v1674_v43  ;;  %v1696_v63 = vadd.f32 %v1695_v52, %v1674_v43  ;;  %v1693_v29 = vadd.f32 %v1692_v37, %v1674_v43  ;;  %v1702_v47 = vadd.f32 %v1701_v38, %v1674_v43  ;;  %v2262_v52 = vld [vmem:[%s3941_s9 + $0x1f0] sm:$0xff] }
 0xcc4   :  { %1910 = vmatpush.msra.mxu0 %v2262_v52 }
 0xcc5   :  { %vm1706_vm2 = vcmp.gt.f32.partialorder %v1699_v62, 0.0  ;;  %v1710_v32 = vmul.f32 0.2, %v1699_v62  ;;  %vm1705_vm3 = vcmp.gt.f32.partialorder %v1696_v63, 0.0  ;;  %v1709_v34 = vmul.f32 0.2, %v1696_v63 }
 0xcc6   :  { %vm1704_vm4 = vcmp.gt.f32.partialorder %v1693_v29, 0.0  ;;  %v1708_v24 = vmul.f32 0.2, %v1693_v29  ;;  %v1711_v23 = vmul.f32 0.2, %v1702_v47  ;;  %vm1707_vm5 = vcmp.gt.f32.partialorder %v1702_v47, 0.0  ;;  %1911 = vmatpush.msra.mxu0 %v2261_v28 }
 0xcc7   :  { %v1714_v36 = vsel %vm1706_vm2, %v1699_v62, %v1710_v32  ;;  %v1713_v54 = vsel %vm1705_vm3, %v1696_v63, %v1709_v34  ;;  %v2259_v63 = vld [vmem:[%s3941_s9 + $0x1d8] sm:$0xff] }
 0xcc8   :  { %v1718_v39 = vadd.f32 %v3549_v57, %v1714_v36  ;;  %v1712_v0 = vsel %vm1704_vm4, %v1693_v29, %v1708_v24  ;;  %v1717_v10 = vadd.f32 %v3555_v35, %v1713_v54  ;;  %v1715_v50 = vsel %vm1707_vm5, %v1702_v47, %v1711_v23  ;;  %1912 = vmatpush.msra.mxu0 %v2260_v13  ;;  %v2258_v47 = vld [vmem:[%s3941_s9 + $0x1d0] sm:$0xff]  ;;  %v2257_v36 = vld [vmem:[%s3941_s9 + $0x1c8] sm:$0xff]  ;;  %v2256_v23 = vld [vmem:[%s3941_s9 + $0x1c0] sm:$0xff] }
 0xcc9   :  { %v1716_v58 = vadd.f32 %v3561_v49, %v1712_v0  ;;  %v1719_v14 = vadd.f32 %v3567_v9, %v1715_v50 }
 0xcca   :  { %1724 = vmax.xlane.f32.xlu2 %v1718_v39  ;;  %1722 = vmax.xlane.f32.xlu1 %v1717_v10 }
 0xccb   :  { %1720 = vmax.xlane.f32.xlu0 %v1716_v58  ;;  %1913 = vmatpush.msra.mxu0 %v2259_v63 }
 0xccd   :  { %1914 = vmatpush.msra.mxu0 %v2258_v47 }
 0xccf   :  { %1915 = vmatpush.msra.mxu0 %v2257_v36 }
 0xcd1   :  { %1916 = vmatpush.msra.mxu0 %v2256_v23 }
 0xcd3   :  { %1726 = vmax.xlane.f32.xlu0 %v1719_v14 }
 0xd3d   :  { %v1723_v53 = vpop.xlane.xlu1 %1722  ;;  %v1725_v12 = vpop.xlane.xlu2 %1724 }
 0xd3e   :  { %v1721_v45 = vpop.xlane.xlu0 %1720  ;;  %v1729_v57 = vsub.f32 %v1717_v10, %v1723_v53  ;;  %v1730_v18 = vsub.f32 %v1718_v39, %v1725_v12  ;;  %v2255_v53 = vld [vmem:[%s3941_s9 + $0x1b8] sm:$0xff] }
 0xd3f   :  { %v1728_v16 = vsub.f32 %v1716_v58, %v1721_v45  ;;  %1917 = vmatpush.msra.mxu0 %v2255_v53 }
 0xd40   :  { %v1734_v46 = vmul.f32 1.442695, %v1729_v57  ;;  %v1736_v1 = vmul.f32 1.442695, %v1730_v18 }
 0xd41   :  { %v1732_v22 = vmul.f32 1.442695, %v1728_v16 }
 0xd43   :  { %2351 = vpow2.f32 %v1732_v22 }
 0xd44   :  { %2353 = vpow2.f32 %v1734_v46  ;;  %v2254_v46 = vld [vmem:[%s3941_s9 + $0x1b0] sm:$0xff] }
 0xd45   :  { %2355 = vpow2.f32 %v1736_v1  ;;  %1918 = vmatpush.msra.mxu0 %v2254_v46 }
 0xd46   :  { %v1727_v61 = vpop.xlane.xlu0 %1726 }
 0xd47   :  { %v1731_v9 = vsub.f32 %v1719_v14, %v1727_v61 }
 0xd49   :  { %v2352_v35 = vpop.eup %2351  ;;  %v1738_v5 = vmul.f32 1.442695, %v1731_v9 }
 0xd4a   :  { %v1740_v49 = vmul.f32 %v3573_v26, %v2352_v35  ;;  %v2354_v25 = vpop.eup %2353  ;;  %v2253_v35 = vld [vmem:[%s3941_s9 + $0x1a8] sm:$0xff] }
 0xd4b   :  { %v3804_v48 = vmul.f32 %v3976_v19, %v2354_v25  ;;  %v2356_v3 = vpop.eup %2355  ;;  %2357 = vpow2.f32 %v1738_v5  ;;  %v2252_v25 = vld [vmem:[%s3941_s9 + $0x1a0] sm:$0xff]  ;;  %1919 = vmatpush.msra.mxu0 %v2253_v35  ;;  %v2251_v5 = vld [vmem:[%s3941_s9 + $0x198] sm:$0xff] }
 0xd4c   :  { %1760 = vmatmul.f32.vlgmr.msrb.gmra.mxu2 %v1740_v49  ;;  %v3808_v59 = vmul.f32 %v3977_v31, %v2356_v3 }
 0xd4d   :  { %1920 = vmatpush.msra.mxu0 %v2252_v25 }
 0xd4f   :  { %1921 = vmatpush.msra.mxu0 %v2251_v5 }
 0xd51   :  { %v2358_v26 = vpop.eup %2357 }
 0xd52   :  { %v3812_v2 = vmul.f32 %v3978_v27, %v2358_v26  ;;  %v2250_v27 = vld [vmem:[%s3941_s9 + $0x190] sm:$0xff] }
 0xd53   :  { %1922 = vmatpush.msra.mxu0 %v2250_v27 }
 0xd54   :  { %1763 = vmatmul.f32.gmra.mxu2 %v3804_v48 }
 0xd5c   :  { %1766 = vmatmul.f32.gmra.mxu2 %v3808_v59 }
 0xd64   :  { %1769 = vmatmul.f32.gmra.mxu2 %v3812_v2 }
 0xdcf   :  { %v1761_v4 = vpop.f32.mrf.mxu2 }
 0xdd0   :  { %v1773_v56 = vmax.f32 %v1761_v4, 1e-30 }
 0xdd2   :  { %2359 = vrcp.f32 %v1773_v56  ;;  %v1788_v17 = vand.u32 2147483648, %v1773_v56  ;;  %v1786_v7 = vand.u32 2147483647, %v1773_v56  ;;  %vm1782_vm7 = vweird.f32 %v1773_v56 }
 0xdd4   :  { %v1789_v44 = vor.u32 1.1754944e-38, %v1788_v17  ;;  %vm1787_vm9 = vcmp.eq.f32.partialorder %v1786_v7, 8.507059e+37 }
 0xdd7   :  { %v1764_v55 = vpop.f32.mrf.mxu2 }
 0xdd8   :  { %v2360_v6 = vpop.eup %2359  ;;  %v1774_v11 = vmax.f32 %v1764_v55, 1e-30 }
 0xdd9   :  { %v1778_v37 = vmul.f32 %v2360_v6, %v1773_v56  ;;  %vm1783_vm6 = vweird.f32 %v2360_v6 }
 0xdda   :  { %2361 = vrcp.f32 %v1774_v11  ;;  %vm1784_vm8 = vmor %vm1782_vm7, %vm1783_vm6  ;;  %v1803_v29 = vand.u32 2147483648, %v1774_v11  ;;  %v1801_v32 = vand.u32 2147483647, %v1774_v11  ;;  %vm1797_vm11 = vweird.f32 %v1774_v11 }
 0xddb   :  { %v1779_v51 = vsub.f32 1.0, %v1778_v37  ;;  %v2248_v37 = vld [vmem:[%s3941_s9 + $0x180] sm:$0xff] }
 0xddc   :  { %v1804_v0 = vor.u32 1.1754944e-38, %v1803_v29  ;;  %vm1802_vm13 = vcmp.eq.f32.partialorder %v1801_v32, 8.507059e+37 }
 0xddd   :  { %v1780_v30 = vmul.f32 %v2360_v6, %v1779_v51  ;;  %v2290_v51 = vld [vmem:[%s3940_s8 + $0x3] ss:$0 sm:$0xff]  ;;  %s2096_s8 = sshll.u32 %s2499_s0, 4  ;;  %s2097_s8 = int_to_ptr.vmem [resolvable:$true] %s2096_s8 }
 0xddf   :  { %v1767_v21 = vpop.f32.mrf.mxu2  ;;  %v1781_v40 = vadd.f32 %v2360_v6, %v1780_v30 }
 0xde0   :  { %v2362_v15 = vpop.eup %2361  ;;  %v1775_v8 = vmax.f32 %v1767_v21, 1e-30 }
 0xde1   :  { %v1793_v20 = vmul.f32 %v2362_v15, %v1774_v11  ;;  %v1785_v60 = vsel %vm1784_vm8, %v2360_v6, %v1781_v40  ;;  %vm1798_vm10 = vweird.f32 %v2362_v15 }
 0xde2   :  { %2363 = vrcp.f32 %v1775_v8  ;;  %v1790_v41 = vsel %vm1787_vm9, %v1789_v44, %v1785_v60  ;;  %vm1799_vm12 = vmor %vm1797_vm11, %vm1798_vm10  ;;  %v1818_v16 = vand.u32 2147483648, %v1775_v8  ;;  %v1816_v57 = vand.u32 2147483647, %v1775_v8 }
 0xde3   :  { %v1791_v43 = vmul.f32 %v1790_v41, %v1740_v49  ;;  %v1794_v62 = vsub.f32 1.0, %v1793_v20  ;;  %vm1812_vm15 = vweird.f32 %v1775_v8 }
 0xde4   :  { %v1819_v49 = vor.u32 1.1754944e-38, %v1818_v16  ;;  %vm1817_vm3 = vcmp.eq.f32.partialorder %v1816_v57, 8.507059e+37 }
 0xde5   :  { %1874 = vmatmul.f32.vlgmr.msrb.gmra.mxu3 %v1791_v43  ;;  %v1795_v38 = vmul.f32 %v2362_v15, %v1794_v62 }
 0xde7   :  { %v1770_v34 = vpop.f32.mrf.mxu2  ;;  %v1796_v24 = vadd.f32 %v2362_v15, %v1795_v38 }
 0xde8   :  { %v2364_v39 = vpop.eup %2363  ;;  %v1776_v54 = vmax.f32 %v1770_v34, 1e-30 }
 0xde9   :  { %v1808_v10 = vmul.f32 %v2364_v39, %v1775_v8  ;;  %v1800_v58 = vsel %vm1799_vm12, %v2362_v15, %v1796_v24  ;;  %vm1813_vm14 = vweird.f32 %v2364_v39  ;;  %v2291_v8 = vld [vmem:[%s3942_s10 + $0x3] ss:$0 sm:$0xff] }
 0xdea   :  { %2365 = vrcp.f32 %v1776_v54  ;;  %v1805_v50 = vsel %vm1802_vm13, %v1804_v0, %v1800_v58  ;;  %vm1814_vm2 = vmor %vm1812_vm15, %vm1813_vm14  ;;  %v1833_v3 = vand.u32 2147483648, %v1776_v54  ;;  %v1831_v26 = vand.u32 2147483647, %v1776_v54 }
 0xdeb   :  { %v1806_v14 = vmul.f32 %v1805_v50, %v3804_v48  ;;  %v1809_v45 = vsub.f32 1.0, %v1808_v10  ;;  %vm1827_vm5 = vweird.f32 %v1776_v54 }
 0xdec   :  { %v1834_v56 = vor.u32 1.1754944e-38, %v1833_v3  ;;  %vm1832_vm7 = vcmp.eq.f32.partialorder %v1831_v26, 8.507059e+37  ;;  %v2014_v3 = vld [vmem:[%s3945_s13 + $0x18] sm:$0xff]  ;;  %v2013_v26 = vld [vmem:[%s3945_s13 + $0x10] sm:$0xff] }
 0xded   :  { %1877 = vmatmul.f32.gmra.mxu3 %v1806_v14  ;;  %v1810_v22 = vmul.f32 %v2364_v39, %v1809_v45  ;;  %2043 = vmatpush.msra.mxu1 %v2014_v3 }
 0xdef   :  { %v1811_v12 = vadd.f32 %v2364_v39, %v1810_v22  ;;  %2044 = vmatpush.msra.mxu1 %v2013_v26 }
 0xdf0   :  { %v2366_v18 = vpop.eup %2365 }
 0xdf1   :  { %v1823_v1 = vmul.f32 %v2366_v18, %v1776_v54  ;;  %v1815_v61 = vsel %vm1814_vm2, %v2364_v39, %v1811_v12  ;;  %vm1828_vm4 = vweird.f32 %v2366_v18 }
 0xdf2   :  { %v1820_v9 = vsel %vm1817_vm3, %v1819_v49, %v1815_v61  ;;  %vm1829_vm6 = vmor %vm1827_vm5, %vm1828_vm4 }
 0xdf3   :  { %v1824_v19 = vsub.f32 1.0, %v1823_v1  ;;  %v1821_v48 = vmul.f32 %v1820_v9, %v3808_v59  ;;  %v2249_v59 = vld [vmem:[%s3941_s9 + $0x188] sm:$0xff]  ;;  %s2098_s9 = sshll.u32 %s3950_s18, 4  ;;  %s2500_s18 = smov [#allocation6]   ;;  %s2099_s9 = int_to_ptr.hbm [resolvable:$true] %s2098_s9 }
 0xdf4   :  { %1923 = vmatpush.msra.mxu0 %v2249_v59  ;;  %2104 = dma.vmem_to_hbm [thread:$0]  %s2097_s8, 512, %s2099_s9, [#allocation4], %s2496_s22, %s2496_s22, %s2497_s2  }
 0xdf5   :  { %1880 = vmatmul.f32.gmra.mxu3 %v1821_v48  ;;  %v1825_v31 = vmul.f32 %v2366_v18, %v1824_v19 }
 0xdf6   :  { %1924 = vmatpush.msra.mxu0 %v2248_v37 }
 0xdf7   :  { %v1826_v4 = vadd.f32 %v2366_v18, %v1825_v31 }
 0xdf9   :  { %v1830_v55 = vsel %vm1829_vm6, %v2366_v18, %v1826_v4  ;;  %v2012_v4 = vld [vmem:[%s3945_s13 + $0x8] sm:$0xff] }
 0xdfa   :  { %v1835_v6 = vsel %vm1832_vm7, %v1834_v56, %v1830_v55  ;;  %2045 = vmatpush.msra.mxu1 %v2012_v4  ;;  %v2011_v56 = vld [vmem:[%s3945_s13] sm:$0xff] }
 0xdfb   :  { %v1836_v11 = vmul.f32 %v1835_v6, %v3812_v2 }
 0xdfc   :  { %2046 = vmatpush.msra.mxu1 %v2011_v56 }
 0xdfd   :  { %1883 = vmatmul.f32.gmra.mxu3 %v1836_v11 }
 0xe68   :  { %v1875_v17 = vpop.f32.mrf.mxu3 }
 0xe69   :  { %v1876_v30 = vadd.f32 %v2290_v51, %v1875_v17 }
 0xe6b   :  { %1925 = vmatmul.f32.vlgmr.msra.gmra.mxu0 %v1876_v30 }
 0xe70   :  { %v1878_v7 = vpop.f32.mrf.mxu3 }
 0xe71   :  { %v1879_v33 = vadd.f32 %v2290_v51, %v1878_v7 }
 0xe73   :  { %1928 = vmatmul.f32.gmra.mxu0 %v1879_v33 }
 0xe78   :  { %v1881_v52 = vpop.f32.mrf.mxu3 }
 0xe79   :  { %v1882_v21 = vadd.f32 %v2290_v51, %v1881_v52 }
 0xe7b   :  { %1931 = vmatmul.f32.gmra.mxu0 %v1882_v21  ;;  %v2292_v21 = vld [vmem:[%s3943_s11 + $0x3] ss:$0 sm:$0xff] }
 0xe80   :  { %v1884_v2 = vpop.f32.mrf.mxu3 }
 0xe81   :  { %v1885_v40 = vadd.f32 %v2290_v51, %v1884_v2 }
 0xe83   :  { %1934 = vmatmul.f32.gmra.mxu0 %v1885_v40 }
 0xee8   :  { %v1926_v28 = vpop.f32.mrf.mxu0 }
 0xee9   :  { %v1927_v60 = vadd.f32 %v2291_v8, %v1926_v28 }
 0xeeb   :  { %v1938_v43 = vmax.f32 %v1927_v60, 0.0 }
 0xeed   :  { %v1942_v38 = vsel %vm179_vm1, %v1938_v43, 0.0 }
 0xef0   :  { %v1929_v15 = vpop.f32.mrf.mxu0 }
 0xef1   :  { %v1930_v44 = vadd.f32 %v2291_v8, %v1929_v15 }
 0xef3   :  { %v1939_v41 = vmax.f32 %v1930_v44, 0.0 }
 0xef5   :  { %v1943_v63 = vsel %vm179_vm1, %v1939_v41, 0.0 }
 0xef6   :  { %v1944_v34 = vadd.f32 %v1943_v63, %v1942_v38 }
 0xef8   :  { %v1932_v20 = vpop.f32.mrf.mxu0 }
 0xef9   :  { %v1933_v13 = vadd.f32 %v2291_v8, %v1932_v20 }
 0xefb   :  { %v1940_v62 = vmax.f32 %v1933_v13, 0.0 }
 0xefd   :  { %v1945_v32 = vsel %vm179_vm1, %v1940_v62, 0.0 }
 0xefe   :  { %v1946_v36 = vadd.f32 %v1945_v32, %v1944_v34 }
 0xf00   :  { %v1935_v29 = vpop.f32.mrf.mxu0 }
 0xf01   :  { %v1936_v47 = vadd.f32 %v2291_v8, %v1935_v29  ;;  %v2294_v29 = vld [vmem:[%s3946_s14] ss:$0 sm:$0xff] }
 0xf03   :  { %v1941_v24 = vmax.f32 %v1936_v47, 0.0  ;;  %v2413_v47 = vld [vmem:[%s3966_s28] sm:$0xff] }
 0xf05   :  { %v1947_v39 = vsel %vm179_vm1, %v1941_v24, 0.0 }
 0xf06   :  { %v1948_v54 = vadd.f32 %v1947_v39, %v1946_v36 }
 0xf08   :  { %v1949_v0 = vrot.slane %v1948_v54, 4 }
 0xf0a   :  { %v1950_v10 = vadd.f32 %v1949_v0, %v1948_v54  ;;  %v2414_v0 = vld [vmem:[%s3966_s28 + $0x8] sm:$0xff] }
 0xf0c   :  { %v1951_v58 = vrot.slane %v1950_v10, 2 }
 0xf0e   :  { %v1952_v23 = vadd.f32 %v1951_v58, %v1950_v10 }
 0xf10   :  { %v1953_v50 = vrot.slane %v1952_v23, 1 }
 0xf12   :  { %v1954_v14 = vadd.f32 %v1953_v50, %v1952_v23 }
 0xf14   :  { %v1955_v45 = vmul.f32 %v1954_v14, %v3052_v42 }
 0xf16   :  { %v1956_v53 = vsub.f32 %v1938_v43, %v1955_v45  ;;  %v1957_v16 = vsub.f32 %v1939_v41, %v1955_v45  ;;  %v1958_v22 = vsub.f32 %v1940_v62, %v1955_v45  ;;  %v1959_v57 = vsub.f32 %v1941_v24, %v1955_v45  ;;  %v2415_v45 = vld [vmem:[%s3966_s28 + $0x10] sm:$0xff] }
 0xf18   :  { %v1960_v46 = vmul.f32 %v1956_v53, %v1956_v53  ;;  %v1961_v12 = vmul.f32 %v1957_v16, %v1957_v16  ;;  %v1962_v35 = vmul.f32 %v1958_v22, %v1958_v22  ;;  %v1963_v18 = vmul.f32 %v1959_v57, %v1959_v57 }
 0xf1a   :  { %v1964_v49 = vsel %vm179_vm1, %v1960_v46, 0.0  ;;  %v1965_v1 = vsel %vm179_vm1, %v1961_v12, 0.0  ;;  %v1967_v25 = vsel %vm179_vm1, %v1962_v35, 0.0  ;;  %v1969_v19 = vsel %vm179_vm1, %v1963_v18, 0.0  ;;  %v2416_v12 = vld [vmem:[%s3966_s28 + $0x18] sm:$0xff]  ;;  %s2110_s28 = sshll.u32 %s2500_s18, 4  ;;  %s2111_s28 = int_to_ptr.vmem [resolvable:$true] %s2110_s28 }
 0xf1b   :  { %v1966_v61 = vadd.f32 %v1965_v1, %v1964_v49 }
 0xf1d   :  { %v1968_v9 = vadd.f32 %v1967_v25, %v1966_v61 }
 0xf1f   :  { %v1970_v48 = vadd.f32 %v1969_v19, %v1968_v9 }
 0xf21   :  { %v1971_v5 = vrot.slane %v1970_v48, 4 }
 0xf23   :  { %v1972_v31 = vadd.f32 %v1971_v5, %v1970_v48 }
 0xf25   :  { %v1973_v27 = vrot.slane %v1972_v31, 2 }
 0xf27   :  { %v1974_v59 = vadd.f32 %v1973_v27, %v1972_v31 }
 0xf29   :  { %v1975_v55 = vrot.slane %v1974_v59, 1 }
 0xf2b   :  { %v1976_v6 = vadd.f32 %v1975_v55, %v1974_v59 }
 0xf2d   :  { %v1977_v11 = vmul.f32 %v1976_v6, %v3052_v42  ;;  %v2293_v42 = vld [vmem:[%s3944_s12 + $0x3] ss:$0 sm:$0xff] }
 0xf2f   :  { %v1978_v37 = vadd.f32 1e-05, %v1977_v11 }
 0xf31   :  { %2367 = vrsqrt.f32 %v1978_v37  ;;  %vm1985_vm9 = vweird.f32 %v1978_v37 }
 0xf37   :  { %v2368_v51 = vpop.eup %2367 }
 0xf38   :  { %v1980_v17 = vmul.f32 %v2368_v51, %v1978_v37  ;;  %vm1986_vm8 = vweird.f32 %v2368_v51 }
 0xf39   :  { %vm1987_vm10 = vmor %vm1985_vm9, %vm1986_vm8 }
 0xf3a   :  { %v1981_v30 = vmul.f32 %v2368_v51, %v1980_v17 }
 0xf3c   :  { %v1982_v7 = vmul.f32 0.5, %v1981_v30 }
 0xf3e   :  { %v1983_v33 = vsub.f32 1.5, %v1982_v7 }
 0xf40   :  { %v1984_v52 = vmul.f32 %v2368_v51, %v1983_v33 }
 0xf42   :  { %v1988_v2 = vsel %vm1987_vm10, %v2368_v51, %v1984_v52 }
 0xf43   :  { %v1989_v40 = vmul.f32 %v1988_v2, %v1956_v53  ;;  %v1990_v8 = vmul.f32 %v1988_v2, %v1957_v16  ;;  %v1991_v60 = vmul.f32 %v1988_v2, %v1958_v22  ;;  %v1992_v41 = vmul.f32 %v1988_v2, %v1959_v57 }
 0xf45   :  { %v1998_v28 = vmul.f32 %v2292_v21, %v1989_v40  ;;  %v1999_v44 = vmul.f32 %v2292_v21, %v1990_v8  ;;  %v2000_v13 = vmul.f32 %v2292_v21, %v1991_v60  ;;  %v2001_v62 = vmul.f32 %v2292_v21, %v1992_v41 }
 0xf47   :  { %v2007_v15 = vadd.f32 %v2293_v42, %v1998_v28  ;;  %v2008_v20 = vadd.f32 %v2293_v42, %v1999_v44  ;;  %v2009_v43 = vadd.f32 %v2293_v42, %v2000_v13  ;;  %v2010_v63 = vadd.f32 %v2293_v42, %v2001_v62 }
 0xf49   :  { %2267 = vmatmul.msk.f32.vlgmr.msra.gmra.mxu1 %vm179_vm1, %v2007_v15 }
 0xf51   :  { %2268 = vmatmul.msk.f32.gmra.mxu1 %vm179_vm1, %v2008_v20 }
 0xf59   :  { %2269 = vmatmul.msk.f32.gmra.mxu1 %vm179_vm1, %v2009_v43 }
 0xf61   :  { %2270 = vmatmul.msk.f32.gmra.mxu1 %vm179_vm1, %v2010_v63 }
 0xfc6   :  { %v2048_v38 = vpop.f32.mrf.mxu1 }
 0xfc7   :  { %v2049_v32 = vadd.f32 %v2294_v29, %v2048_v38 }
 0xfc9   :  { %v2060_v34 = vsub.f32 %v2049_v32, %v2413_v47 }
 0xfcb   :  { %v2064_v24 = vmul.f32 %v2060_v34, %v2060_v34 }
 0xfcd   :  { %v2068_v36 = vsel %vm133_vm0, %v2064_v24, 0.0 }
 0xfce   :  { %v2051_v39 = vpop.f32.mrf.mxu1  ;;  %2069 = vadd.xlane.f32.xlu1 %v2068_v36 }
 0xfcf   :  { %v2052_v54 = vadd.f32 %v2294_v29, %v2051_v39 }
 0xfd1   :  { %v2061_v10 = vsub.f32 %v2052_v54, %v2414_v0 }
 0xfd3   :  { %v2065_v58 = vmul.f32 %v2061_v10, %v2061_v10 }
 0xfd5   :  { %v2071_v23 = vsel %vm133_vm0, %v2065_v58, 0.0 }
 0xfd6   :  { %v2054_v50 = vpop.f32.mrf.mxu1  ;;  %2072 = vadd.xlane.f32.xlu2 %v2071_v23 }
 0xfd7   :  { %v2055_v14 = vadd.f32 %v2294_v29, %v2054_v50 }
 0xfd9   :  { %v2062_v53 = vsub.f32 %v2055_v14, %v2415_v45 }
 0xfdb   :  { %v2066_v16 = vmul.f32 %v2062_v53, %v2062_v53 }
 0xfdd   :  { %v2074_v22 = vsel %vm133_vm0, %v2066_v16, 0.0 }
 0xfde   :  { %v2057_v57 = vpop.f32.mrf.mxu1  ;;  %2075 = vadd.xlane.f32.xlu0 %v2074_v22 }
 0xfdf   :  { %v2058_v46 = vadd.f32 %v2294_v29, %v2057_v57 }
 0xfe1   :  { %v2063_v35 = vsub.f32 %v2058_v46, %v2416_v12 }
 0xfe3   :  { %v2067_v18 = vmul.f32 %v2063_v35, %v2063_v35 }
 0xfe5   :  { %v2077_v49 = vsel %vm133_vm0, %v2067_v18, 0.0  ;;  %vm2090_vm0 = vcmask 0  }
 0xfe6   :  { %2078 = vadd.xlane.f32.xlu1 %v2077_v49 }
0x1041   :  { %v2070_v1 = vpop.xlane.xlu1 %2069 }
0x1049   :  { %v2073_v61 = vpop.xlane.xlu2 %2072 }
0x104a   :  { %v2080_v9 = vadd.f32 %v2073_v61, %v2070_v1 }
0x1051   :  { %v2076_v25 = vpop.xlane.xlu0 %2075 }
0x1052   :  { %v2081_v19 = vadd.f32 %v2080_v9, %v2076_v25 }
0x1059   :  { %v2079_v48 = vpop.xlane.xlu1 %2078 }
0x105a   :  { %v2082_v5 = vadd.f32 %v2081_v19, %v2079_v48 }
0x105c   :  { %v2083_v3 = vrot.slane %v2082_v5, 4 }
0x105e   :  { %v2084_v31 = vadd.f32 %v2083_v3, %v2082_v5 }
0x1060   :  { %v2085_v26 = vrot.slane %v2084_v31, 2 }
0x1062   :  { %v2086_v27 = vadd.f32 %v2085_v26, %v2084_v31 }
0x1064   :  { %v2087_v4 = vrot.slane %v2086_v27, 1 }
0x1066   :  { %v2088_v59 = vadd.f32 %v2087_v4, %v2086_v27 }
0x1068   :  { %v2089_v56 = vmul.f32 0.001953125, %v2088_v59 }
0x106a   :  { %2091 = vst.msk [vmem:[#allocation6] sm:$0x1] %vm2090_vm0, %v2089_v56 }
0x106b   :  { %2115 = dma.vmem_to_hbm [thread:$0]  %s2111_s28, 16, %s2113_s20, [#allocation7]  }
0x106c   :  { %2491 = dma.done.wait [#allocation4], 512  }
0x106d   :  { %2492 = vsyncadd [#allocation4], 4294966784 }
0x106e   :  { %2493 = dma.done.wait [#allocation7], 16  }
0x106f   :  { %2494 = vsyncadd [#allocation7], 4294967280 }
0x1070   :  { %2124 = vsyncpa [#allocation3], 1 }
0x1071   :  { %2125 = vsyncpa [#allocation4], 1 }
0x1072   :  { %2126 = vsyncpa [#allocation7], 1 }

</bundles_post_ra>
